<compile_context>
chip_gen: v6e
topology: v6e:2x2x1
jax: 0.10.0
libtpu: 0.0.40
codegen_flags: <defaults>
</compile_context>

<pallas_src>
import functools

import jax
import jax.numpy as jnp
import numpy as np
from jax import lax
from jax.experimental import pallas as pl
from jax.experimental.pallas import tpu as pltpu


# ----------------------------------------------------------------------------
# Pallas kernel: one grid step = (batch n, temporal tile t) of TT frames.
# ----------------------------------------------------------------------------
def bottleneck_kernel(xp_ref, xc_ref, xn_ref,
                      w1_ref, b1_ref, w2_ref, b2_ref, w3_ref, b3_ref,
                      out_ref):
    _, TT, H, W, Ci = xc_ref.shape
    Cm = w1_ref.shape[2]
    Co = w3_ref.shape[1]
    HW = H * W
    M = TT * HW                       # rows of every matmul (whole tile)
    M2 = TT * (H + 2) * W             # rows of the H-padded conv2 buffer
    f32 = jnp.float32
    cdt = xc_ref.dtype                # bf16 compute dtype

    t = pl.program_id(1)
    n_t = pl.num_programs(1)

    # ---- conv1: (3,1,1) temporal conv (BN1 scale pre-folded) + bias + ReLU --
    # Frame-axis concat of [prev halo, tile, next halo]; the three temporal
    # taps are offset slices of the same buffer -> 3 matmuls with M = TT*HW.
    prev = jnp.where(t > 0, xp_ref[0], 0)            # zero temporal padding
    nxt = jnp.where(t < n_t - 1, xn_ref[0], 0)
    xx = jnp.concatenate([prev, xc_ref[0], nxt], axis=0)   # (TT+2, H, W, Ci)
    xx = xx.reshape((TT + 2) * HW, Ci)

    acc1 = (jnp.dot(xx[:M], w1_ref[0], preferred_element_type=f32)
            + jnp.dot(xx[HW:HW + M], w1_ref[1], preferred_element_type=f32)
            + jnp.dot(xx[2 * HW:], w1_ref[2], preferred_element_type=f32))
    h1 = jnp.maximum(acc1 + b1_ref[...], 0.0)               # f32 (M, Cm)

    # ---- conv2: (1,3,3) spatial conv (BN2 folded) + bias + ReLU -------------
    # Zero-pad along H only (major dim, tile-aligned).  The two W-shifted taps
    # are built once via an XLU sublane rotate of the flattened f32 buffer
    # (pltpu.roll == jnp.roll semantics) plus a boundary-column mask, then
    # cast to bf16.
    zrow = jnp.zeros((TT, 1, W, Cm), f32)
    hp32 = jnp.concatenate([zrow, h1.reshape(TT, H, W, Cm), zrow], axis=1)
    hpf = hp32.reshape(M2, Cm)
    col = lax.broadcasted_iota(jnp.int32, (1, 1, W, Cm), 2)
    wm1 = pltpu.roll(hpf, 1, 0).reshape(TT, H + 2, W, Cm)        # col w-1
    wp1 = pltpu.roll(hpf, M2 - 1, 0).reshape(TT, H + 2, W, Cm)   # col w+1
    taps_w = (jnp.where(col == 0, 0.0, wm1).astype(cdt),         # dw = 0
              hp32.astype(cdt),                                  # dw = 1
              jnp.where(col == W - 1, 0.0, wp1).astype(cdt))     # dw = 2

    acc2 = jnp.zeros((M, Cm), f32)
    for dh in range(3):
        for dw in range(3):
            src = taps_w[dw][:, dh:dh + H].reshape(M, Cm)        # (M, Cm) bf16
            acc2 = acc2 + jnp.dot(src, w2_ref[dh, dw],
                                  preferred_element_type=f32)
    h2 = jnp.maximum(acc2 + b2_ref[...], 0.0).astype(cdt)        # bf16 (M, Cm)

    # ---- conv3: 1x1x1 (BN3 folded) + bias, residual add + ReLU, store -------
    h3 = jnp.dot(h2, w3_ref[...], preferred_element_type=f32) + b3_ref[...]
    res = xc_ref[0].reshape(M, Ci).astype(f32)                   # identity path
    out = jnp.maximum(h3 + res, 0.0)
    out_ref[0] = out.reshape(TT, H, W, Co).astype(out_ref.dtype)


# ----------------------------------------------------------------------------
# Wrapper
# ----------------------------------------------------------------------------
def _round_up(c, m=128):
    return ((c + m - 1) // m) * m


def _vmem_limit_bytes(tt, H, W, Cip, Cmp, Cop):
    """Rough per-grid-step VMEM footprint -> scoped limit (v7x-safe cap)."""
    bf, f4 = 2, 4
    hw, m, m2 = H * W, tt * H * W, tt * (H + 2) * W
    io = 2 * ((tt + 2) * hw * Cip + tt * hw * Cop) * bf           # dbl-buffered tiles
    wts = 2 * (3 * Cip * Cmp + 9 * Cmp * Cmp + Cmp * Cop) * bf \
        + 2 * (2 * Cmp + Cop) * f4                                # dbl-buffered weights
    live = ((tt + 2) * hw * Cip * bf                              # xx concat
            + 2 * m * Cmp * f4                                    # acc1/h1, acc2
            + m2 * Cmp * (f4 + 3 * bf)                            # hp32 + 3 bf16 taps
            + m * Cop * (f4 + bf))                                # h3/out + store tmp
    est = io + wts + 2 * live                                     # headroom for temps
    return int(min(max(est, 32 * 1024 * 1024), 48 * 1024 * 1024))


@functools.partial(jax.jit, static_argnames=("tt",))
def bottleneck3d_cost(x, w1, s1, b1, w2, s2, b2, w3, s3, b3, *, tt=4):
    """x: (N, T, H, W, Cin) channels-last f32.
       w1: (3, Cin, Cmid), w2: (3, 3, Cmid, Cmid), w3: (Cmid, Cout),
       s*/b*: (1, C) folded eval-mode BatchNorm scale/bias.
       Returns (N, T, H, W, Cout) bf16."""
    N, T, H, W, Cin = x.shape
    Cmid = w1.shape[2]
    Cout = w3.shape[1]
    # Default config: stride 1, no downsample -> identity residual.
    assert Cin == Cout, "identity residual requires inplanes == planes*expansion"
    assert tt >= 1 and T % tt == 0, "temporal tile must divide T"
    assert W % 8 == 0, "W must be a multiple of 8 (sublane-aligned layout)"
    # TODO(synk): pad W (with post-conv1 re-zeroing of pad columns) to lift the
    # W % 8 restriction for W = 7 / 14 style video-net sizes.

    Cip, Cmp, Cop = _round_up(Cin), _round_up(Cmid), _round_up(Cout)
    cdt = jnp.bfloat16
    # TODO(synk): for Cmid < 128, im2col the 9 spatial taps into the contraction
    # dim (K = 9*Cmid) instead of padding Cmid to 128 -> avoids the quadratic
    # 9*Cmp^2 over-compute in conv2.

    # Fold eval-mode BN scales into the conv weights (output channel is the
    # last axis); only the f32 bias adds remain in the kernel.
    w1f = w1 * s1[0]
    w2f = w2 * s2[0]
    w3f = w3 * s3[0]

    # Zero-pad channels to multiples of 128 (lane-dense layouts, unmasked
    # stores, full-width MXU contractions); padded channels stay exactly zero
    # because weights *and* biases are zero-padded.  Activations/weights go to
    # bf16; matmuls accumulate in f32.
    xq = jnp.pad(x, ((0, 0),) * 4 + ((0, Cip - Cin),)).astype(cdt)
    w1p = jnp.pad(w1f, ((0, 0), (0, Cip - Cin), (0, Cmp - Cmid))).astype(cdt)
    w2p = jnp.pad(w2f, ((0, 0), (0, 0), (0, Cmp - Cmid),
                        (0, Cmp - Cmid))).astype(cdt)
    w3p = jnp.pad(w3f, ((0, Cmp - Cmid), (0, Cop - Cout))).astype(cdt)
    b1p = jnp.pad(b1, ((0, 0), (0, Cmp - Cmid))).astype(jnp.float32)
    b2p = jnp.pad(b2, ((0, 0), (0, Cmp - Cmid))).astype(jnp.float32)
    b3p = jnp.pad(b3, ((0, 0), (0, Cop - Cout))).astype(jnp.float32)

    n_t = T // tt

    grid_spec = pltpu.PrefetchScalarGridSpec(
        num_scalar_prefetch=0,
        grid=(N, n_t),
        in_specs=[
            # previous frame (temporal halo; clamped + masked in-kernel at t==0)
            pl.BlockSpec((1, 1, H, W, Cip),
                         lambda n, t: (n, jnp.maximum(t * tt - 1, 0), 0, 0, 0)),
            # current temporal tile of tt frames
            pl.BlockSpec((1, tt, H, W, Cip), lambda n, t: (n, t, 0, 0, 0)),
            # next frame (temporal halo; clamped + masked at the last tile)
            pl.BlockSpec((1, 1, H, W, Cip),
                         lambda n, t: (n, jnp.minimum((t + 1) * tt, T - 1),
                                       0, 0, 0)),
            # weights / biases: constant block index -> stay resident in VMEM.
            # TODO(synk): single-buffer these (pipeline_mode=pl.Buffered(1)) on
            # v7x to halve resident weight VMEM.
            pl.BlockSpec((3, Cip, Cmp), lambda n, t: (0, 0, 0)),
            pl.BlockSpec((1, Cmp), lambda n, t: (0, 0)),
            pl.BlockSpec((3, 3, Cmp, Cmp), lambda n, t: (0, 0, 0, 0)),
            pl.BlockSpec((1, Cmp), lambda n, t: (0, 0)),
            pl.BlockSpec((Cmp, Cop), lambda n, t: (0, 0)),
            pl.BlockSpec((1, Cop), lambda n, t: (0, 0)),
        ],
        out_specs=pl.BlockSpec((1, tt, H, W, Cop), lambda n, t: (n, t, 0, 0, 0)),
    )

    # Cost estimate with TRUE (unpadded) channel counts and bf16 byte counts.
    flops = 2 * N * T * H * W * (3 * Cin * Cmid + 9 * Cmid * Cmid + Cmid * Cout)
    bytes_accessed = (2 * N * T * H * W * (Cin + (2 * Cin) // tt + Cout)
                      + 2 * (3 * Cin * Cmid + 9 * Cmid * Cmid + Cmid * Cout)
                      + 4 * (2 * Cmid + Cout))
    cost = pl.CostEstimate(flops=int(flops), transcendentals=0,
                           bytes_accessed=int(bytes_accessed))

    out = pl.pallas_call(
        bottleneck_kernel,
        out_shape=jax.ShapeDtypeStruct((N, T, H, W, Cop), cdt),
        grid_spec=grid_spec,
        compiler_params=pltpu.CompilerParams(
            dimension_semantics=("parallel", "parallel"),
            vmem_limit_bytes=_vmem_limit_bytes(tt, H, W, Cip, Cmp, Cop)),
        cost_estimate=cost,
    )(xq, xq, xq, w1p, b1p, w2p, b2p, w3p, b3p)

    return out[..., :Cout]


# ----------------------------------------------------------------------------
# Pure-JAX reference (torch NCTHW / OIDHW conventions, f32)
# ----------------------------------------------------------------------------
def ref_forward(x_ncthw, w1, s1, b1, w2, s2, b2, w3, s3, b3):
    dn = ('NCDHW', 'OIDHW', 'NCDHW')

    def bn(y, s, b):
        return y * s[0][None, :, None, None, None] + b[0][None, :, None, None, None]

    w1_t = jnp.transpose(w1, (2, 1, 0))[:, :, :, None, None]   # (O,I,3,1,1)
    y = lax.conv_general_dilated(x_ncthw, w1_t, (1, 1, 1),
                                 [(1, 1), (0, 0), (0, 0)], dimension_numbers=dn)
    y = jnp.maximum(bn(y, s1, b1), 0.0)

    w2_t = jnp.transpose(w2, (3, 2, 0, 1))[:, :, None, :, :]   # (O,I,1,3,3)
    y = lax.conv_general_dilated(y, w2_t, (1, 1, 1),
                                 [(0, 0), (1, 1), (1, 1)], dimension_numbers=dn)
    y = jnp.maximum(bn(y, s2, b2), 0.0)

    w3_t = jnp.transpose(w3, (1, 0))[:, :, None, None, None]   # (O,I,1,1,1)
    y = lax.conv_general_dilated(y, w3_t, (1, 1, 1),
                                 [(0, 0), (0, 0), (0, 0)], dimension_numbers=dn)
    y = bn(y, s3, b3)
    return jnp.maximum(y + x_ncthw, 0.0)


# ----------------------------------------------------------------------------
# Deterministic parameter construction (BN folded to scale/bias, eval mode)
# ----------------------------------------------------------------------------
def make_bn_affine(key, c, eps=1e-5):
    k1, k2, k3, k4 = jax.random.split(key, 4)
    gamma = jax.random.uniform(k1, (c,), jnp.float32, 0.5, 1.5)
    beta = 0.1 * jax.random.normal(k2, (c,), jnp.float32)
    mean = 0.1 * jax.random.normal(k3, (c,), jnp.float32)
    var = jax.random.uniform(k4, (c,), jnp.float32, 0.5, 1.5)
    scale = gamma / jnp.sqrt(var + eps)
    bias = beta - mean * scale
    return scale[None, :], bias[None, :]


if __name__ == "__main__":
    # expansion=4; identity path requires inplanes == planes * 4.
    N, T, H, W = 2, 8, 8, 8
    planes = 8
    inplanes = planes * 4          # 32
    cout = planes * 4              # 32

    key = jax.random.PRNGKey(0)
    kx, kw1, kw2, kw3, kb1, kb2, kb3 = jax.random.split(key, 7)

    # Input in PyTorch NCTHW layout.
    x_ncthw = jax.random.normal(kx, (N, inplanes, T, H, W), jnp.float32)

    # Conv weights stored channels-last for the kernel:
    #   w1[kt, cin, cmid], w2[kh, kw, cmid, cmid], w3[cmid, cout]
    w1 = 0.1 * jax.random.normal(kw1, (3, inplanes, planes), jnp.float32)
    w2 = 0.1 * jax.random.normal(kw2, (3, 3, planes, planes), jnp.float32)
    w3 = 0.1 * jax.random.normal(kw3, (planes, cout), jnp.float32)

    s1, b1 = make_bn_affine(kb1, planes)
    s2, b2 = make_bn_affine(kb2, planes)
    s3, b3 = make_bn_affine(kb3, cout)

    # NCTHW -> NTHWC for the kernel.
    x_nthwc = jnp.transpose(x_ncthw, (0, 2, 3, 4, 1))

    out_nthwc = bottleneck3d_cost(x_nthwc, w1, s1, b1, w2, s2, b2, w3, s3, b3,
                                  tt=4)
    out_nthwc = jax.block_until_ready(out_nthwc)

    # Validate against the pure-JAX / torch-convention f32 reference.
    # Tolerance covers bf16 activations/weights with f32 accumulation.
    ref_ncthw = ref_forward(x_ncthw, w1, s1, b1, w2, s2, b2, w3, s3, b3)
    ref_nthwc = jnp.transpose(ref_ncthw, (0, 2, 3, 4, 1))
    np.testing.assert_allclose(np.asarray(out_nthwc.astype(jnp.float32)),
                               np.asarray(ref_nthwc),
                               rtol=5e-2, atol=1e-1)

    print("KERNEL_OK")
</pallas_src>

<mosaic_0001>
module attributes {stable_mosaic.version = 11 : i64} {
  func.func @bottleneck_kernel(%arg0: i32, %arg1: i32, %arg2: memref<1x1x8x8x128xbf16, #tpu.memory_space<vmem>>, %arg3: memref<1x4x8x8x128xbf16, #tpu.memory_space<vmem>>, %arg4: memref<1x1x8x8x128xbf16, #tpu.memory_space<vmem>>, %arg5: memref<3x128x128xbf16, #tpu.memory_space<vmem>>, %arg6: memref<1x128xf32, #tpu.memory_space<vmem>>, %arg7: memref<3x3x128x128xbf16, #tpu.memory_space<vmem>>, %arg8: memref<1x128xf32, #tpu.memory_space<vmem>>, %arg9: memref<128x128xbf16, #tpu.memory_space<vmem>>, %arg10: memref<1x128xf32, #tpu.memory_space<vmem>>, %arg11: memref<1x4x8x8x128xbf16, #tpu.memory_space<vmem>>) attributes {dimension_semantics = [#tpu.dimension_semantics<parallel>, #tpu.dimension_semantics<parallel>], iteration_bounds = array<i64: 2, 2>, scalar_prefetch = 0 : i64, scratch_operands = 0 : i64, tpu.core_type = #tpu.core_type<tc>, window_params = [{transform_indices = @transform_0, window_bounds = array<i64: 1, 1, 8, 8, 128>}, {transform_indices = @transform_1, window_bounds = array<i64: 1, 4, 8, 8, 128>}, {transform_indices = @transform_2, window_bounds = array<i64: 1, 1, 8, 8, 128>}, {pipeline_mode = #tpu.pipeline_mode<synchronous>, transform_indices = @transform_3, window_bounds = array<i64: 3, 128, 128>}, {pipeline_mode = #tpu.pipeline_mode<synchronous>, transform_indices = @transform_4, window_bounds = array<i64: 1, 128>}, {pipeline_mode = #tpu.pipeline_mode<synchronous>, transform_indices = @transform_5, window_bounds = array<i64: 3, 3, 128, 128>}, {pipeline_mode = #tpu.pipeline_mode<synchronous>, transform_indices = @transform_6, window_bounds = array<i64: 1, 128>}, {pipeline_mode = #tpu.pipeline_mode<synchronous>, transform_indices = @transform_7, window_bounds = array<i64: 128, 128>}, {pipeline_mode = #tpu.pipeline_mode<synchronous>, transform_indices = @transform_8, window_bounds = array<i64: 1, 128>}, {transform_indices = @transform_9, window_bounds = array<i64: 1, 4, 8, 8, 128>}]} {
    %c0_i32 = arith.constant 0 : i32
    %0 = arith.cmpi sgt, %arg1, %c0_i32 : i32
    %c0 = arith.constant 0 : index
    %c0_0 = arith.constant 0 : index
    %c0_1 = arith.constant 0 : index
    %c0_2 = arith.constant 0 : index
    %c0_3 = arith.constant 0 : index
    %1 = vector.load %arg2[%c0, %c0_0, %c0_1, %c0_2, %c0_3] : memref<1x1x8x8x128xbf16, #tpu.memory_space<vmem>>, vector<1x1x8x8x128xbf16>
    %2 = vector.shape_cast %1 : vector<1x1x8x8x128xbf16> to vector<1x8x8x128xbf16>
    %c0_i32_4 = arith.constant 0 : i32
    %3 = arith.sitofp %c0_i32_4 : i32 to bf16
    %4 = vector.broadcast %3 : bf16 to vector<1x8x8x128xbf16>
    %5 = arith.select %0, %2, %4 : vector<1x8x8x128xbf16>
    %c1_i32 = arith.constant 1 : i32
    %6 = arith.cmpi slt, %arg1, %c1_i32 : i32
    %c0_5 = arith.constant 0 : index
    %c0_6 = arith.constant 0 : index
    %c0_7 = arith.constant 0 : index
    %c0_8 = arith.constant 0 : index
    %c0_9 = arith.constant 0 : index
    %7 = vector.load %arg4[%c0_5, %c0_6, %c0_7, %c0_8, %c0_9] : memref<1x1x8x8x128xbf16, #tpu.memory_space<vmem>>, vector<1x1x8x8x128xbf16>
    %8 = vector.shape_cast %7 : vector<1x1x8x8x128xbf16> to vector<1x8x8x128xbf16>
    %c0_i32_10 = arith.constant 0 : i32
    %9 = arith.sitofp %c0_i32_10 : i32 to bf16
    %10 = vector.broadcast %9 : bf16 to vector<1x8x8x128xbf16>
    %11 = arith.select %6, %8, %10 : vector<1x8x8x128xbf16>
    %c0_11 = arith.constant 0 : index
    %c0_12 = arith.constant 0 : index
    %c0_13 = arith.constant 0 : index
    %c0_14 = arith.constant 0 : index
    %c0_15 = arith.constant 0 : index
    %12 = vector.load %arg3[%c0_11, %c0_12, %c0_13, %c0_14, %c0_15] : memref<1x4x8x8x128xbf16, #tpu.memory_space<vmem>>, vector<1x4x8x8x128xbf16>
    %13 = vector.shape_cast %12 : vector<1x4x8x8x128xbf16> to vector<4x8x8x128xbf16>
    %14 = tpu.concatenate %5, %13, %11 in 0 : vector<1x8x8x128xbf16>, vector<4x8x8x128xbf16>, vector<1x8x8x128xbf16> -> vector<6x8x8x128xbf16>
    %15 = vector.shape_cast %14 : vector<6x8x8x128xbf16> to vector<384x128xbf16>
    %16 = vector.extract_strided_slice %15 {offsets = [0, 0], sizes = [256, 128], strides = [1, 1]} : vector<384x128xbf16> to vector<256x128xbf16>
    %c0_16 = arith.constant 0 : index
    %c0_17 = arith.constant 0 : index
    %c0_18 = arith.constant 0 : index
    %17 = vector.load %arg5[%c0_16, %c0_17, %c0_18] : memref<3x128x128xbf16, #tpu.memory_space<vmem>>, vector<1x128x128xbf16>
    %18 = vector.shape_cast %17 : vector<1x128x128xbf16> to vector<128x128xbf16>
    %cst = arith.constant dense<0.000000e+00> : vector<256x128xf32>
    %19 = tpu.matmul %16, %18, %cst {dimension_numbers = #tpu.dot_dimension_numbers<[1], [0], [0], [1], [0, 0, 1, 1], [], []>} : vector<256x128xbf16>, vector<128x128xbf16>, vector<256x128xf32> -> vector<256x128xf32>
    %20 = vector.extract_strided_slice %15 {offsets = [64, 0], sizes = [256, 128], strides = [1, 1]} : vector<384x128xbf16> to vector<256x128xbf16>
    %c1 = arith.constant 1 : index
    %c0_19 = arith.constant 0 : index
    %c0_20 = arith.constant 0 : index
    %21 = vector.load %arg5[%c1, %c0_19, %c0_20] : memref<3x128x128xbf16, #tpu.memory_space<vmem>>, vector<1x128x128xbf16>
    %22 = vector.shape_cast %21 : vector<1x128x128xbf16> to vector<128x128xbf16>
    %cst_21 = arith.constant dense<0.000000e+00> : vector<256x128xf32>
    %23 = tpu.matmul %20, %22, %cst_21 {dimension_numbers = #tpu.dot_dimension_numbers<[1], [0], [0], [1], [0, 0, 1, 1], [], []>} : vector<256x128xbf16>, vector<128x128xbf16>, vector<256x128xf32> -> vector<256x128xf32>
    %24 = arith.addf %19, %23 : vector<256x128xf32>
    %25 = vector.extract_strided_slice %15 {offsets = [128, 0], sizes = [256, 128], strides = [1, 1]} : vector<384x128xbf16> to vector<256x128xbf16>
    %c2 = arith.constant 2 : index
    %c0_22 = arith.constant 0 : index
    %c0_23 = arith.constant 0 : index
    %26 = vector.load %arg5[%c2, %c0_22, %c0_23] : memref<3x128x128xbf16, #tpu.memory_space<vmem>>, vector<1x128x128xbf16>
    %27 = vector.shape_cast %26 : vector<1x128x128xbf16> to vector<128x128xbf16>
    %cst_24 = arith.constant dense<0.000000e+00> : vector<256x128xf32>
    %28 = tpu.matmul %25, %27, %cst_24 {dimension_numbers = #tpu.dot_dimension_numbers<[1], [0], [0], [1], [0, 0, 1, 1], [], []>} : vector<256x128xbf16>, vector<128x128xbf16>, vector<256x128xf32> -> vector<256x128xf32>
    %29 = arith.addf %24, %28 : vector<256x128xf32>
    %c0_25 = arith.constant 0 : index
    %c0_26 = arith.constant 0 : index
    %30 = vector.load %arg6[%c0_25, %c0_26] : memref<1x128xf32, #tpu.memory_space<vmem>>, vector<1x128xf32>
    %31 = vector.broadcast %30 : vector<1x128xf32> to vector<256x128xf32>
    %32 = arith.addf %29, %31 : vector<256x128xf32>
    %cst_27 = arith.constant 0.000000e+00 : f32
    %33 = vector.broadcast %cst_27 : f32 to vector<256x128xf32>
    %34 = arith.maximumf %32, %33 : vector<256x128xf32>
    %cst_28 = arith.constant 0.000000e+00 : f32
    %35 = vector.broadcast %cst_28 : f32 to vector<4x1x8x128xf32>
    %36 = vector.shape_cast %34 : vector<256x128xf32> to vector<4x8x8x128xf32>
    %37 = tpu.concatenate %35, %36, %35 in 1 : vector<4x1x8x128xf32>, vector<4x8x8x128xf32>, vector<4x1x8x128xf32> -> vector<4x10x8x128xf32>
    %38 = vector.shape_cast %37 : vector<4x10x8x128xf32> to vector<320x128xf32>
    %39 = tpu.iota {dimensions = array<i32: 2>} : vector<1x1x8x128xi32>
    %c1_i32_29 = arith.constant 1 : i32
    %40 = tpu.dynamic_rotate %38 by %c1_i32_29 dim 0 : vector<320x128xf32>, i32 -> vector<320x128xf32>
    %41 = vector.shape_cast %40 : vector<320x128xf32> to vector<4x10x8x128xf32>
    %c319_i32 = arith.constant 319 : i32
    %42 = tpu.dynamic_rotate %38 by %c319_i32 dim 0 : vector<320x128xf32>, i32 -> vector<320x128xf32>
    %43 = vector.shape_cast %42 : vector<320x128xf32> to vector<4x10x8x128xf32>
    %c0_i32_30 = arith.constant 0 : i32
    %44 = vector.broadcast %c0_i32_30 : i32 to vector<1x1x8x128xi32>
    %45 = arith.cmpi eq, %39, %44 : vector<1x1x8x128xi32>
    %cst_31 = arith.constant 0.000000e+00 : f32
    %46 = vector.shape_cast %45 : vector<1x1x8x128xi1> to vector<1x1x8x128xi1>
    %47 = vector.broadcast %46 : vector<1x1x8x128xi1> to vector<4x10x8x128xi1>
    %48 = vector.broadcast %cst_31 : f32 to vector<4x10x8x128xf32>
    %49 = arith.select %47, %48, %41 : vector<4x10x8x128xi1>, vector<4x10x8x128xf32>
    %50 = arith.truncf %49 : vector<4x10x8x128xf32> to vector<4x10x8x128xbf16>
    %51 = arith.truncf %37 : vector<4x10x8x128xf32> to vector<4x10x8x128xbf16>
    %c7_i32 = arith.constant 7 : i32
    %52 = vector.broadcast %c7_i32 : i32 to vector<1x1x8x128xi32>
    %53 = arith.cmpi eq, %39, %52 : vector<1x1x8x128xi32>
    %cst_32 = arith.constant 0.000000e+00 : f32
    %54 = vector.shape_cast %53 : vector<1x1x8x128xi1> to vector<1x1x8x128xi1>
    %55 = vector.broadcast %54 : vector<1x1x8x128xi1> to vector<4x10x8x128xi1>
    %56 = vector.broadcast %cst_32 : f32 to vector<4x10x8x128xf32>
    %57 = arith.select %55, %56, %43 : vector<4x10x8x128xi1>, vector<4x10x8x128xf32>
    %58 = arith.truncf %57 : vector<4x10x8x128xf32> to vector<4x10x8x128xbf16>
    %cst_33 = arith.constant 0.000000e+00 : f32
    %59 = vector.broadcast %cst_33 : f32 to vector<256x128xf32>
    %60 = vector.extract_strided_slice %50 {offsets = [0, 0, 0, 0], sizes = [4, 8, 8, 128], strides = [1, 1, 1, 1]} : vector<4x10x8x128xbf16> to vector<4x8x8x128xbf16>
    %61 = vector.shape_cast %60 : vector<4x8x8x128xbf16> to vector<256x128xbf16>
    %c0_34 = arith.constant 0 : index
    %c0_35 = arith.constant 0 : index
    %c0_36 = arith.constant 0 : index
    %c0_37 = arith.constant 0 : index
    %62 = vector.load %arg7[%c0_34, %c0_35, %c0_36, %c0_37] : memref<3x3x128x128xbf16, #tpu.memory_space<vmem>>, vector<1x1x128x128xbf16>
    %63 = vector.shape_cast %62 : vector<1x1x128x128xbf16> to vector<128x128xbf16>
    %cst_38 = arith.constant dense<0.000000e+00> : vector<256x128xf32>
    %64 = tpu.matmul %61, %63, %cst_38 {dimension_numbers = #tpu.dot_dimension_numbers<[1], [0], [0], [1], [0, 0, 1, 1], [], []>} : vector<256x128xbf16>, vector<128x128xbf16>, vector<256x128xf32> -> vector<256x128xf32>
    %65 = arith.addf %59, %64 : vector<256x128xf32>
    %66 = vector.extract_strided_slice %51 {offsets = [0, 0, 0, 0], sizes = [4, 8, 8, 128], strides = [1, 1, 1, 1]} : vector<4x10x8x128xbf16> to vector<4x8x8x128xbf16>
    %67 = vector.shape_cast %66 : vector<4x8x8x128xbf16> to vector<256x128xbf16>
    %c0_39 = arith.constant 0 : index
    %c1_40 = arith.constant 1 : index
    %c0_41 = arith.constant 0 : index
    %c0_42 = arith.constant 0 : index
    %68 = vector.load %arg7[%c0_39, %c1_40, %c0_41, %c0_42] : memref<3x3x128x128xbf16, #tpu.memory_space<vmem>>, vector<1x1x128x128xbf16>
    %69 = vector.shape_cast %68 : vector<1x1x128x128xbf16> to vector<128x128xbf16>
    %cst_43 = arith.constant dense<0.000000e+00> : vector<256x128xf32>
    %70 = tpu.matmul %67, %69, %cst_43 {dimension_numbers = #tpu.dot_dimension_numbers<[1], [0], [0], [1], [0, 0, 1, 1], [], []>} : vector<256x128xbf16>, vector<128x128xbf16>, vector<256x128xf32> -> vector<256x128xf32>
    %71 = arith.addf %65, %70 : vector<256x128xf32>
    %72 = vector.extract_strided_slice %58 {offsets = [0, 0, 0, 0], sizes = [4, 8, 8, 128], strides = [1, 1, 1, 1]} : vector<4x10x8x128xbf16> to vector<4x8x8x128xbf16>
    %73 = vector.shape_cast %72 : vector<4x8x8x128xbf16> to vector<256x128xbf16>
    %c0_44 = arith.constant 0 : index
    %c2_45 = arith.constant 2 : index
    %c0_46 = arith.constant 0 : index
    %c0_47 = arith.constant 0 : index
    %74 = vector.load %arg7[%c0_44, %c2_45, %c0_46, %c0_47] : memref<3x3x128x128xbf16, #tpu.memory_space<vmem>>, vector<1x1x128x128xbf16>
    %75 = vector.shape_cast %74 : vector<1x1x128x128xbf16> to vector<128x128xbf16>
    %cst_48 = arith.constant dense<0.000000e+00> : vector<256x128xf32>
    %76 = tpu.matmul %73, %75, %cst_48 {dimension_numbers = #tpu.dot_dimension_numbers<[1], [0], [0], [1], [0, 0, 1, 1], [], []>} : vector<256x128xbf16>, vector<128x128xbf16>, vector<256x128xf32> -> vector<256x128xf32>
    %77 = arith.addf %71, %76 : vector<256x128xf32>
    %78 = vector.extract_strided_slice %50 {offsets = [0, 1, 0, 0], sizes = [4, 8, 8, 128], strides = [1, 1, 1, 1]} : vector<4x10x8x128xbf16> to vector<4x8x8x128xbf16>
    %79 = vector.shape_cast %78 : vector<4x8x8x128xbf16> to vector<256x128xbf16>
    %c1_49 = arith.constant 1 : index
    %c0_50 = arith.constant 0 : index
    %c0_51 = arith.constant 0 : index
    %c0_52 = arith.constant 0 : index
    %80 = vector.load %arg7[%c1_49, %c0_50, %c0_51, %c0_52] : memref<3x3x128x128xbf16, #tpu.memory_space<vmem>>, vector<1x1x128x128xbf16>
    %81 = vector.shape_cast %80 : vector<1x1x128x128xbf16> to vector<128x128xbf16>
    %cst_53 = arith.constant dense<0.000000e+00> : vector<256x128xf32>
    %82 = tpu.matmul %79, %81, %cst_53 {dimension_numbers = #tpu.dot_dimension_numbers<[1], [0], [0], [1], [0, 0, 1, 1], [], []>} : vector<256x128xbf16>, vector<128x128xbf16>, vector<256x128xf32> -> vector<256x128xf32>
    %83 = arith.addf %77, %82 : vector<256x128xf32>
    %84 = vector.extract_strided_slice %51 {offsets = [0, 1, 0, 0], sizes = [4, 8, 8, 128], strides = [1, 1, 1, 1]} : vector<4x10x8x128xbf16> to vector<4x8x8x128xbf16>
    %85 = vector.shape_cast %84 : vector<4x8x8x128xbf16> to vector<256x128xbf16>
    %c1_54 = arith.constant 1 : index
    %c1_55 = arith.constant 1 : index
    %c0_56 = arith.constant 0 : index
    %c0_57 = arith.constant 0 : index
    %86 = vector.load %arg7[%c1_54, %c1_55, %c0_56, %c0_57] : memref<3x3x128x128xbf16, #tpu.memory_space<vmem>>, vector<1x1x128x128xbf16>
    %87 = vector.shape_cast %86 : vector<1x1x128x128xbf16> to vector<128x128xbf16>
    %cst_58 = arith.constant dense<0.000000e+00> : vector<256x128xf32>
    %88 = tpu.matmul %85, %87, %cst_58 {dimension_numbers = #tpu.dot_dimension_numbers<[1], [0], [0], [1], [0, 0, 1, 1], [], []>} : vector<256x128xbf16>, vector<128x128xbf16>, vector<256x128xf32> -> vector<256x128xf32>
    %89 = arith.addf %83, %88 : vector<256x128xf32>
    %90 = vector.extract_strided_slice %58 {offsets = [0, 1, 0, 0], sizes = [4, 8, 8, 128], strides = [1, 1, 1, 1]} : vector<4x10x8x128xbf16> to vector<4x8x8x128xbf16>
    %91 = vector.shape_cast %90 : vector<4x8x8x128xbf16> to vector<256x128xbf16>
    %c1_59 = arith.constant 1 : index
    %c2_60 = arith.constant 2 : index
    %c0_61 = arith.constant 0 : index
    %c0_62 = arith.constant 0 : index
    %92 = vector.load %arg7[%c1_59, %c2_60, %c0_61, %c0_62] : memref<3x3x128x128xbf16, #tpu.memory_space<vmem>>, vector<1x1x128x128xbf16>
    %93 = vector.shape_cast %92 : vector<1x1x128x128xbf16> to vector<128x128xbf16>
    %cst_63 = arith.constant dense<0.000000e+00> : vector<256x128xf32>
    %94 = tpu.matmul %91, %93, %cst_63 {dimension_numbers = #tpu.dot_dimension_numbers<[1], [0], [0], [1], [0, 0, 1, 1], [], []>} : vector<256x128xbf16>, vector<128x128xbf16>, vector<256x128xf32> -> vector<256x128xf32>
    %95 = arith.addf %89, %94 : vector<256x128xf32>
    %96 = vector.extract_strided_slice %50 {offsets = [0, 2, 0, 0], sizes = [4, 8, 8, 128], strides = [1, 1, 1, 1]} : vector<4x10x8x128xbf16> to vector<4x8x8x128xbf16>
    %97 = vector.shape_cast %96 : vector<4x8x8x128xbf16> to vector<256x128xbf16>
    %c2_64 = arith.constant 2 : index
    %c0_65 = arith.constant 0 : index
    %c0_66 = arith.constant 0 : index
    %c0_67 = arith.constant 0 : index
    %98 = vector.load %arg7[%c2_64, %c0_65, %c0_66, %c0_67] : memref<3x3x128x128xbf16, #tpu.memory_space<vmem>>, vector<1x1x128x128xbf16>
    %99 = vector.shape_cast %98 : vector<1x1x128x128xbf16> to vector<128x128xbf16>
    %cst_68 = arith.constant dense<0.000000e+00> : vector<256x128xf32>
    %100 = tpu.matmul %97, %99, %cst_68 {dimension_numbers = #tpu.dot_dimension_numbers<[1], [0], [0], [1], [0, 0, 1, 1], [], []>} : vector<256x128xbf16>, vector<128x128xbf16>, vector<256x128xf32> -> vector<256x128xf32>
    %101 = arith.addf %95, %100 : vector<256x128xf32>
    %102 = vector.extract_strided_slice %51 {offsets = [0, 2, 0, 0], sizes = [4, 8, 8, 128], strides = [1, 1, 1, 1]} : vector<4x10x8x128xbf16> to vector<4x8x8x128xbf16>
    %103 = vector.shape_cast %102 : vector<4x8x8x128xbf16> to vector<256x128xbf16>
    %c2_69 = arith.constant 2 : index
    %c1_70 = arith.constant 1 : index
    %c0_71 = arith.constant 0 : index
    %c0_72 = arith.constant 0 : index
    %104 = vector.load %arg7[%c2_69, %c1_70, %c0_71, %c0_72] : memref<3x3x128x128xbf16, #tpu.memory_space<vmem>>, vector<1x1x128x128xbf16>
    %105 = vector.shape_cast %104 : vector<1x1x128x128xbf16> to vector<128x128xbf16>
    %cst_73 = arith.constant dense<0.000000e+00> : vector<256x128xf32>
    %106 = tpu.matmul %103, %105, %cst_73 {dimension_numbers = #tpu.dot_dimension_numbers<[1], [0], [0], [1], [0, 0, 1, 1], [], []>} : vector<256x128xbf16>, vector<128x128xbf16>, vector<256x128xf32> -> vector<256x128xf32>
    %107 = arith.addf %101, %106 : vector<256x128xf32>
    %108 = vector.extract_strided_slice %58 {offsets = [0, 2, 0, 0], sizes = [4, 8, 8, 128], strides = [1, 1, 1, 1]} : vector<4x10x8x128xbf16> to vector<4x8x8x128xbf16>
    %109 = vector.shape_cast %108 : vector<4x8x8x128xbf16> to vector<256x128xbf16>
    %c2_74 = arith.constant 2 : index
    %c2_75 = arith.constant 2 : index
    %c0_76 = arith.constant 0 : index
    %c0_77 = arith.constant 0 : index
    %110 = vector.load %arg7[%c2_74, %c2_75, %c0_76, %c0_77] : memref<3x3x128x128xbf16, #tpu.memory_space<vmem>>, vector<1x1x128x128xbf16>
    %111 = vector.shape_cast %110 : vector<1x1x128x128xbf16> to vector<128x128xbf16>
    %cst_78 = arith.constant dense<0.000000e+00> : vector<256x128xf32>
    %112 = tpu.matmul %109, %111, %cst_78 {dimension_numbers = #tpu.dot_dimension_numbers<[1], [0], [0], [1], [0, 0, 1, 1], [], []>} : vector<256x128xbf16>, vector<128x128xbf16>, vector<256x128xf32> -> vector<256x128xf32>
    %113 = arith.addf %107, %112 : vector<256x128xf32>
    %c0_79 = arith.constant 0 : index
    %c0_80 = arith.constant 0 : index
    %114 = vector.load %arg8[%c0_79, %c0_80] : memref<1x128xf32, #tpu.memory_space<vmem>>, vector<1x128xf32>
    %115 = vector.broadcast %114 : vector<1x128xf32> to vector<256x128xf32>
    %116 = arith.addf %113, %115 : vector<256x128xf32>
    %cst_81 = arith.constant 0.000000e+00 : f32
    %117 = vector.broadcast %cst_81 : f32 to vector<256x128xf32>
    %118 = arith.maximumf %116, %117 : vector<256x128xf32>
    %119 = arith.truncf %118 : vector<256x128xf32> to vector<256x128xbf16>
    %c0_82 = arith.constant 0 : index
    %c0_83 = arith.constant 0 : index
    %120 = vector.load %arg9[%c0_82, %c0_83] : memref<128x128xbf16, #tpu.memory_space<vmem>>, vector<128x128xbf16>
    %cst_84 = arith.constant dense<0.000000e+00> : vector<256x128xf32>
    %121 = tpu.matmul %119, %120, %cst_84 {dimension_numbers = #tpu.dot_dimension_numbers<[1], [0], [0], [1], [0, 0, 1, 1], [], []>} : vector<256x128xbf16>, vector<128x128xbf16>, vector<256x128xf32> -> vector<256x128xf32>
    %c0_85 = arith.constant 0 : index
    %c0_86 = arith.constant 0 : index
    %122 = vector.load %arg10[%c0_85, %c0_86] : memref<1x128xf32, #tpu.memory_space<vmem>>, vector<1x128xf32>
    %123 = vector.broadcast %122 : vector<1x128xf32> to vector<256x128xf32>
    %124 = arith.addf %121, %123 : vector<256x128xf32>
    %c0_87 = arith.constant 0 : index
    %c0_88 = arith.constant 0 : index
    %c0_89 = arith.constant 0 : index
    %c0_90 = arith.constant 0 : index
    %c0_91 = arith.constant 0 : index
    %125 = vector.load %arg3[%c0_87, %c0_88, %c0_89, %c0_90, %c0_91] : memref<1x4x8x8x128xbf16, #tpu.memory_space<vmem>>, vector<1x4x8x8x128xbf16>
    %126 = vector.shape_cast %125 : vector<1x4x8x8x128xbf16> to vector<4x8x8x128xbf16>
    %127 = vector.shape_cast %126 : vector<4x8x8x128xbf16> to vector<256x128xbf16>
    %128 = arith.extf %127 : vector<256x128xbf16> to vector<256x128xf32>
    %129 = arith.addf %124, %128 : vector<256x128xf32>
    %cst_92 = arith.constant 0.000000e+00 : f32
    %130 = vector.broadcast %cst_92 : f32 to vector<256x128xf32>
    %131 = arith.maximumf %129, %130 : vector<256x128xf32>
    %132 = vector.shape_cast %131 : vector<256x128xf32> to vector<4x8x8x128xf32>
    %133 = arith.truncf %132 : vector<4x8x8x128xf32> to vector<4x8x8x128xbf16>
    %c0_93 = arith.constant 0 : index
    %c0_94 = arith.constant 0 : index
    %c0_95 = arith.constant 0 : index
    %c0_96 = arith.constant 0 : index
    %c0_97 = arith.constant 0 : index
    %134 = vector.load %arg11[%c0_93, %c0_94, %c0_95, %c0_96, %c0_97] : memref<1x4x8x8x128xbf16, #tpu.memory_space<vmem>>, vector<1x4x8x8x128xbf16>
    %135 = vector.shape_cast %134 : vector<1x4x8x8x128xbf16> to vector<4x8x8x128xbf16>
    %136 = vector.shape_cast %133 : vector<4x8x8x128xbf16> to vector<1x4x8x8x128xbf16>
    tpu.vector_store %arg11[%c0_93, %c0_94, %c0_95, %c0_96, %c0_97], %136 {strides = array<i32>} : memref<1x4x8x8x128xbf16, #tpu.memory_space<vmem>>, vector<1x4x8x8x128xbf16>,
    return
  }
  func.func @transform_0(%arg0: i32, %arg1: i32) -> (i32, i32, i32, i32, i32) {
    %c4_i32 = arith.constant 4 : i32
    %0 = arith.muli %arg1, %c4_i32 : i32
    %c1_i32 = arith.constant 1 : i32
    %1 = arith.subi %0, %c1_i32 : i32
    %c0_i32 = arith.constant 0 : i32
    %2 = arith.maxsi %1, %c0_i32 : i32
    %c0_i32_0 = arith.constant 0 : i32
    %c0_i32_1 = arith.constant 0 : i32
    %c0_i32_2 = arith.constant 0 : i32
    %c0_i32_3 = arith.constant 0 : i32
    return %arg0, %2, %c0_i32_0, %c0_i32_1, %c0_i32_2 : i32, i32, i32, i32, i32
  }
  func.func @transform_1(%arg0: i32, %arg1: i32) -> (i32, i32, i32, i32, i32) {
    %c0_i32 = arith.constant 0 : i32
    %c0_i32_0 = arith.constant 0 : i32
    %c0_i32_1 = arith.constant 0 : i32
    %c0_i32_2 = arith.constant 0 : i32
    return %arg0, %arg1, %c0_i32, %c0_i32_0, %c0_i32_1 : i32, i32, i32, i32, i32
  }
  func.func @transform_2(%arg0: i32, %arg1: i32) -> (i32, i32, i32, i32, i32) {
    %c1_i32 = arith.constant 1 : i32
    %0 = arith.addi %arg1, %c1_i32 : i32
    %c4_i32 = arith.constant 4 : i32
    %1 = arith.muli %0, %c4_i32 : i32
    %c7_i32 = arith.constant 7 : i32
    %2 = arith.minsi %1, %c7_i32 : i32
    %c0_i32 = arith.constant 0 : i32
    %c0_i32_0 = arith.constant 0 : i32
    %c0_i32_1 = arith.constant 0 : i32
    %c0_i32_2 = arith.constant 0 : i32
    return %arg0, %2, %c0_i32, %c0_i32_0, %c0_i32_1 : i32, i32, i32, i32, i32
  }
  func.func @transform_3(%arg0: i32, %arg1: i32) -> (i32, i32, i32) {
    %c0_i32 = arith.constant 0 : i32
    %c0_i32_0 = arith.constant 0 : i32
    %c0_i32_1 = arith.constant 0 : i32
    %c0_i32_2 = arith.constant 0 : i32
    return %c0_i32, %c0_i32_0, %c0_i32_1 : i32, i32, i32
  }
  func.func @transform_4(%arg0: i32, %arg1: i32) -> (i32, i32) {
    %c0_i32 = arith.constant 0 : i32
    %c0_i32_0 = arith.constant 0 : i32
    %c0_i32_1 = arith.constant 0 : i32
    return %c0_i32, %c0_i32_0 : i32, i32
  }
  func.func @transform_5(%arg0: i32, %arg1: i32) -> (i32, i32, i32, i32) {
    %c0_i32 = arith.constant 0 : i32
    %c0_i32_0 = arith.constant 0 : i32
    %c0_i32_1 = arith.constant 0 : i32
    %c0_i32_2 = arith.constant 0 : i32
    %c0_i32_3 = arith.constant 0 : i32
    return %c0_i32, %c0_i32_0, %c0_i32_1, %c0_i32_2 : i32, i32, i32, i32
  }
  func.func @transform_6(%arg0: i32, %arg1: i32) -> (i32, i32) {
    %c0_i32 = arith.constant 0 : i32
    %c0_i32_0 = arith.constant 0 : i32
    %c0_i32_1 = arith.constant 0 : i32
    return %c0_i32, %c0_i32_0 : i32, i32
  }
  func.func @transform_7(%arg0: i32, %arg1: i32) -> (i32, i32) {
    %c0_i32 = arith.constant 0 : i32
    %c0_i32_0 = arith.constant 0 : i32
    %c0_i32_1 = arith.constant 0 : i32
    return %c0_i32, %c0_i32_0 : i32, i32
  }
  func.func @transform_8(%arg0: i32, %arg1: i32) -> (i32, i32) {
    %c0_i32 = arith.constant 0 : i32
    %c0_i32_0 = arith.constant 0 : i32
    %c0_i32_1 = arith.constant 0 : i32
    return %c0_i32, %c0_i32_0 : i32, i32
  }
  func.func @transform_9(%arg0: i32, %arg1: i32) -> (i32, i32, i32, i32, i32) {
    %c0_i32 = arith.constant 0 : i32
    %c0_i32_0 = arith.constant 0 : i32
    %c0_i32_1 = arith.constant 0 : i32
    %c0_i32_2 = arith.constant 0 : i32
    return %arg0, %arg1, %c0_i32, %c0_i32_0, %c0_i32_1 : i32, i32, i32, i32, i32
  }
}

</mosaic_0001>

<bundles_post_ra>
// kernel: bottleneck3d_cost.1
= control target key start
LH: loop header
LB: loop body
LE: loop exit
PB: predicated region body
PF: predicated region fallthrough
CT: control target
= control target key end

     0   :  { %14 = vsyncpa [#allocation3], 0  ;;  %s10129_s0 = inlined_call_operand.vmem [shape: bf16[2,8,8,8,128], index: 0, kind: input, shape index: {}, may-alias: {0,1,2}]   ;;  %s10130_s1 = inlined_call_operand.vmem [shape: bf16[2,8,8,8,128], index: 1, kind: input, shape index: {}, may-alias: {0,1,2}]   ;;  %s10131_s2 = inlined_call_operand.vmem [shape: bf16[2,8,8,8,128], index: 2, kind: input, shape index: {}, may-alias: {0,1,2}]   ;;  %s10132_s3 = inlined_call_operand.vmem [shape: bf16[3,128,128], index: 3, kind: input, shape index: {}]   ;;  %s10133_s4 = inlined_call_operand.vmem [shape: f32[1,128], index: 4, kind: input, shape index: {}]   ;;  %s10134_s5 = inlined_call_operand.vmem [shape: bf16[3,3,128,128], index: 5, kind: input, shape index: {}]   ;;  %s10135_s6 = inlined_call_operand.vmem [shape: f32[1,128], index: 6, kind: input, shape index: {}]   ;;  %s10136_s7 = inlined_call_operand.vmem [shape: bf16[128,128], index: 7, kind: input, shape index: {}]   ;;  %s10137_s8 = inlined_call_operand.vmem [shape: f32[1,128], index: 8, kind: input, shape index: {}]   ;;  %s10138_s9 = inlined_call_operand.hbm [shape: bf16[2,8,8,8,128], index: 9, kind: output, shape index: {}]  }
   0x1   :  { %16 = vsyncpa [#allocation3 + $0x1], 0  ;;  %s7524_s30 = smov 0   ;;  %s7526_s10 = smov 0  }
   0x2   :  { %s7528_s11 = smov 0   ;;  %s7530_s12 = smov 0  }
   0x3   :  { %s7532_s13 = smov 0   ;;  %s7534_s14 = smov 0  }
   0x4   :  { %s7536_s15 = smov 0   ;;  %s7538_s16 = smov 0  }
   0x5 LB: > { %10253 = sst [smem:[#allocation5_spill]] %s7460_s14  ;;  %s5123_s17 = sadd.s32 4294967295, %s7468_s16   ;;  %s7468_s16 = sphi %s7538_s16, %s22_s16   ;;  %s7464_s15 = sphi %s7536_s15, %s10582_s15   ;;  %s7460_s14 = sphi %s7534_s14, %s10586_s14   ;;  %s7456_s13 = sphi %s7532_s13, %s10580_s13   ;;  %s7452_s12 = sphi %s7530_s12, %s10579_s12   ;;  %s7448_s11 = sphi %s7528_s11, %s10585_s11   ;;  %s7444_s10 = sphi %s7526_s10, %s10584_s10   ;;  %s7440_s30 = sphi %s7524_s30, %s10583_s30  }
   0x6   : > { %10254 = sst [smem:[#allocation6_spill]] %s7464_s15  ;;  %s5124_s18 = sadd.s32 4294967294, %s7468_s16  }
   0x7   : > { %s31_s19 = sadd.s32 1, %s7460_s14  ;;  %s34_s20 = sadd.s32 1, %s7464_s15 }
   0x8   : > { %p32_p0 = scmp.ge.s32.totalorder %s31_s19, 2  ;;  %p279_p1 = scmp.ne.s32.totalorder %s7448_s11, %s7444_s10 }
   0x9   : > { %p280_p2 = scmp.eq.s32.totalorder %s5123_s17, 3  ;;  %p285_p5 = scmp.ne.s32.totalorder %s7444_s10, %s7440_s30 }
   0xa   : > { %s10588_s19 = smov (%p32_p0, %s31_s19), 0  ;;  %s10590_s20 = smov (!%p32_p0, %s34_s20), %s7464_s15 }
   0xb   : > { %10255 = sst [smem:[#allocation7_spill]] %s10588_s19  ;;  %s265_s21 = ssub.s32 %s7460_s14, %s10588_s19 }
   0xc   : > { %p7575_p3 = por %p280_p2, %p279_p1  ;;  %p36_p4 = scmp.ge.s32.totalorder %s10590_s20, 2 }
   0xd   : > { %p286_p6 = scmp.eq.s32.totalorder %s5124_s18, 3  ;;  %p5133_p7 = scmp.ge.s32.totalorder %s7468_s16, 1 }
   0xe   : > { %s10592_s20 = smov (%p36_p4, %s10590_s20), 0  ;;  %p376_p9 = scmp.lt.s32.totalorder %s7468_s16, 5 }
   0xf   : > { %10257 = sst [smem:[#allocation8_spill]] %s10592_s20  ;;  %p7584_p8 = por %p286_p6, %p285_p5 }
  0x10   : > { %s264_s24 = ssub.s32 %s7464_s15, %s10592_s20  ;;  %s269_s25 = sadd.s32 1, %s7448_s11 }
  0x11   : > { %s266_s26 = sor.u32 %s265_s21, %s264_s24  ;;  %p377_p10 = pnand %p5133_p7, %p376_p9 }
  0x12   : > { %p267_p11 = scmp.eq.s32.totalorder %s266_s26, 0 }
  0x13   : > { %380 = sbr.rel (%p377_p10) target bundleno = 1046 (0x416), region = 56 }
  0x14   : > { %s7593_s27 = scalar_select %p267_p11, %s7448_s11, %s269_s25  }
  0x16   : > { %10259 = sst [smem:[#allocation9_spill]] %s7593_s27 }
  0x18   : > { %v7224_v0 = vld [vmem:[%s10132_s3 + $0x78] sm:$0xff]   ;;  %s7599_s17 = sshll.u32 %s7452_s12, 2  ;;  %v7225_v1 = vld [vmem:[%s10132_s3 + $0x70] sm:$0xff]   ;;  %p447_p12 = scmp.lt.s32.totalorder %s7456_s13, 1  ;;  %v7226_v2 = vld [vmem:[%s10132_s3 + $0x68] sm:$0xff]  }
  0x19   : > { %6510 = vmatprep.subr.bf16.mxu0 %v7224_v0  ;;  %7134 = vmatprep.subr.bf16.mxu1 %v7224_v0  ;;  %p463_p13 = scmp.lt.s32.totalorder %s7599_s17, 7  ;;  %s5136_s18 = sadd.s32 4294967295, %s7599_s17  ;;  %v7227_v3 = vld [vmem:[%s10132_s3 + $0x60] sm:$0xff]   ;;  %v7228_v6 = vld [vmem:[%s10132_s3 + $0x58] sm:$0xff]   ;;  %v7229_v7 = vld [vmem:[%s10132_s3 + $0x50] sm:$0xff]  }
  0x1a   : > { %6511 = vmatpush3.bf16.msra.mxu0 %v7224_v0  ;;  %7142 = vmatpush3.bf16.msra.mxu1 %v7224_v0  ;;  %s448_s21 = scalar_select %p447_p12, %s7456_s13, 1  ;;  %v7230_v8 = vld [vmem:[%s10132_s3 + $0x48] sm:$0xff]   ;;  %v7231_v9 = vld [vmem:[%s10132_s3 + $0x40] sm:$0xff]   ;;  %v7236_v11 = vld [vmem:[%s10132_s3 + $0x38] sm:$0xff]  }
  0x1b   : > { %6512 = vmatprep.subr.bf16.mxu0 %v7225_v1  ;;  %7135 = vmatprep.subr.bf16.mxu1 %v7225_v1  ;;  %s464_s26 = scalar_select %p463_p13, %s7599_s17, 7  ;;  %v7237_v13 = vld [vmem:[%s10132_s3 + $0xb8] sm:$0xff]   ;;  %v7238_v17 = vld [vmem:[%s10132_s3 + $0x30] sm:$0xff]   ;;  %v7244_v23 = vld [vmem:[%s10132_s3 + $0x28] sm:$0xff]  }
  0x1c   : > { %s7611_s28 = sshll.u32 %s448_s21, 6  ;;  %p445_p0 = scmp.gt.s32.totalorder %s5136_s18, 0  ;;  %v7239_v18 = vld [vmem:[%s10132_s3 + $0xb0] sm:$0xff]   ;;  %v7245_v24 = vld [vmem:[%s10132_s3 + $0xa8] sm:$0xff]   ;;  %v7246_v34 = vld [vmem:[%s10132_s3 + $0x20] sm:$0xff]  }
  0x1d   : > { %s5146_s19 = sshll.u32 %s464_s26, 3  ;;  %p5137_p1 = scmp.lt.s32.totalorder %s5136_s18, 7  ;;  %v7247_v35 = vld [vmem:[%s10132_s3 + $0xa0] sm:$0xff]   ;;  %v7252_v46 = vld [vmem:[%s10132_s3 + $0x18] sm:$0xff]   ;;  %v7254_v50 = vld [vmem:[%s10132_s3 + $0x10] sm:$0xff]  }
  0x1e   : > { %6513 = vmatpush3.bf16.msra.mxu0 %v7225_v1  ;;  %7143 = vmatpush3.bf16.msra.mxu1 %v7225_v1  ;;  %s467_s29 = sadd.s32 %s5146_s19, %s7611_s28  ;;  %s10594_s18 = smov (!%p445_p0, %s5136_s18), 0  ;;  %v7253_v47 = vld [vmem:[%s10132_s3 + $0x98] sm:$0xff]   ;;  %v7255_v51 = vld [vmem:[%s10132_s3 + $0x90] sm:$0xff]   ;;  %v7260_v54 = vld [vmem:[%s10132_s3 + $0x8] sm:$0xff]  }
  0x1f   : > { %6514 = vmatprep.subr.bf16.mxu0 %v7226_v2  ;;  %7136 = vmatprep.subr.bf16.mxu1 %v7226_v2  ;;  %s5148_s14 = sshll.u32 %s467_s29, 2  ;;  %s10596_s18 = smov (!%p5137_p1, %s10594_s18), 7  ;;  %v7261_v55 = vld [vmem:[%s10132_s3 + $0x88] sm:$0xff]   ;;  %v7262_v56 = vld [vmem:[%s10132_s3] sm:$0xff]   ;;  %v7264_v59 = vld [vmem:[%s10134_s5 + $0x78] sm:$0xff]  }
  0x20   : > { %s7621_s25 = scalar_lea.vmem %s10130_s1, %s5148_s14  ;;  %s5569_s14 = sadd.s32 4, %s7599_s17  ;;  %v7263_v57 = vld [vmem:[%s10132_s3 + $0x80] sm:$0xff]   ;;  %v7265_v62 = vld [vmem:[%s10134_s5 + $0x70] sm:$0xff]  }
  0x21   : > { %v7624_v4 = vld [vmem:[%s7621_s25] sm:$0xff]   ;;  %p473_p2 = scmp.lt.s32.totalorder %s5569_s14, 7  ;;  %s5142_s19 = sshll.u32 %s10596_s18, 3  ;;  %v7651_v10 = vld [vmem:[%s7621_s25 + $0x8] sm:$0xff]   ;;  %v7663_v14 = vld [vmem:[%s7621_s25 + $0x10] sm:$0xff]  }
  0x22   : > { %v7627_v5 = vld [vmem:[%s7621_s25 + $0x40] sm:$0xff]   ;;  %6515 = vmatpush3.bf16.msra.mxu0 %v7226_v2  ;;  %7144 = vmatpush3.bf16.msra.mxu1 %v7226_v2  ;;  %p490_p4 = scmp.gt.s32.totalorder %s7452_s12, 0  ;;  %s453_s20 = sadd.s32 %s7611_s28, %s5142_s19  ;;  %v7657_v12 = vld [vmem:[%s7621_s25 + $0x48] sm:$0xff]   ;;  %v7666_v15 = vld [vmem:[%s7621_s25 + $0x50] sm:$0xff]  }
  0x23   : > { %6516 = vmatprep.subr.bf16.mxu0 %v7227_v3  ;;  %7137 = vmatprep.subr.bf16.mxu1 %v7227_v3  ;;  %s10598_s14 = smov (!%p473_p2, %s5569_s14), 7  ;;  %v7678_v19 = vld [vmem:[%s7621_s25 + $0x18] sm:$0xff]   ;;  %p510_p5 = scmp.lt.s32.totalorder %s7452_s12, 1  ;;  %v7727_v36 = vld [vmem:[%s7621_s25 + $0x20] sm:$0xff]   ;;  %v7755_v44 = vld [vmem:[%s7621_s25 + $0x28] sm:$0xff]  }
  0x24   : > { %6526 = vmatprep.mubr.bf16.mxu0 %v7624_v4  ;;  %6542 = vmatprep.mubr.bf16.mxu1 %v7627_v5  ;;  %s10600_s14 = smov (!%p473_p2, %s10598_s14), 7  ;;  %v7681_v20 = vld [vmem:[%s7621_s25 + $0x58] sm:$0xff]   ;;  %v7730_v37 = vld [vmem:[%s7621_s25 + $0x60] sm:$0xff]   ;;  %v7758_v45 = vld [vmem:[%s7621_s25 + $0x68] sm:$0xff]   ;;  %s440_s19 = sand.u32 1, %s7444_s10  }
  0x25   : > { %s7642_s29 = sshll.u32 %s10600_s14, 3  ;;  %s5144_s14 = sshll.u32 %s453_s20, 2  ;;  %v7769_v48 = vld [vmem:[%s7621_s25 + $0x30] sm:$0xff]   ;;  %v7783_v52 = vld [vmem:[%s7621_s25 + $0x38] sm:$0xff]  }
  0x26   : > { %6517 = vmatpush3.bf16.msra.mxu0 %v7227_v3  ;;  %7145 = vmatpush3.bf16.msra.mxu1 %v7227_v3  ;;  %s481_s27 = sadd.s32 %s7642_s29, %s7611_s28  ;;  %s455_s18 = scalar_lea.vmem %s10129_s0, %s5144_s14  ;;  %v7772_v49 = vld [vmem:[%s7621_s25 + $0x70] sm:$0xff]   ;;  %v7786_v53 = vld [vmem:[%s7621_s25 + $0x78] sm:$0xff]  }
  0x27   : > { %6518 = vmatprep.subr.bf16.mxu0 %v7228_v6  ;;  %7138 = vmatprep.subr.bf16.mxu1 %v7228_v6  ;;  %s499_s17 = scalar_select %p490_p4, 1, 0  ;;  %v7683_v21 = vld [vmem:[%s455_s18] sm:$0xf]  ;;  %v7698_v25 = vld [vmem:[%s455_s18 + $0x4] sm:$0xf] }
  0x28   : > { %v7700_v26 = vld [vmem:[%s455_s18 + $0x8] sm:$0xf]  ;;  %v7702_v27 = vld [vmem:[%s455_s18 + $0xc] sm:$0xf]  ;;  %v7704_v28 = vld [vmem:[%s455_s18 + $0x10] sm:$0xf] }
  0x29   : > { %v500_v16 = vstv %s499_s17  ;;  %v7706_v29 = vld [vmem:[%s455_s18 + $0x14] sm:$0xf]  ;;  %v7708_v30 = vld [vmem:[%s455_s18 + $0x18] sm:$0xf]  ;;  %v7710_v31 = vld [vmem:[%s455_s18 + $0x1c] sm:$0xf] }
  0x2a   : > { %6519 = vmatpush3.bf16.msra.mxu0 %v7228_v6  ;;  %7146 = vmatpush3.bf16.msra.mxu1 %v7228_v6  ;;  %vm7685_vm0 = vcmp.eq.s32.totalorder %v500_v16, 1  ;;  %s7752_s24 = scalar_select %p510_p5, 1, 0 }
  0x2b   : > { %6520 = vmatprep.subr.bf16.mxu0 %v7229_v7  ;;  %7139 = vmatprep.subr.bf16.mxu1 %v7229_v7  ;;  %v502_v32 = vsel %vm7685_vm0, %v7683_v21, 0  ;;  %v503_v33 = vsel %vm7685_vm0, %v7698_v25, 0  ;;  %v504_v38 = vsel %vm7685_vm0, %v7700_v26, 0  ;;  %v505_v39 = vsel %vm7685_vm0, %v7702_v27, 0  ;;  %s5155_s20 = sshll.u32 %s481_s27, 2  ;;  %v7269_v27 = vld [vmem:[%s10134_s5 + $0x38] sm:$0xff]  }
  0x2c   : > { %v506_v40 = vsel %vm7685_vm0, %v7704_v28, 0  ;;  %v507_v41 = vsel %vm7685_vm0, %v7706_v29, 0  ;;  %v508_v42 = vsel %vm7685_vm0, %v7708_v30, 0  ;;  %v509_v43 = vsel %vm7685_vm0, %v7710_v31, 0  ;;  %s7840_s26 = scalar_lea.vmem %s10131_s2, %s5155_s20  ;;  %v7271_v28 = vld [vmem:[%s10134_s5 + $0x50] sm:$0xff]   ;;  %v7272_v29 = vld [vmem:[%s10134_s5 + $0x28] sm:$0xff]  }
  0x2d   : > { %v5196_v58 = vcombine.low %v502_v32, %v503_v33  ;;  %v5197_v60 = vcombine.low %v504_v38, %v505_v39  ;;  %v5198_v61 = vcombine.low %v506_v40, %v507_v41  ;;  %v5199_v63 = vcombine.low %v508_v42, %v509_v43  ;;  %v511_v1 = vld [vmem:[%s7840_s26] sm:$0xf]  ;;  %v512_v2 = vld [vmem:[%s7840_s26 + $0x4] sm:$0xf]  ;;  %v7274_v31 = vld [vmem:[%s10134_s5 + $0x48] sm:$0xff]   ;;  %s5134_s15 = sshll.u32 %s440_s19, 7 }
  0x2e   : > { %6521 = vmatpush3.bf16.msra.mxu0 %v7229_v7  ;;  %7147 = vmatpush3.bf16.msra.mxu1 %v7229_v7  ;;  %v520_v0 = vstv %s7752_s24  ;;  %v7273_v30 = vld [vmem:[%s10134_s5 + $0x20] sm:$0xff]   ;;  %v7276_v32 = vld [vmem:[%s10134_s5 + $0x10] sm:$0xff]   ;;  %v7278_v33 = vld [vmem:[%s10134_s5 + $0x8] sm:$0xff]   ;;  %s10010_s20 = scalar_lea.vmem [#allocation2], %s5134_s15  ;;  %s6102_s21 = sshll.u32 %s7452_s12, 5 }
  0x2f   : > { %6522 = vmatprep.subr.bf16.mxu0 %v7230_v8  ;;  %7140 = vmatprep.subr.bf16.mxu1 %v7230_v8  ;;  %vm7845_vm1 = vcmp.eq.s32.totalorder %v520_v0, 1  ;;  %s5558_s18 = sshll.u32 %s7456_s13, 6  ;;  %s4996_s13 = sshll.u32 %s10010_s20, 4  ;;  %s10072_s13 = int_to_ptr.vmem [resolvable:$true] %s4996_s13 }
  0x30   : > { %v522_v6 = vsel %vm7845_vm1, %v511_v1, 0  ;;  %v523_v7 = vsel %vm7845_vm1, %v512_v2, 0  ;;  %s10078_s27 = scalar_lea.sflag [#allocation3], %s440_s19  ;;  %s7376_s24 = scalar_lea.vmem %s10072_s13, 2048 }
  0x31   : > { %p7377_p6 = scmp.ne.s32.totalorder %s10072_s13, %s7376_s24  ;;  %s7471_s17 = smov [#allocation2]  }
  0x32   : > { %6523 = vmatpush3.bf16.msra.mxu0 %v7230_v8  ;;  %7148 = vmatpush3.bf16.msra.mxu1 %v7230_v8  ;;  %v5224_v8 = vcombine.low %v522_v6, %v523_v7  ;;  %s7380_s14 = sshll.u32 %s7471_s17, 4  ;;  %s7381_s14 = int_to_ptr.vmem [resolvable:$false] %s7380_s14 }
  0x33   : > { %6524 = vmatprep.subr.bf16.mxu0 %v7231_v9  ;;  %7141 = vmatprep.subr.bf16.mxu1 %v7231_v9  ;;  %p7378_p7 = pnand %p7377_p6, %p7575_p3  ;;  %s7382_s15 = scalar_lea.vmem %s7381_s14, 4096 }
  0x34   : > { %p7383_p10 = scmp.lt.s32.totalorder %s10072_s13, %s7381_s14  ;;  %p7384_p11 = scmp.lt.s32.totalorder %s7382_s15, %s7376_s24 }
  0x35   : > { %p7379_p9 = pneg %p7378_p7 }
  0x36   : > { %6525 = vmatpush3.bf16.msra.mxu0 %v7231_v9  ;;  %7149 = vmatpush3.bf16.msra.mxu1 %v7231_v9  ;;  %v513_v9 = vld [vmem:[%s7840_s26 + $0x8] sm:$0xf]  ;;  %p7385_p12 = por %p7384_p11, %p7383_p10 }
  0x37   : > { %6558 = vmatprep.subr.bf16.mxu1 %v7236_v11  ;;  %6606 = vmatprep.subr.bf16.mxu0 %v7237_v13  ;;  %v524_v16 = vsel %vm7845_vm1, %v513_v9, 0 }
  0x38   : > { %p7386_p13 = pnand %p7385_p12, %p7379_p9 }
  0x39   : > { %6527 = vmatmul.mubr.bf16.vlgmr.msra.gmra.mxu0 %v7651_v10  ;;  %6543 = vmatmul.mubr.bf16.vlgmr.msra.gmra.mxu1 %v7657_v12 }
  0x3a   : > { %6559 = vmatpush3.bf16.msra.mxu1 %v7236_v11  ;;  %6607 = vmatpush3.bf16.msra.mxu0 %v7237_v13  ;;  %v515_v11 = vld [vmem:[%s7840_s26 + $0x10] sm:$0xf]  ;;  %v516_v13 = vld [vmem:[%s7840_s26 + $0x14] sm:$0xf] }
  0x3b   : > { %6560 = vmatprep.subr.bf16.mxu1 %v7238_v17  ;;  %6608 = vmatprep.subr.bf16.mxu0 %v7239_v18 }
  0x3c   : > { %6530 = vmatprep.mubr.bf16.mxu0 %v7663_v14  ;;  %6546 = vmatprep.mubr.bf16.mxu1 %v7666_v15 }
  0x3e   : > { %6561 = vmatpush3.bf16.msra.mxu1 %v7238_v17  ;;  %6609 = vmatpush3.bf16.msra.mxu0 %v7239_v18  ;;  %v526_v18 = vsel %vm7845_vm1, %v515_v11, 0 }
  0x3f   : > { %6562 = vmatprep.subr.bf16.mxu1 %v7244_v23  ;;  %6610 = vmatprep.subr.bf16.mxu0 %v7245_v24 }
  0x41   : > { %6531 = vmatmul.mubr.bf16.gmra.mxu0 %v7678_v19  ;;  %6547 = vmatmul.mubr.bf16.gmra.mxu1 %v7681_v20 }
  0x42   : > { %6563 = vmatpush3.bf16.msra.mxu1 %v7244_v23  ;;  %6611 = vmatpush3.bf16.msra.mxu0 %v7245_v24  ;;  %v517_v23 = vld [vmem:[%s7840_s26 + $0x18] sm:$0xf]  ;;  %v518_v24 = vld [vmem:[%s7840_s26 + $0x1c] sm:$0xf] }
  0x43   : > { %6564 = vmatprep.subr.bf16.mxu1 %v7246_v34  ;;  %6612 = vmatprep.subr.bf16.mxu0 %v7247_v35  ;;  %v528_v25 = vsel %vm7845_vm1, %v517_v23, 0  ;;  %v529_v26 = vsel %vm7845_vm1, %v518_v24, 0 }
  0x44   : > { %6534 = vmatprep.mubr.bf16.mxu0 %v7727_v36  ;;  %6550 = vmatprep.mubr.bf16.mxu1 %v7730_v37 }
  0x46   : > { %6565 = vmatpush3.bf16.msra.mxu1 %v7246_v34  ;;  %6613 = vmatpush3.bf16.msra.mxu0 %v7247_v35  ;;  %v7277_v34 = vld [vmem:[%s10134_s5 + $0x40] sm:$0xff]  }
  0x47   : > { %6566 = vmatprep.subr.bf16.mxu1 %v7252_v46  ;;  %6614 = vmatprep.subr.bf16.mxu0 %v7253_v47  ;;  %v7279_v35 = vld [vmem:[%s10134_s5] sm:$0xff]  }
  0x49   : > { %6535 = vmatmul.mubr.bf16.gmra.mxu0 %v7755_v44  ;;  %6551 = vmatmul.mubr.bf16.gmra.mxu1 %v7758_v45 }
  0x4a   : > { %6567 = vmatpush3.bf16.msra.mxu1 %v7252_v46  ;;  %6615 = vmatpush3.bf16.msra.mxu0 %v7253_v47 }
  0x4b   : > { %6568 = vmatprep.subr.bf16.mxu1 %v7254_v50  ;;  %6616 = vmatprep.subr.bf16.mxu0 %v7255_v51 }
  0x4c   : > { %6538 = vmatprep.mubr.bf16.mxu0 %v7769_v48  ;;  %6554 = vmatprep.mubr.bf16.mxu1 %v7772_v49 }
  0x4e   : > { %6569 = vmatpush3.bf16.msra.mxu1 %v7254_v50  ;;  %6617 = vmatpush3.bf16.msra.mxu0 %v7255_v51 }
  0x4f   : > { %6570 = vmatprep.subr.bf16.mxu1 %v7260_v54  ;;  %6618 = vmatprep.subr.bf16.mxu0 %v7261_v55 }
  0x51   : > { %6539 = vmatmul.mubr.bf16.gmra.mxu0 %v7783_v52  ;;  %6555 = vmatmul.mubr.bf16.gmra.mxu1 %v7786_v53 }
  0x52   : > { %6571 = vmatpush3.bf16.msra.mxu1 %v7260_v54  ;;  %6619 = vmatpush3.bf16.msra.mxu0 %v7261_v55 }
  0x53   : > { %6572 = vmatprep.subr.bf16.mxu1 %v7262_v56  ;;  %6620 = vmatprep.subr.bf16.mxu0 %v7263_v57 }
  0x54   : > { %6574 = vmatprep.mubr.bf16.mxu1 %v5196_v58  ;;  %6622 = vmatprep.mubr.bf16.mxu0 %v7727_v36 }
  0x56   : > { %6573 = vmatpush3.bf16.msra.mxu1 %v7262_v56  ;;  %6621 = vmatpush3.bf16.msra.mxu0 %v7263_v57 }
  0x57   : > { %6654 = vmatprep.subr.bf16.mxu1 %v7264_v59  ;;  %6702 = vmatprep.subr.bf16.mxu0 %v7269_v27 }
  0x59   : > { %6575 = vmatmul.mubr.bf16.vlgmr.msra.gmra.mxu1 %v5197_v60  ;;  %6623 = vmatmul.mubr.bf16.vlgmr.msra.gmra.mxu0 %v7755_v44 }
  0x5a   : > { %6578 = vmatprep.mubr.bf16.mxu1 %v5198_v61  ;;  %6626 = vmatprep.mubr.bf16.mxu0 %v7769_v48 }
  0x5b   : > { %6655 = vmatpush3.bf16.msra.mxu1 %v7264_v59  ;;  %6703 = vmatpush3.bf16.msra.mxu0 %v7269_v27 }
  0x5c   : > { %6656 = vmatprep.subr.bf16.mxu1 %v7265_v62 }
  0x5f   : > { %6657 = vmatpush3.bf16.msra.mxu1 %v7265_v62 }
  0x61   : > { %6579 = vmatmul.mubr.bf16.gmra.mxu1 %v5199_v63  ;;  %6627 = vmatmul.mubr.bf16.gmra.mxu0 %v7783_v52 }
  0x62   : > { %6582 = vmatprep.mubr.bf16.mxu1 %v7624_v4  ;;  %6630 = vmatprep.mubr.bf16.mxu0 %v7627_v5  ;;  %v7266_v4 = vld [vmem:[%s10134_s5 + $0x68] sm:$0xff]  }
  0x63   : > { %6658 = vmatprep.subr.bf16.mxu1 %v7266_v4 }
  0x64   : > { %6659 = vmatpush3.bf16.msra.mxu1 %v7266_v4 }
  0x69   : > { %6583 = vmatmul.mubr.bf16.gmra.mxu1 %v7651_v10  ;;  %6631 = vmatmul.mubr.bf16.gmra.mxu0 %v7657_v12  ;;  %v514_v10 = vld [vmem:[%s7840_s26 + $0xc] sm:$0xf] }
  0x6a   : > { %6586 = vmatprep.mubr.bf16.mxu1 %v7663_v14  ;;  %6634 = vmatprep.mubr.bf16.mxu0 %v7666_v15  ;;  %v7267_v14 = vld [vmem:[%s10134_s5 + $0x60] sm:$0xff]   ;;  %v525_v17 = vsel %vm7845_vm1, %v514_v10, 0 }
  0x6b   : > { %6660 = vmatprep.subr.bf16.mxu1 %v7267_v14  ;;  %v5225_v21 = vcombine.low %v524_v16, %v525_v17  ;;  %v7988_v16 = vld [vmem:[%s10133_s4] ss:$0 sm:$0xff] }
  0x6c   : > { %6661 = vmatpush3.bf16.msra.mxu1 %v7267_v14 }
  0x71   : > { %6587 = vmatmul.mubr.bf16.gmra.mxu1 %v7678_v19  ;;  %6635 = vmatmul.mubr.bf16.gmra.mxu0 %v7681_v20  ;;  %v527_v19 = vsel %vm7845_vm1, %v516_v13, 0 }
  0x72   : > { %6590 = vmatprep.mubr.bf16.mxu1 %v7727_v36  ;;  %6638 = vmatprep.mubr.bf16.mxu0 %v7730_v37  ;;  %v5226_v22 = vcombine.low %v526_v18, %v527_v19  ;;  %v7926_v36 = vld [vmem:[%s10134_s5 + $0xb8] sm:$0xff]  }
  0x73   : > { %v7932_v37 = vld [vmem:[%s10134_s5 + $0xf8] sm:$0xff]  }
  0x79   : > { %6591 = vmatmul.mubr.bf16.gmra.mxu1 %v7755_v44  ;;  %6639 = vmatmul.mubr.bf16.gmra.mxu0 %v7758_v45 }
  0x7a   : > { %6594 = vmatprep.mubr.bf16.mxu1 %v7769_v48  ;;  %6642 = vmatprep.mubr.bf16.mxu0 %v7772_v49 }
  0x81   : > { %6595 = vmatmul.mubr.bf16.gmra.mxu1 %v7783_v52  ;;  %6643 = vmatmul.mubr.bf16.gmra.mxu0 %v7786_v53 }
  0x82   : > { %6598 = vmatprep.mubr.bf16.mxu1 %v7627_v5  ;;  %6646 = vmatprep.mubr.bf16.mxu0 %v5224_v8  ;;  %v7268_v5 = vld [vmem:[%s10134_s5 + $0x58] sm:$0xff]  }
  0x83   : > { %6662 = vmatprep.subr.bf16.mxu1 %v7268_v5 }
  0x84   : > { %6663 = vmatpush3.bf16.msra.mxu1 %v7268_v5 }
  0x85   : > { %6664 = vmatprep.subr.bf16.mxu1 %v7271_v28 }
  0x88   : > { %6665 = vmatpush3.bf16.msra.mxu1 %v7271_v28 }
  0x89   : > { %6599 = vmatmul.mubr.bf16.gmra.mxu1 %v7657_v12  ;;  %6647 = vmatmul.mubr.bf16.gmra.mxu0 %v5225_v21  ;;  %v5227_v12 = vcombine.low %v528_v25, %v529_v26 }
  0x8a   : > { %6602 = vmatprep.mubr.bf16.mxu1 %v7666_v15  ;;  %6650 = vmatprep.mubr.bf16.mxu0 %v5226_v22  ;;  %v7270_v15 = vld [vmem:[%s10134_s5 + $0x30] sm:$0xff]   ;;  %v1486_v22 = vlaneseq }
  0x8b   : > { %6704 = vmatprep.subr.bf16.mxu0 %v7270_v15  ;;  %6666 = vmatprep.subr.bf16.mxu1 %v7274_v31 }
  0x8c   : > { %6705 = vmatpush3.bf16.msra.mxu0 %v7270_v15  ;;  %6667 = vmatpush3.bf16.msra.mxu1 %v7274_v31 }
  0x8d   : > { %6706 = vmatprep.subr.bf16.mxu0 %v7272_v29  ;;  %6668 = vmatprep.subr.bf16.mxu1 %v7277_v34 }
  0x90   : > { %6707 = vmatpush3.bf16.msra.mxu0 %v7272_v29  ;;  %6669 = vmatpush3.bf16.msra.mxu1 %v7277_v34 }
  0x91   : > { %6603 = vmatmul.mubr.bf16.gmra.mxu1 %v7681_v20  ;;  %6651 = vmatmul.mubr.bf16.gmra.mxu0 %v5227_v12  ;;  %v7275_v20 = vld [vmem:[%s10134_s5 + $0x18] sm:$0xff]  }
  0x92   : > { %6708 = vmatprep.subr.bf16.mxu0 %v7273_v30  ;;  %6750 = vmatprep.subr.bf16.mxu1 %v7926_v36 }
  0x94   : > { %6709 = vmatpush3.bf16.msra.mxu0 %v7273_v30  ;;  %v7995_v30 = vshrl.u32 %v1486_v22, 7 }
  0x95   : > { %6710 = vmatprep.subr.bf16.mxu0 %v7275_v20 }
  0x96   : > { %vm1520_vm2 = vcmp.lt.s32.totalorder %v7995_v30, 1  ;;  %vm1626_vm3 = vcmp.eq.s32.totalorder %v7995_v30, 0  ;;  %vm1589_vm6 = vcmp.lt.s32.totalorder %v7995_v30, 7  ;;  %vm1736_vm7 = vcmp.eq.s32.totalorder %v7995_v30, 7 }
  0x97   : > { %vm5594_vm4 = vmneg %vm1626_vm3 }
  0x98   : > { %6711 = vmatpush3.bf16.msra.mxu0 %v7275_v20  ;;  %vm8068_vm5 = vmpackc.low %vm5594_vm4, %vm5594_vm4 }
  0x99   : > { %6712 = vmatprep.subr.bf16.mxu0 %v7276_v32  ;;  %vm5670_vm8 = vmneg %vm1736_vm7 }
  0x9a   : > { %vm8553_vm9 = vmpackc.low %vm5670_vm8, %vm5670_vm8 }
  0x9c   : > { %6713 = vmatpush3.bf16.msra.mxu0 %v7276_v32 }
  0x9d   : > { %6714 = vmatprep.subr.bf16.mxu0 %v7278_v33 }
  0xa0   : > { %6715 = vmatpush3.bf16.msra.mxu0 %v7278_v33 }
  0xa1   : > { %6716 = vmatprep.subr.bf16.mxu0 %v7279_v35 }
  0xa4   : > { %6717 = vmatpush3.bf16.msra.mxu0 %v7279_v35 }
  0xa5   : > { %6798 = vmatprep.subr.bf16.mxu0 %v7932_v37 }
  0xf9   : > { %v6528_v38 = vpop.f32.mrf.mxu0  ;;  %v7935_v39 = vpop.f32.mrf.mxu1 }
  0xfb   : > { %v773_v40 = vpop.f32.mrf.mxu0  ;;  %v7937_v41 = vpop.f32.mrf.mxu1 }
  0xfd   : > { %v6529_v42 = vpop.f32.mrf.mxu0  ;;  %v7939_v43 = vpop.f32.mrf.mxu1 }
  0xff   : > { %v776_v44 = vpop.f32.mrf.mxu0  ;;  %v7941_v45 = vpop.f32.mrf.mxu1 }
 0x101   : > { %v6532_v46 = vpop.f32.mrf.mxu0  ;;  %v7943_v47 = vpop.f32.mrf.mxu1 }
 0x103   : > { %v789_v48 = vpop.f32.mrf.mxu0  ;;  %v7945_v49 = vpop.f32.mrf.mxu1 }
 0x105   : > { %v6533_v50 = vpop.f32.mrf.mxu0  ;;  %v7947_v51 = vpop.f32.mrf.mxu1 }
 0x107   : > { %v7949_v52 = vpop.f32.mrf.mxu0  ;;  %v7951_v53 = vpop.f32.mrf.mxu1 }
 0x109   : > { %v7953_v54 = vpop.f32.mrf.mxu0  ;;  %v7955_v55 = vpop.f32.mrf.mxu1 }
 0x10b   : > { %v7957_v56 = vpop.f32.mrf.mxu0  ;;  %v7959_v57 = vpop.f32.mrf.mxu1 }
 0x10d   : > { %v7961_v58 = vpop.f32.mrf.mxu0  ;;  %v7963_v59 = vpop.f32.mrf.mxu1 }
 0x10f   : > { %v7965_v60 = vpop.f32.mrf.mxu0  ;;  %v7967_v61 = vpop.f32.mrf.mxu1 }
 0x111   : > { %v7969_v62 = vpop.f32.mrf.mxu0  ;;  %v7971_v63 = vpop.f32.mrf.mxu1 }
 0x113   : > { %v7973_v0 = vpop.f32.mrf.mxu0  ;;  %v7975_v1 = vpop.f32.mrf.mxu1 }
 0x115   : > { %v7977_v2 = vpop.f32.mrf.mxu0  ;;  %v7979_v3 = vpop.f32.mrf.mxu1 }
 0x117   : > { %v7981_v4 = vpop.f32.mrf.mxu0  ;;  %v7983_v6 = vpop.f32.mrf.mxu1 }
 0x119   : > { %v6576_v7 = vpop.f32.mrf.mxu1  ;;  %v6624_v8 = vpop.f32.mrf.mxu0 }
 0x11a   : > { %v1015_v9 = vadd.f32 %v6576_v7, %v6528_v38 }
 0x11b   : > { %v1006_v10 = vpop.f32.mrf.mxu1  ;;  %v1256_v11 = vpop.f32.mrf.mxu0 }
 0x11c   : > { %v1385_v13 = vadd.f32 %v6624_v8, %v1015_v9  ;;  %v1007_v14 = vadd.f32 %v1006_v10, %v773_v40 }
 0x11d   : > { %v6577_v17 = vpop.f32.mrf.mxu1  ;;  %v6625_v18 = vpop.f32.mrf.mxu0 }
 0x11e   : > { %v1383_v19 = vadd.f32 %v1256_v11, %v1007_v14  ;;  %v1018_v21 = vadd.f32 %v6577_v17, %v6529_v42  ;;  %v1424_v5 = vadd.f32 %v7988_v16, %v1385_v13  ;;  %v10145_v17 = vmov 0.0|0.0  }
 0x11f   : > { %v1009_v23 = vpop.f32.mrf.mxu1  ;;  %v1259_v24 = vpop.f32.mrf.mxu0 }
 0x120   : > { %v1422_v25 = vadd.f32 %v7988_v16, %v1383_v19  ;;  %v1386_v26 = vadd.f32 %v6625_v18, %v1018_v21  ;;  %v1010_v27 = vadd.f32 %v1009_v23, %v776_v44  ;;  %v7997_v34 = vmax.f32 %v1424_v5, 0.0 }
 0x121   : > { %v6580_v12 = vpop.f32.mrf.mxu1  ;;  %v6628_v15 = vpop.f32.mrf.mxu0 }
 0x122   : > { %v7992_v28 = vmax.f32 %v1422_v25, 0.0  ;;  %v1425_v29 = vadd.f32 %v7988_v16, %v1386_v26  ;;  %v1384_v20 = vadd.f32 %v1259_v24, %v1010_v27  ;;  %v1031_v31 = vadd.f32 %v6580_v12, %v6532_v46  ;;  %10265 = vst [vmem:[#allocation11_spill] sm:$0xff] %v7997_v34 }
 0x123   : > { %v1022_v32 = vpop.f32.mrf.mxu1  ;;  %v1272_v33 = vpop.f32.mrf.mxu0  ;;  %v1490_v27 = vrot.slane %v7997_v34, 7 }
 0x124   : > { %10264 = vst [vmem:[#allocation10_spill] sm:$0xff] %v7992_v28  ;;  %v7999_v35 = vmax.f32 %v1425_v29, 0.0  ;;  %v1023_v38 = vadd.f32 %v1022_v32, %v789_v48  ;;  %v1704_v40 = vpack.c.bf16 %v7992_v28, %v7992_v28  ;;  %v1423_v42 = vadd.f32 %v7988_v16, %v1384_v20 }
 0x125   : > { %v6581_v44 = vpop.f32.mrf.mxu1  ;;  %v6629_v7 = vpop.f32.mrf.mxu0  ;;  %v1389_v9 = vadd.f32 %v6628_v15, %v1031_v31  ;;  %v1488_v18 = vrot.slane %v7992_v28, 7 }
 0x126   : > { %10266 = vst [vmem:[#allocation12_spill] sm:$0xff] %v7999_v35  ;;  %v1387_v10 = vadd.f32 %v1272_v33, %v1023_v38  ;;  %v8006_v46 = vmax.f32 %v1423_v42, 0.0  ;;  %v1034_v11 = vadd.f32 %v6581_v44, %v6533_v50  ;;  %v5253_v48 = vcombine.low %v10145_v17, %v1704_v40 }
 0x127   : > { %v1025_v13 = vpop.f32.mrf.mxu1  ;;  %v1275_v14 = vpop.f32.mrf.mxu0  ;;  %v1428_v50 = vadd.f32 %v7988_v16, %v1389_v9  ;;  %v8031_v31 = vsel %vm1520_vm2, 0.0, %v1488_v18 }
 0x128   : > { %10267 = vst [vmem:[#allocation13_spill] sm:$0xff] %v8006_v46  ;;  %v1426_v19 = vadd.f32 %v7988_v16, %v1387_v10  ;;  %v1026_v21 = vadd.f32 %v1025_v13, %v7949_v52  ;;  %v1489_v22 = vrot.slane %v8006_v46, 7  ;;  %v1390_v23 = vadd.f32 %v6629_v7, %v1034_v11  ;;  %6670 = vmatprep.mubr.bf16.mxu1 %v5253_v48  ;;  %v7281_v52 = vld [vmem:[%s10134_s5 + $0xb0] sm:$0xff]  }
 0x129   : > { %v6584_v24 = vpop.f32.mrf.mxu1  ;;  %v6632_v5 = vpop.f32.mrf.mxu0  ;;  %v8017_v26 = vpack.c.bf16 %v7997_v34, %v8006_v46  ;;  %v8046_v9 = vmax.f32 %v1428_v50, 0.0 }
 0x12a   : > { %v1388_v25 = vadd.f32 %v1275_v14, %v1026_v21  ;;  %v8024_v12 = vmax.f32 %v1426_v19, 0.0  ;;  %v8027_v15 = vadd.f32 %v7988_v16, %v1390_v23  ;;  %v1047_v33 = vadd.f32 %v6584_v24, %v7953_v54 }
 0x12b   : > { %10268 = vst [vmem:[#allocation14_spill] sm:$0xff] %v8017_v26  ;;  %v1038_v29 = vpop.f32.mrf.mxu1  ;;  %v1288_v20 = vpop.f32.mrf.mxu0  ;;  %6671 = vmatmul.mubr.bf16.vlgmr.msra.gmra.mxu1 %v8017_v26  ;;  %v8040_v40 = vsel %vm1520_vm2, %v1489_v22, %v1490_v27  ;;  %v8044_v42 = vsel %vm1520_vm2, %v1488_v18, %v1489_v22  ;;  %10271 = vst [vmem:[#allocation17_spill] sm:$0xff] %v8046_v9  ;;  %v1630_v54 = vsel %vm1626_vm3, 0.0, %v8031_v31 }
 0x12c   : > { %10269 = vst [vmem:[#allocation15_spill] sm:$0xff] %v8024_v12  ;;  %v1427_v32 = vadd.f32 %v7988_v16, %v1388_v25  ;;  %v1039_v38 = vadd.f32 %v1038_v29, %v7957_v56  ;;  %6751 = vmatpush3.bf16.msra.mxu1 %v7926_v36  ;;  %10270 = vst [vmem:[#allocation16_spill] sm:$0xff] %v8044_v42  ;;  %v7282_v36 = vld [vmem:[%s10134_s5 + $0xa8] sm:$0xff]   ;;  %v1491_v56 = vrot.slane %v7999_v35, 7  ;;  %v1492_v11 = vrot.slane %v8024_v12, 7 }
 0x12d   : > { %v6585_v44 = vpop.f32.mrf.mxu1  ;;  %v6633_v7 = vpop.f32.mrf.mxu0  ;;  %6752 = vmatprep.subr.bf16.mxu1 %v7281_v52  ;;  %v1667_v14 = vpack.c.bf16 %v1630_v54, %v1630_v54  ;;  %v1393_v21 = vadd.f32 %v6632_v5, %v1047_v33  ;;  %v8063_v22 = vpack.c.bf16 %v8040_v40, %v8044_v42  ;;  %v8074_v29 = vpack.c.bf16 %v8024_v12, %v7999_v35 }
 0x12e   : > { %v8048_v10 = vmax.f32 %v1427_v32, 0.0  ;;  %v1391_v13 = vadd.f32 %v1288_v20, %v1039_v38  ;;  %v1050_v23 = vadd.f32 %v6585_v44, %v7961_v58  ;;  %v10143_v33 = vrot.slane %v8046_v9, 7  ;;  %v7283_v44 = vld [vmem:[%s10134_s5 + $0xa0] sm:$0xff]  }
 0x12f   : > { %v1041_v48 = vpop.f32.mrf.mxu1  ;;  %v1291_v18 = vpop.f32.mrf.mxu0  ;;  %10273 = vst [vmem:[#allocation19_spill] sm:$0xff] %v8063_v22  ;;  %v5277_v50 = vcombine.low %v10145_v17, %v1667_v14  ;;  %10276 = vst [vmem:[#allocation20_spill] sm:$0xff] %v8074_v29  ;;  %6674 = vmatprep.mubr.bf16.mxu1 %v8074_v29  ;;  %v1432_v14 = vadd.f32 %v7988_v16, %v1393_v21 }
 0x130   : > { %10272 = vst [vmem:[#allocation18_spill] sm:$0xff] %v8048_v10  ;;  %v1493_v19 = vrot.slane %v8048_v10, 7  ;;  %v1430_v24 = vadd.f32 %v7988_v16, %v1391_v13  ;;  %v1042_v5 = vadd.f32 %v1041_v48, %v7965_v60  ;;  %6753 = vmatpush3.bf16.msra.mxu1 %v7281_v52  ;;  %v1394_v58 = vadd.f32 %v6633_v7, %v1050_v23  ;;  %v7286_v23 = vld [vmem:[%s10134_s5 + $0xf0] sm:$0xff]  }
 0x131   : > { %v6588_v20 = vpop.f32.mrf.mxu1  ;;  %v6636_v32 = vpop.f32.mrf.mxu0  ;;  %6754 = vmatprep.subr.bf16.mxu1 %v7282_v36  ;;  %6718 = vmatprep.mubr.bf16.mxu0 %v5277_v50  ;;  %v8087_v60 = vsel %vm1520_vm2, %v1491_v56, %v1492_v11  ;;  %v8091_v52 = vsel %vm1520_vm2, %v1490_v27, %v1491_v56  ;;  %v8108_v56 = vpack.c.bf16 %v8046_v9, %v8048_v10 }
 0x132   : > { %v1063_v38 = vadd.f32 %v6588_v20, %v7969_v62  ;;  %v8082_v54 = vmax.f32 %v1430_v24, 0.0  ;;  %v1392_v13 = vadd.f32 %v1291_v18, %v1042_v5  ;;  %10278 = vst [vmem:[#allocation22_spill] sm:$0xff] %v8087_v60  ;;  %v1433_v48 = vadd.f32 %v7988_v16, %v1394_v58  ;;  %6719 = vmatmul.mubr.msk.bf16.vlgmr.msra.gmra.mxu0 %vm8068_vm5, %v8063_v22 }
 0x133   : > { %v1054_v62 = vpop.f32.mrf.mxu1  ;;  %v1304_v7 = vpop.f32.mrf.mxu0  ;;  %v8100_v18 = vpack.c.bf16 %v8087_v60, %v8091_v52  ;;  %10280 = vst [vmem:[#allocation24_spill] sm:$0xff] %v8108_v56  ;;  %v8115_v5 = vsel %vm1520_vm2, %v1493_v19, %v10143_v33  ;;  %6675 = vmatmul.mubr.bf16.gmra.mxu1 %v8108_v56  ;;  %6799 = vmatpush3.bf16.msra.mxu0 %v7932_v37  ;;  %v7288_v37 = vld [vmem:[%s10134_s5 + $0xe8] sm:$0xff]  }
 0x134   : > { %10277 = vst [vmem:[#allocation21_spill] sm:$0xff] %v8082_v54  ;;  %v1431_v27 = vadd.f32 %v7988_v16, %v1392_v13  ;;  %v1055_v21 = vadd.f32 %v1054_v62, %v7973_v0  ;;  %10281 = vst [vmem:[#allocation25_spill] sm:$0xff] %v8115_v5  ;;  %6755 = vmatpush3.bf16.msra.mxu1 %v7282_v36  ;;  %v1397_v20 = vadd.f32 %v6636_v32, %v1063_v38  ;;  %v7284_v0 = vld [vmem:[%s10134_s5 + $0x98] sm:$0xff]  }
 0x135   : > { %10279 = vst [vmem:[#allocation23_spill] sm:$0xff] %v8100_v18  ;;  %v6589_v24 = vpop.f32.mrf.mxu1  ;;  %v6637_v50 = vpop.f32.mrf.mxu0  ;;  %6722 = vmatprep.mubr.msk.bf16.mxu0 %vm8068_vm5, %v8100_v18  ;;  %v8123_v13 = vsel %vm1520_vm2, %v1492_v11, %v1493_v19  ;;  %6756 = vmatprep.subr.bf16.mxu1 %v7283_v44  ;;  %v1712_v8 = vpack.c.bf16 %v8082_v54, %v8082_v54 }
 0x136   : > { %v1066_v58 = vadd.f32 %v6589_v24, %v7977_v2  ;;  %10282 = vst [vmem:[#allocation26_spill] sm:$0xff] %v8123_v13  ;;  %v8128_v62 = vmax.f32 %v1431_v27, 0.0  ;;  %v1395_v36 = vadd.f32 %v1304_v7, %v1055_v21  ;;  %v8134_v2 = vmax.f32 %v1432_v14, 0.0  ;;  %6800 = vmatprep.subr.bf16.mxu0 %v7286_v23 }
 0x137   : > { %v1057_v32 = vpop.f32.mrf.mxu1  ;;  %v1307_v38 = vpop.f32.mrf.mxu0  ;;  %v8138_v19 = vpack.c.bf16 %v8115_v5, %v8123_v13  ;;  %v8140_v27 = vmax.f32 %v1433_v48, 0.0  ;;  %v5257_v48 = vcombine.low %v10145_v17, %v1712_v8  ;;  %6801 = vmatpush3.bf16.msra.mxu0 %v7286_v23 }
 0x138   : > { %10283 = vst [vmem:[#allocation27_spill] sm:$0xff] %v8128_v62  ;;  %10284 = vst [vmem:[#allocation28_spill] sm:$0xff] %v8134_v2  ;;  %v1398_v11 = vadd.f32 %v6637_v50, %v1066_v58  ;;  %v1434_v24 = vadd.f32 %v7988_v16, %v1395_v36  ;;  %v1058_v7 = vadd.f32 %v1057_v32, %v7981_v4  ;;  %6757 = vmatpush3.bf16.msra.mxu1 %v7283_v44  ;;  %v7287_v4 = vld [vmem:[%s10134_s5 + $0x90] sm:$0xff]  }
 0x139   : > { %10285 = vst [vmem:[#allocation29_spill] sm:$0xff] %v8138_v19  ;;  %10286 = vst [vmem:[#allocation30_spill] sm:$0xff] %v8140_v27  ;;  %v6592_v21 = vpop.f32.mrf.mxu1  ;;  %v6640_v33 = vpop.f32.mrf.mxu0  ;;  %v1497_v14 = vrot.slane %v8128_v62, 7  ;;  %v1436_v50 = vadd.f32 %v7988_v16, %v1397_v20  ;;  %6758 = vmatprep.subr.bf16.mxu1 %v7284_v0  ;;  %v8160_v32 = vpack.c.bf16 %v8134_v2, %v8128_v62  ;;  %6678 = vmatprep.mubr.bf16.mxu1 %v5257_v48 }
 0x13a   : > { %v8150_v58 = vadd.f32 %v7988_v16, %v1398_v11  ;;  %v1396_v44 = vadd.f32 %v1307_v38, %v1058_v7  ;;  %v1079_v36 = vadd.f32 %v6592_v21, %v7935_v39  ;;  %v1498_v11 = vrot.slane %v8134_v2, 7  ;;  %6723 = vmatmul.mubr.msk.bf16.gmra.mxu0 %vm8068_vm5, %v8138_v19  ;;  %v7289_v7 = vld [vmem:[%s10134_s5 + $0xe0] sm:$0xff]   ;;  %6802 = vmatprep.subr.bf16.mxu0 %v7288_v37 }
 0x13b   : > { %10287 = vst [vmem:[#allocation31_spill] sm:$0xff] %v8160_v32  ;;  %v1070_v20 = vpop.f32.mrf.mxu1  ;;  %v1320_v56 = vpop.f32.mrf.mxu0  ;;  %v8163_v8 = vmax.f32 %v1434_v24, 0.0  ;;  %v1496_v39 = vrot.slane %v8082_v54, 7  ;;  %v1559_v21 = vrot.slane %v7997_v34, 1  ;;  %v1499_v24 = vrot.slane %v8140_v27, 7  ;;  %6679 = vmatmul.mubr.bf16.gmra.mxu1 %v8160_v32  ;;  %6803 = vmatpush3.bf16.msra.mxu0 %v7288_v37 }
 0x13c   : > { %v1071_v38 = vadd.f32 %v1070_v20, %v7937_v41  ;;  %v1435_v17 = vadd.f32 %v7988_v16, %v1396_v44  ;;  %6759 = vmatpush3.bf16.msra.mxu1 %v7284_v0  ;;  %v8177_v48 = vmax.f32 %v1436_v50, 0.0  ;;  %v8185_v19 = vsel %vm1520_vm2, %v1497_v14, %v1498_v11  ;;  %v7290_v44 = vld [vmem:[%s10134_s5 + $0x88] sm:$0xff]   ;;  %6804 = vmatprep.subr.bf16.mxu0 %v7289_v7 }
 0x13d   : > { %v6593_v29 = vpop.f32.mrf.mxu1  ;;  %v6641_v18 = vpop.f32.mrf.mxu0  ;;  %v8181_v20 = vsel %vm1520_vm2, 0.0, %v1496_v39  ;;  %10289 = vst [vmem:[#allocation33_spill] sm:$0xff] %v8185_v19  ;;  %6760 = vmatprep.subr.bf16.mxu1 %v7287_v4  ;;  %v1401_v0 = vadd.f32 %v6640_v33, %v1079_v36  ;;  %v1500_v22 = vrot.slane %v8163_v8, 7  ;;  %v8200_v13 = vsel %vm1520_vm2, %v1496_v39, %v1497_v14 }
 0x13e   : > { %v1399_v41 = vadd.f32 %v1320_v56, %v1071_v38  ;;  %10288 = vst [vmem:[#allocation32_spill] sm:$0xff] %v8181_v20  ;;  %v8190_v23 = vmax.f32 %v1435_v17, 0.0  ;;  %v1639_v56 = vsel %vm1626_vm3, 0.0, %v8181_v20  ;;  %v1082_v50 = vadd.f32 %v6593_v29, %v7939_v43  ;;  %10290 = vst [vmem:[#allocation34_spill] sm:$0xff] %v8200_v13 }
 0x13f   : > { %v1073_v38 = vpop.f32.mrf.mxu1  ;;  %v1323_v26 = vpop.f32.mrf.mxu0  ;;  %v1676_v34 = vpack.c.bf16 %v1639_v56, %v1639_v56  ;;  %v8204_v17 = vpack.c.bf16 %v8163_v8, %v8140_v27  ;;  %v10292_v33 = vrot.slane %v7999_v35, 1  ;;  %v10294_v32 = vmov 0.0|0.0   ;;  %6805 = vmatpush3.bf16.msra.mxu0 %v7289_v7 }
 0x140   : > { %v1438_v37 = vadd.f32 %v7988_v16, %v1399_v41  ;;  %6761 = vmatpush3.bf16.msra.mxu1 %v7287_v4  ;;  %v1501_v39 = vrot.slane %v8190_v23, 7  ;;  %v8219_v60 = vpack.c.bf16 %v8185_v19, %v8200_v13  ;;  %v7291_v41 = vld [vmem:[%s10134_s5 + $0xd8] sm:$0xff]   ;;  %v1440_v14 = vadd.f32 %v7988_v16, %v1401_v0 }
 0x141   : > { %10291 = vst [vmem:[#allocation35_spill] sm:$0xff] %v8204_v17  ;;  %v8210_v43 = vsel %vm1589_vm6, %v1559_v21, %v10292_v33  ;;  %v6596_v36 = vpop.f32.mrf.mxu1  ;;  %v6644_v56 = vpop.f32.mrf.mxu0  ;;  %v5281_v20 = vcombine.low %v10294_v32, %v1676_v34  ;;  %6682 = vmatprep.mubr.bf16.mxu1 %v8204_v17  ;;  %v1074_v33 = vadd.f32 %v1073_v38, %v7941_v45  ;;  %v10350_v5 = vrot.slane %v8134_v2, 1 }
 0x142   : > { %10293 = vst [vmem:[#allocation36_spill] sm:$0xff] %v8210_v43  ;;  %10295 = vst [vmem:[#allocation37_spill] sm:$0xff] %v8219_v60  ;;  %6762 = vmatprep.subr.bf16.mxu1 %v7290_v44  ;;  %v1402_v29 = vadd.f32 %v6641_v18, %v1082_v50  ;;  %v1095_v34 = vadd.f32 %v6596_v36, %v7943_v47  ;;  %v8231_v45 = vsel %vm1520_vm2, %v1499_v24, %v1500_v22  ;;  %v7293_v47 = vld [vmem:[%s10134_s5 + $0x80] sm:$0xff]  }
 0x143   : > { %v1086_v54 = vpop.f32.mrf.mxu1  ;;  %v1336_v42 = vpop.f32.mrf.mxu0  ;;  %6726 = vmatprep.mubr.bf16.mxu0 %v5281_v20  ;;  %v1400_v19 = vadd.f32 %v1323_v26, %v1074_v33  ;;  %10296 = vst [vmem:[#allocation38_spill] sm:$0xff] %v8231_v45  ;;  %v8235_v38 = vsel %vm1520_vm2, %v1498_v11, %v1499_v24  ;;  %v8239_v4 = vpack.c.bf16 %v8177_v48, %v8190_v23  ;;  %v10299_v18 = vrot.slane %v8006_v46, 1 }
 0x144   : > { %10297 = vst [vmem:[#allocation39_spill] sm:$0xff] %v8235_v38  ;;  %v8250_v7 = vmax.f32 %v1438_v37, 0.0  ;;  %6727 = vmatmul.mubr.msk.bf16.gmra.mxu0 %vm8068_vm5, %v8219_v60  ;;  %v8257_v11 = vpack.c.bf16 %v8231_v45, %v8235_v38  ;;  %v1087_v24 = vadd.f32 %v1086_v54, %v7945_v49  ;;  %6763 = vmatpush3.bf16.msra.mxu1 %v7290_v44  ;;  %v10302_v36 = vrot.slane %v8177_v48, 7  ;;  %v8278_v54 = vld [vmem:[%s10134_s5 + $0x138] sm:$0xff]  }
 0x145   : > { %10298 = vst [vmem:[#allocation40_spill] sm:$0xff] %v8239_v4  ;;  %v8248_v26 = vsel %vm1589_vm6, %v10299_v18, %v1559_v21  ;;  %v6597_v20 = vpop.f32.mrf.mxu1  ;;  %v6645_v0 = vpop.f32.mrf.mxu0  ;;  %v7292_v21 = vld [vmem:[%s10134_s5 + $0xd0] sm:$0xff]   ;;  %v1439_v50 = vadd.f32 %v7988_v16, %v1400_v19  ;;  %v8273_v49 = vsel %vm1520_vm2, %v1500_v22, %v1501_v39  ;;  %6806 = vmatprep.subr.bf16.mxu0 %v7291_v41  ;;  %v8281_v19 = vmax.f32 %v8027_v15, 0.0 }
 0x146   : > { %10300 = vst [vmem:[#allocation41_spill] sm:$0xff] %v8250_v7  ;;  %10301 = vst [vmem:[#allocation42_spill] sm:$0xff] %v8257_v11  ;;  %v1098_v37 = vadd.f32 %v6597_v20, %v7947_v51  ;;  %v8269_v33 = vsel %vm1520_vm2, %v1501_v39, %v10302_v36  ;;  %v8283_v51 = vmax.f32 %v1440_v14, 0.0  ;;  %v1441_v44 = vadd.f32 %v7988_v16, %v1402_v29 }
 0x147   : > { %10303 = vst [vmem:[#allocation43_spill] sm:$0xff] %v8273_v49  ;;  %10304 = vst [vmem:[#allocation44_spill] sm:$0xff] %v8281_v19  ;;  %6730 = vmatprep.mubr.msk.bf16.mxu0 %vm8068_vm5, %v8257_v11  ;;  %6683 = vmatmul.mubr.bf16.gmra.mxu1 %v8239_v4  ;;  %v1403_v22 = vadd.f32 %v1336_v42, %v1087_v24  ;;  %v1089_v39 = vpop.f32.mrf.mxu1  ;;  %v1339_v18 = vpop.f32.mrf.mxu0  ;;  %v8290_v20 = vmax.f32 %v1439_v50, 0.0  ;;  %v1405_v36 = vadd.f32 %v6644_v56, %v1095_v34 }
 0x148   : > { %v1406_v17 = vadd.f32 %v6645_v0, %v1098_v37  ;;  %v1090_v15 = vadd.f32 %v1089_v39, %v7951_v53  ;;  %6807 = vmatpush3.bf16.msra.mxu0 %v7291_v41  ;;  %6764 = vmatprep.subr.bf16.mxu1 %v7293_v47  ;;  %v8296_v29 = vpack.c.bf16 %v8269_v33, %v8273_v49  ;;  %v1504_v50 = vrot.slane %v8250_v7, 7  ;;  %v7294_v0 = vld [vmem:[%s10134_s5 + $0xc8] sm:$0xff]  }
 0x149   : > { %v1442_v14 = vadd.f32 %v7988_v16, %v1403_v22  ;;  %v1720_v4 = vpack.c.bf16 %v8250_v7, %v8250_v7  ;;  %v6600_v42 = vpop.f32.mrf.mxu1  ;;  %v6648_v24 = vpop.f32.mrf.mxu0  ;;  %6808 = vmatprep.subr.bf16.mxu0 %v7292_v21  ;;  %6765 = vmatpush3.bf16.msra.mxu1 %v7293_v47  ;;  %v8310_v37 = vmax.f32 %v1441_v44, 0.0  ;;  %v1505_v22 = vrot.slane %v8290_v20, 7 }
 0x14a   : > { %10305 = vst [vmem:[#allocation45_spill] sm:$0xff] %v8296_v29  ;;  %v8304_v41 = vadd.f32 %v7988_v16, %v1406_v17  ;;  %v1404_v34 = vadd.f32 %v1339_v18, %v1090_v15  ;;  %6846 = vmatprep.subr.bf16.mxu1 %v8278_v54  ;;  %v1444_v17 = vadd.f32 %v7988_v16, %v1405_v36  ;;  %v8331_v36 = vsel %vm1520_vm2, 0.0, %v1504_v50 }
 0x14b   : > { %10306 = vst [vmem:[#allocation46_spill] sm:$0xff] %v8310_v37  ;;  %v8313_v39 = vmax.f32 %v1442_v14, 0.0  ;;  %v5261_v47 = vcombine.low %v10294_v32, %v1720_v4  ;;  %v1102_v56 = vpop.f32.mrf.mxu1  ;;  %v1352_v53 = vpop.f32.mrf.mxu0  ;;  %v1111_v15 = vadd.f32 %v6600_v42, %v7955_v55  ;;  %v8321_v11 = vpack.c.bf16 %v8283_v51, %v8290_v20  ;;  %10308 = vst [vmem:[#allocation48_spill] sm:$0xff] %v8331_v36 }
 0x14c   : > { %v1443_v18 = vadd.f32 %v7988_v16, %v1404_v34  ;;  %6809 = vmatpush3.bf16.msra.mxu0 %v7292_v21  ;;  %v1506_v14 = vrot.slane %v8283_v51, 7  ;;  %v1103_v4 = vadd.f32 %v1102_v56, %v7959_v57  ;;  %v7295_v21 = vld [vmem:[%s10134_s5 + $0xc0] sm:$0xff]   ;;  %v1648_v56 = vsel %vm1626_vm3, 0.0, %v8331_v36 }
 0x14d   : > { %10307 = vst [vmem:[#allocation47_spill] sm:$0xff] %v8321_v11  ;;  %6731 = vmatmul.mubr.msk.bf16.gmra.mxu0 %vm8068_vm5, %v8296_v29  ;;  %6686 = vmatprep.mubr.bf16.mxu1 %v5261_v47  ;;  %v6601_v55 = vpop.f32.mrf.mxu1  ;;  %v6649_v42 = vpop.f32.mrf.mxu0  ;;  %v1508_v44 = vrot.slane %v8313_v39, 7  ;;  %v1409_v29 = vadd.f32 %v6648_v24, %v1111_v15  ;;  %v1507_v24 = vrot.slane %v8310_v37, 7  ;;  %v8351_v15 = vmax.f32 %v1444_v17, 0.0  ;;  %v8365_v17 = vld [vmem:[%s10134_s5 + $0x178] sm:$0xff]  }
 0x14e   : > { %v8338_v60 = vmax.f32 %v1443_v18, 0.0  ;;  %6810 = vmatprep.subr.bf16.mxu0 %v7294_v0  ;;  %v1407_v57 = vadd.f32 %v1352_v53, %v1103_v4  ;;  %v1114_v47 = vadd.f32 %v6601_v55, %v7963_v59  ;;  %v8347_v49 = vsel %vm1520_vm2, %v1505_v22, %v1506_v14 }
 0x14f   : > { %6687 = vmatmul.mubr.bf16.gmra.mxu1 %v8321_v11  ;;  %v1105_v34 = vpop.f32.mrf.mxu1  ;;  %v1355_v45 = vpop.f32.mrf.mxu0  ;;  %v1685_v11 = vpack.c.bf16 %v1648_v56, %v1648_v56  ;;  %v8356_v59 = vsel %vm1520_vm2, %v1504_v50, %v1505_v22  ;;  %v8360_v55 = vpack.c.bf16 %v8313_v39, %v8310_v37  ;;  %v1448_v56 = vadd.f32 %v7988_v16, %v1409_v29 }
 0x150   : > { %6811 = vmatpush3.bf16.msra.mxu0 %v7294_v0  ;;  %v1446_v53 = vadd.f32 %v7988_v16, %v1407_v57  ;;  %v1410_v4 = vadd.f32 %v6649_v42, %v1114_v47  ;;  %10309 = vst [vmem:[#allocation49_spill] sm:$0xff] %v8356_v59  ;;  %v1509_v0 = vrot.slane %v8338_v60, 7  ;;  %v8371_v50 = vpack.c.bf16 %v8347_v49, %v8356_v59 }
 0x151   : > { %10310 = vst [vmem:[#allocation50_spill] sm:$0xff] %v8360_v55  ;;  %v6604_v36 = vpop.f32.mrf.mxu1  ;;  %v6652_v38 = vpop.f32.mrf.mxu0  ;;  %6812 = vmatprep.subr.bf16.mxu0 %v7295_v21  ;;  %v5285_v42 = vcombine.low %v10294_v32, %v1685_v11  ;;  %v1106_v22 = vadd.f32 %v1105_v34, %v7967_v61  ;;  %6690 = vmatprep.mubr.bf16.mxu1 %v8360_v55  ;;  %v10175_v7 = vrot.slane %v8351_v15, 7 }
 0x152   : > { %10311 = vst [vmem:[#allocation51_spill] sm:$0xff] %v8371_v50  ;;  %v1127_v47 = vadd.f32 %v6604_v36, %v7971_v63  ;;  %v8380_v18 = vsel %vm1520_vm2, %v1507_v24, %v1508_v44  ;;  %v1449_v59 = vadd.f32 %v7988_v16, %v1410_v4  ;;  %v8386_v34 = vsel %vm1520_vm2, %v1506_v14, %v1507_v24 }
 0x153   : > { %v1118_v13 = vpop.f32.mrf.mxu1  ;;  %v1368_v11 = vpop.f32.mrf.mxu0  ;;  %6734 = vmatprep.mubr.bf16.mxu0 %v5285_v42  ;;  %v1408_v61 = vadd.f32 %v1355_v45, %v1106_v22  ;;  %v8388_v29 = vmax.f32 %v1446_v53, 0.0  ;;  %v8395_v36 = vpack.c.bf16 %v8380_v18, %v8386_v34  ;;  %v8399_v4 = vpack.c.bf16 %v8351_v15, %v8338_v60 }
 0x154   : > { %6813 = vmatpush3.bf16.msra.mxu0 %v7295_v21  ;;  %v1413_v63 = vadd.f32 %v6652_v38, %v1127_v47  ;;  %v1119_v21 = vadd.f32 %v1118_v13, %v7975_v1  ;;  %v8409_v38 = vsel %vm1520_vm2, %v1509_v0, %v10175_v7  ;;  %v8413_v22 = vmax.f32 %v1448_v56, 0.0 }
 0x155   : > { %10312 = vst [vmem:[#allocation52_spill] sm:$0xff] %v8388_v29  ;;  %6735 = vmatmul.mubr.msk.bf16.gmra.mxu0 %vm8068_vm5, %v8371_v50  ;;  %10313 = vst [vmem:[#allocation53_spill] sm:$0xff] %v8395_v36  ;;  %v6605_v45 = vpop.f32.mrf.mxu1  ;;  %6894 = vmatprep.subr.bf16.mxu0 %v8365_v17  ;;  %v1447_v14 = vadd.f32 %v7988_v16, %v1408_v61  ;;  %v6653_v53 = vpop.f32.mrf.mxu0  ;;  %v8422_v1 = vsel %vm1520_vm2, %v1508_v44, %v1509_v0  ;;  %v1512_v44 = vrot.slane %v8388_v29, 7 }
 0x156   : > { %10314 = vst [vmem:[#allocation54_spill] sm:$0xff] %v8399_v4  ;;  %v1130_v24 = vadd.f32 %v6605_v45, %v7979_v3  ;;  %v1452_v47 = vadd.f32 %v7988_v16, %v1413_v63  ;;  %6738 = vmatprep.mubr.msk.bf16.mxu0 %vm8068_vm5, %v8395_v36  ;;  %v1411_v61 = vadd.f32 %v1368_v11, %v1119_v21  ;;  %v8431_v63 = vmax.f32 %v1449_v59, 0.0 }
 0x157   : > { %6691 = vmatmul.mubr.bf16.gmra.mxu1 %v8399_v4  ;;  %v1121_v3 = vpop.f32.mrf.mxu1  ;;  %v8424_v13 = vmax.f32 %v1447_v14, 0.0  ;;  %v8428_v56 = vpack.c.bf16 %v8409_v38, %v8422_v1  ;;  %v1728_v7 = vpack.c.bf16 %v8388_v29, %v8388_v29  ;;  %v8444_v59 = vmax.f32 %v8150_v58, 0.0 }
 0x158   : > { %v1414_v45 = vadd.f32 %v6653_v53, %v1130_v24  ;;  %10317 = vst [vmem:[#allocation57_spill] sm:$0xff] %v8431_v63  ;;  %v1122_v42 = vadd.f32 %v1121_v3, %v7983_v6  ;;  %v1450_v14 = vadd.f32 %v7988_v16, %v1411_v61  ;;  %v1371_v24 = vpop.f32.mrf.mxu0  ;;  %v1514_v6 = vrot.slane %v8413_v22, 7 }
 0x159   : > { %10315 = vst [vmem:[#allocation55_spill] sm:$0xff] %v8424_v13  ;;  %10316 = vst [vmem:[#allocation56_spill] sm:$0xff] %v8428_v56  ;;  %v1513_v11 = vrot.slane %v8424_v13, 7  ;;  %v5265_v3 = vcombine.low %v10294_v32, %v1728_v7  ;;  %v8448_v57 = vmax.f32 %v1452_v47, 0.0  ;;  %v8454_v0 = vpack.c.bf16 %v8413_v22, %v8424_v13 }
 0x15a   : > { %v8441_v21 = vadd.f32 %v7988_v16, %v1414_v45  ;;  %10318 = vst [vmem:[#allocation58_spill] sm:$0xff] %v8444_v59  ;;  %v1412_v53 = vadd.f32 %v1371_v24, %v1122_v42  ;;  %v8450_v4 = vmax.f32 %v1450_v14, 0.0  ;;  %v8458_v61 = vsel %vm1520_vm2, 0.0, %v1512_v44 }
 0x15b   : > { %10319 = vst [vmem:[#allocation59_spill] sm:$0xff] %v8448_v57  ;;  %10321 = vst [vmem:[#allocation61_spill] sm:$0xff] %v8454_v0  ;;  %v1515_v45 = vrot.slane %v8431_v63, 7  ;;  %6694 = vmatprep.mubr.bf16.mxu1 %v5265_v3  ;;  %v1657_v42 = vsel %vm1626_vm3, 0.0, %v8458_v61  ;;  %v8473_v24 = vsel %vm1520_vm2, %v1513_v11, %v1514_v6  ;;  %v8477_v58 = vsel %vm1520_vm2, %v1512_v44, %v1513_v11 }
 0x15c   : > { %10320 = vst [vmem:[#allocation60_spill] sm:$0xff] %v8450_v4  ;;  %10322 = vst [vmem:[#allocation62_spill] sm:$0xff] %v8458_v61  ;;  %v1451_v7 = vadd.f32 %v7988_v16, %v1412_v53  ;;  %v1516_v14 = vrot.slane %v8450_v4, 7  ;;  %v1694_v53 = vpack.c.bf16 %v1657_v42, %v1657_v42  ;;  %v8485_v3 = vpack.c.bf16 %v8450_v4, %v8431_v63 }
 0x15d   : > { %6739 = vmatmul.mubr.msk.bf16.gmra.mxu0 %vm8068_vm5, %v8428_v56  ;;  %10323 = vst [vmem:[#allocation63_spill] sm:$0xff] %v8477_v58  ;;  %v1503_v47 = vrot.slane %v8444_v59, 7  ;;  %v1572_v56 = vrot.slane %v8444_v59, 1  ;;  %v8498_v42 = vpack.c.bf16 %v8473_v24, %v8477_v58  ;;  %v8503_v55 = vsel %vm1520_vm2, %v1514_v6, %v1515_v45 }
 0x15e   : > { %v8480_v16 = vmax.f32 %v1451_v7, 0.0  ;;  %10324 = vst [vmem:[#allocation64_spill] sm:$0xff] %v8485_v3  ;;  %v8492_v44 = vsel %vm1520_vm2, %v1515_v45, %v1516_v14  ;;  %v5289_v7 = vcombine.low %v10294_v32, %v1694_v53  ;;  %v10329_v6 = vrot.slane %v7992_v28, 1 }
 0x15f   : > { %6695 = vmatmul.mubr.bf16.gmra.mxu1 %v8454_v0  ;;  %10325 = vst [vmem:[#allocation65_spill] sm:$0xff] %v8498_v42  ;;  %v1575_v0 = vrot.slane %v8283_v51, 1  ;;  %v8511_v53 = vpack.c.bf16 %v8492_v44, %v8503_v55  ;;  %v10330_v36 = vrot.slane %v8448_v57, 7  ;;  %v10342_v13 = vrot.slane %v8046_v9, 1 }
 0x160   : > { %v1517_v11 = vrot.slane %v8480_v16, 7  ;;  %6698 = vmatprep.mubr.bf16.mxu1 %v8485_v3  ;;  %v8515_v50 = vpack.c.bf16 %v8448_v57, %v8480_v16  ;;  %6742 = vmatprep.mubr.bf16.mxu0 %v5289_v7  ;;  %v10328_v3 = vrot.slane %v8006_v46, 1  ;;  %v10331_v7 = vrot.slane %v8024_v12, 1 }
 0x161   : > { %10326 = vst [vmem:[#allocation66_spill] sm:$0xff] %v8511_v53  ;;  %v10332_v46 = vrot.slane %v7999_v35, 1 }
 0x162   : > { %10327 = vst [vmem:[#allocation67_spill] sm:$0xff] %v8515_v50  ;;  %v8523_v45 = vsel %vm1589_vm6, %v10329_v6, %v10328_v3  ;;  %v8529_v32 = vsel %vm1520_vm2, %v1517_v11, %v10330_v36  ;;  %v8533_v59 = vsel %vm1520_vm2, %v1516_v14, %v1517_v11  ;;  %v1576_v3 = vrot.slane %v8310_v37, 1 }
 0x163   : > { %v8541_v58 = vsel %vm1589_vm6, %v10332_v46, %v10331_v7  ;;  %v8545_v6 = vmax.f32 %v8304_v41, 0.0  ;;  %v8549_v36 = vpack.c.bf16 %v8529_v32, %v8533_v59  ;;  %v10338_v46 = vrot.slane %v7992_v28, 1 }
 0x164   : > { %10333 = vst [vmem:[#allocation68_spill] sm:$0xff] %v8541_v58  ;;  %v10339_v7 = vrot.slane %v8281_v19, 1  ;;  %v1578_v37 = vrot.slane %v8338_v60, 1 }
 0x165   : > { %10334 = vst [vmem:[#allocation69_spill] sm:$0xff] %v8545_v6  ;;  %10335 = vst [vmem:[#allocation70_spill] sm:$0xff] %v8549_v36  ;;  %6743 = vmatmul.mubr.msk.bf16.gmra.mxu0 %vm8068_vm5, %v8498_v42  ;;  %v1625_v41 = vsel %vm1589_vm6, 0.0, %v10338_v46  ;;  %v10349_v42 = vrot.slane %v8140_v27, 1 }
 0x166   : > { %v8569_v14 = vsel %vm1589_vm6, %v10339_v7, 0.0  ;;  %v10341_v61 = vmov %v10339_v7  ;;  %6746 = vmatprep.mubr.msk.bf16.mxu0 %vm8068_vm5, %v8511_v53  ;;  %v5673_v46 = vpack.c.bf16 %v8523_v45, %v1625_v41  ;;  %v10344_v7 = vrot.slane %v8281_v19, 7 }
 0x167   : > { %10340 = vst [vmem:[#allocation71_spill] sm:$0xff] %v8569_v14  ;;  %v8577_v35 = vsel %vm1589_vm6, %v10342_v13, %v10341_v61  ;;  %v10347_v13 = vrot.slane %v8046_v9, 7  ;;  %v1579_v53 = vrot.slane %v8351_v15, 1  ;;  %v1577_v41 = vrot.slane %v8313_v39, 1  ;;  %6699 = vmatmul.mubr.bf16.gmra.mxu1 %v8515_v50 }
 0x168   : > { %10343 = vst [vmem:[#allocation72_spill] sm:$0xff] %v8577_v35  ;;  %v8589_v28 = vsel %vm1520_vm2, %v10344_v7, 0.0  ;;  %v10346_v29 = vmov %v10344_v7  ;;  %v1511_v14 = vrot.slane %v8545_v6, 7  ;;  %v1580_v19 = vrot.slane %v8545_v6, 1  ;;  %6766 = vmatprep.mubr.msk.bf16.mxu1 %vm8553_vm9, %v5673_v46 }
 0x169   : > { %10345 = vst [vmem:[#allocation73_spill] sm:$0xff] %v8589_v28  ;;  %v8597_v61 = vsel %vm1520_vm2, %v10347_v13, %v10346_v29  ;;  %v1584_v13 = vrot.slane %v8431_v63, 1  ;;  %v8620_v7 = vsel %vm1589_vm6, %v10350_v5, %v10349_v42  ;;  %v10352_v28 = vrot.slane %v8163_v8, 1 }
 0x16a   : > { %10348 = vst [vmem:[#allocation74_spill] sm:$0xff] %v8597_v61  ;;  %10351 = vst [vmem:[#allocation75_spill] sm:$0xff] %v8620_v7  ;;  %v10353_v6 = vmov %v10349_v42  ;;  %v8631_v46 = vmax.f32 %v8441_v21, 0.0  ;;  %v10355_v50 = vrot.slane %v8048_v10, 1  ;;  %v10356_v63 = vrot.slane %v8024_v12, 1 }
 0x16b   : > { %v8628_v29 = vsel %vm1589_vm6, %v10353_v6, %v10352_v28  ;;  %v8645_v42 = vsel %vm1589_vm6, %v1572_v56, 0.0  ;;  %v1585_v28 = vrot.slane %v8450_v4, 1  ;;  %v10359_v6 = vrot.slane %v8177_v48, 1 }
 0x16c   : > { %10354 = vst [vmem:[#allocation76_spill] sm:$0xff] %v8631_v46  ;;  %v8639_v61 = vsel %vm1589_vm6, %v10356_v63, %v10355_v50  ;;  %10358 = vst [vmem:[#allocation78_spill] sm:$0xff] %v8645_v42  ;;  %v8657_v50 = vsel %vm1520_vm2, %v1503_v47, 0.0  ;;  %v10361_v63 = vld [vmem:[#allocation16_spill] sm:$0xff]  ;;  %v8663_v12 = vpack.c.bf16 %v8210_v43, %v8248_v26  ;;  %v10363_v4 = vrot.slane %v8177_v48, 7  ;;  %v10368_v42 = vld [vmem:[#allocation21_spill] sm:$0xff] }
 0x16d   : > { %10357 = vst [vmem:[#allocation77_spill] sm:$0xff] %v8639_v61  ;;  %v8653_v27 = vsel %vm1589_vm6, %v10359_v6, %v1572_v56  ;;  %10360 = vst [vmem:[#allocation79_spill] sm:$0xff] %v8657_v50  ;;  %v5769_v5 = vpack.c.bf16 %v10361_v63, %v8031_v31  ;;  %6747 = vmatmul.mubr.msk.bf16.gmra.mxu0 %vm8068_vm5, %v8549_v36  ;;  %v8678_v31 = vpack.c.bf16 %v8639_v61, %v8541_v58 }
 0x16e   : > { %10362 = vst [vmem:[#allocation16_spill] sm:$0xff] %v8663_v12  ;;  %v8671_v56 = vsel %vm1520_vm2, %v10363_v4, %v1503_v47  ;;  %v10365_v6 = vrot.slane %v8046_v9, 1  ;;  %v10366_v63 = vrot.slane %v8048_v10, 1  ;;  %v7297_v4 = vld [vmem:[%s10134_s5 + $0x130] sm:$0xff]   ;;  %v1565_v9 = vrot.slane %v10368_v42, 1 }
 0x16f   : > { %10364 = vst [vmem:[#allocation80_spill] sm:$0xff] %v8678_v31  ;;  %6814 = vmatprep.mubr.msk.bf16.mxu0 %vm8068_vm5, %v5769_v5  ;;  %v8700_v43 = vsel %vm1589_vm6, %v1575_v0, %v1576_v3  ;;  %v8710_v47 = vsel %vm1589_vm6, %v1577_v41, %v1578_v37  ;;  %6767 = vmatmul.mubr.msk.bf16.vlgmr.msra.gmra.mxu1 %vm8553_vm9, %v8663_v12  ;;  %v8757_v50 = vsel %vm1520_vm2, %v1511_v14, 0.0 }
 0x170   : > { %v8686_v21 = vsel %vm1589_vm6, %v10366_v63, %v10365_v6  ;;  %10369 = vst [vmem:[#allocation82_spill] sm:$0xff] %v8700_v43  ;;  %v10370_v6 = vrot.slane %v8290_v20, 1  ;;  %10371 = vst [vmem:[#allocation83_spill] sm:$0xff] %v8710_v47  ;;  %v8721_v36 = vsel %vm1589_vm6, %v1576_v3, %v1577_v41  ;;  %6770 = vmatprep.mubr.msk.bf16.mxu1 %vm8553_vm9, %v8678_v31  ;;  %6847 = vmatpush3.bf16.msra.mxu1 %v8278_v54  ;;  %v7298_v54 = vld [vmem:[%s10134_s5 + $0x128] sm:$0xff]   ;;  %v10380_v3 = vld [vmem:[#allocation22_spill] sm:$0xff] }
 0x171   : > { %10367 = vst [vmem:[#allocation81_spill] sm:$0xff] %v8686_v21  ;;  %10372 = vst [vmem:[#allocation84_spill] sm:$0xff] %v8721_v36  ;;  %v8733_v12 = vpack.c.bf16 %v8710_v47, %v8721_v36  ;;  %v8739_v41 = vsel %vm1589_vm6, %v1580_v19, 0.0  ;;  %6848 = vmatprep.subr.bf16.mxu1 %v7297_v4  ;;  %v8751_v31 = vsel %vm1589_vm6, %v1578_v37, %v1579_v53  ;;  %v10379_v37 = vrot.slane %v8351_v15, 7 }
 0x172   : > { %v8706_v63 = vsel %vm1589_vm6, %v10370_v6, %v1575_v0  ;;  %10373 = vst [vmem:[#allocation85_spill] sm:$0xff] %v8739_v41  ;;  %v8743_v6 = vsel %vm1589_vm6, %v1579_v53, %v1580_v19  ;;  %v1588_v0 = vrot.slane %v8631_v46, 1  ;;  %10375 = vst [vmem:[#allocation87_spill] sm:$0xff] %v8751_v31  ;;  %v1519_v19 = vrot.slane %v8631_v46, 7  ;;  %v10381_v41 = vld [vmem:[#allocation26_spill] sm:$0xff] }
 0x173   : > { %v8717_v5 = vpack.c.bf16 %v8700_v43, %v8706_v63  ;;  %10374 = vst [vmem:[#allocation86_spill] sm:$0xff] %v8743_v6  ;;  %10376 = vst [vmem:[#allocation88_spill] sm:$0xff] %v8757_v50  ;;  %v10377_v43 = vrot.slane %v8128_v62, 1  ;;  %v8768_v42 = vpack.c.bf16 %v8743_v6, %v8751_v31  ;;  %v8774_v53 = vsel %vm1520_vm2, %v10379_v37, %v1511_v14 }
 0x174   : > { %v5779_v58 = vpack.c.bf16 %v10381_v41, %v10380_v3  ;;  %v8780_v61 = vpack.c.bf16 %v8577_v35, %v8686_v21  ;;  %v1616_v14 = vsel %vm1589_vm6, 0.0, %v1565_v9  ;;  %6849 = vmatpush3.bf16.msra.mxu1 %v7297_v4  ;;  %v10383_v3 = vrot.slane %v8413_v22, 1 }
 0x175   : > { %v8764_v36 = vsel %vm1589_vm6, %v1565_v9, %v10377_v43  ;;  %v7302_v43 = vld [vmem:[%s10134_s5 + $0x170] sm:$0xff]   ;;  %v10384_v37 = vrot.slane %v8480_v16, 1  ;;  %v8805_v6 = vsel %vm1589_vm6, %v1584_v13, %v1585_v28  ;;  %v10386_v9 = vpack.c.bf16 %v8091_v52, %v8040_v40  ;;  %6850 = vmatprep.subr.bf16.mxu1 %v7298_v54 }
 0x176   : > { %10378 = vst [vmem:[#allocation89_spill] sm:$0xff] %v8764_v36  ;;  %10382 = vst [vmem:[#allocation22_spill] sm:$0xff] %v8780_v61  ;;  %v8795_v41 = vsel %vm1589_vm6, %v10383_v3, %v1584_v13  ;;  %v5693_v4 = vpack.c.bf16 %v8764_v36, %v1616_v14  ;;  %v7299_v3 = vld [vmem:[%s10134_s5 + $0x120] sm:$0xff]   ;;  %v8824_v40 = vsel %vm1589_vm6, %v1588_v0, 0.0  ;;  %v10388_v14 = vrot.slane %v8448_v57, 1 }
 0x177   : > { %v8801_v35 = vsel %vm1589_vm6, %v1585_v28, %v10384_v37  ;;  %10385 = vst [vmem:[#allocation26_spill] sm:$0xff] %v8805_v6  ;;  %6815 = vmatmul.mubr.msk.bf16.vlgmr.msra.gmra.mxu0 %vm8068_vm5, %v10386_v9  ;;  %10387 = vst [vmem:[#allocation90_spill] sm:$0xff] %v8824_v40  ;;  %v8841_v10 = vsel %vm1520_vm2, %v1519_v19, 0.0  ;;  %6771 = vmatmul.mubr.msk.bf16.gmra.mxu1 %vm8553_vm9, %v8780_v61  ;;  %v10394_v28 = vld [vmem:[#allocation41_spill] sm:$0xff]  ;;  %v10395_v50 = vrot.slane %v8480_v16, 1  ;;  %v10401_v40 = vld [vmem:[#allocation34_spill] sm:$0xff] }
 0x178   : > { %v8818_v37 = vpack.c.bf16 %v8801_v35, %v8805_v6  ;;  %6818 = vmatprep.mubr.msk.bf16.mxu0 %vm8068_vm5, %v5779_v58  ;;  %6895 = vmatpush3.bf16.msra.mxu0 %v8365_v17  ;;  %v8837_v9 = vsel %vm1589_vm6, %v10388_v14, %v1588_v0  ;;  %10390 = vst [vmem:[#allocation92_spill] sm:$0xff] %v8841_v10  ;;  %v10391_v17 = vrot.slane %v8134_v2, 1  ;;  %v10392_v58 = vrot.slane %v8128_v62, 1  ;;  %v7304_v0 = vld [vmem:[%s10134_s5 + $0x168] sm:$0xff]   ;;  %v7307_v6 = vld [vmem:[%s10134_s5 + $0x158] sm:$0xff]  }
 0x179   : > { %10389 = vst [vmem:[#allocation91_spill] sm:$0xff] %v8837_v9  ;;  %v1573_v52 = vrot.slane %v10394_v28, 1  ;;  %6896 = vmatprep.subr.bf16.mxu0 %v7302_v43  ;;  %v8864_v61 = vsel %vm1589_vm6, %v10395_v50, %v10388_v14  ;;  %6774 = vmatprep.mubr.msk.bf16.mxu1 %vm8553_vm9, %v5693_v4  ;;  %v10397_v14 = vrot.slane %v8290_v20, 1  ;;  %v10399_v50 = vrot.slane %v8163_v8, 1  ;;  %v10410_v10 = vld [vmem:[#allocation55_spill] sm:$0xff] }
 0x17a   : > { %v8852_v13 = vsel %vm1589_vm6, %v10392_v58, %v10391_v17  ;;  %6851 = vmatpush3.bf16.msra.mxu1 %v7298_v54  ;;  %v8872_v17 = vpack.c.bf16 %v8837_v9, %v8864_v61  ;;  %v10396_v58 = vrot.slane %v8448_v57, 7  ;;  %v7300_v54 = vld [vmem:[%s10134_s5 + $0x118] sm:$0xff]   ;;  %v10413_v31 = vrot.slane %v8177_v48, 1  ;;  %v10418_v57 = vld [vmem:[#allocation43_spill] sm:$0xff] }
 0x17b   : > { %10393 = vst [vmem:[#allocation93_spill] sm:$0xff] %v8852_v13  ;;  %6852 = vmatprep.subr.bf16.mxu1 %v7299_v3  ;;  %v8886_v4 = vsel %vm1589_vm6, %v1573_v52, %v10397_v14  ;;  %v10400_v14 = vld [vmem:[#allocation32_spill] sm:$0xff]  ;;  %v8907_v62 = vpack.c.bf16 %v8620_v7, %v8852_v13  ;;  %v10404_v7 = vld [vmem:[#allocation74_spill] sm:$0xff]  ;;  %v10405_v13 = vld [vmem:[#allocation25_spill] sm:$0xff]  ;;  %v10414_v47 = vrot.slane %v8190_v23, 1 }
 0x17c   : > { %v8878_v2 = vsel %vm1520_vm2, %v10396_v58, %v1519_v19  ;;  %v10398_v58 = vrot.slane %v8190_v23, 1  ;;  %6897 = vmatpush3.bf16.msra.mxu0 %v7302_v43  ;;  %v5789_v36 = vpack.c.bf16 %v10401_v40, %v10400_v14  ;;  %v7305_v19 = vld [vmem:[%s10134_s5 + $0x160] sm:$0xff]   ;;  %v10406_v21 = vpack.c.bf16 %v10404_v7, %v10405_v13  ;;  %v10408_v14 = vld [vmem:[#allocation69_spill] sm:$0xff]  ;;  %v10412_v7 = vld [vmem:[#allocation60_spill] sm:$0xff] }
 0x17d   : > { %10402 = vst [vmem:[#allocation41_spill] sm:$0xff] %v8907_v62  ;;  %6898 = vmatprep.subr.bf16.mxu0 %v7304_v0  ;;  %v10403_v40 = vld [vmem:[#allocation46_spill] sm:$0xff]  ;;  %v8968_v13 = vsel %vm1589_vm6, %v10414_v47, %v10413_v31  ;;  %v10416_v43 = vld [vmem:[#allocation39_spill] sm:$0xff]  ;;  %v1607_v47 = vsel %vm1589_vm6, 0.0, %v1573_v52  ;;  %v10419_v52 = vld [vmem:[#allocation48_spill] sm:$0xff] }
 0x17e   : > { %v8901_v9 = vsel %vm1589_vm6, %v10399_v50, %v10398_v58  ;;  %6853 = vmatpush3.bf16.msra.mxu1 %v7299_v3  ;;  %v7303_v58 = vld [vmem:[%s10134_s5 + $0x110] sm:$0xff]   ;;  %v8981_v31 = vpack.c.bf16 %v8653_v27, %v8968_v13 }
 0x17f   : > { %6819 = vmatmul.mubr.msk.bf16.gmra.mxu0 %vm8068_vm5, %v10406_v21  ;;  %v8931_v3 = vpack.c.bf16 %v8901_v9, %v8628_v29  ;;  %6854 = vmatprep.subr.bf16.mxu1 %v7300_v54  ;;  %v10409_v50 = vld [vmem:[#allocation52_spill] sm:$0xff]  ;;  %v10411_v21 = vld [vmem:[#allocation57_spill] sm:$0xff] }
 0x180   : > { %6822 = vmatprep.mubr.msk.bf16.mxu0 %vm8068_vm5, %v5789_v36  ;;  %6899 = vmatpush3.bf16.msra.mxu0 %v7304_v0  ;;  %v7306_v0 = vld [vmem:[%s10134_s5 + $0x108] sm:$0xff]   ;;  %v10415_v36 = vld [vmem:[#allocation33_spill] sm:$0xff] }
 0x181   : > { %10407 = vst [vmem:[#allocation32_spill] sm:$0xff] %v8931_v3  ;;  %6775 = vmatmul.mubr.msk.bf16.gmra.mxu1 %vm8553_vm9, %v8907_v62  ;;  %6900 = vmatprep.subr.bf16.mxu0 %v7305_v19  ;;  %v5794_v62 = vpack.c.bf16 %v10416_v43, %v10415_v36  ;;  %v10420_v43 = vld [vmem:[#allocation49_spill] sm:$0xff]  ;;  %v1582_v36 = vrot.slane %v10410_v10, 1 }
 0x182   : > { %6778 = vmatprep.mubr.msk.bf16.mxu1 %vm8553_vm9, %v8931_v3  ;;  %6855 = vmatpush3.bf16.msra.mxu1 %v7300_v54  ;;  %v7308_v54 = vld [vmem:[%s10134_s5 + $0x150] sm:$0xff]   ;;  %v10417_v3 = vld [vmem:[#allocation38_spill] sm:$0xff] }
 0x183   : > { %6856 = vmatprep.subr.bf16.mxu1 %v7303_v58  ;;  %v5799_v46 = vpack.c.bf16 %v10418_v57, %v10417_v3  ;;  %v5713_v57 = vpack.c.bf16 %v8886_v4, %v1607_v47  ;;  %v10421_v3 = vpack.c.bf16 %v8671_v56, %v8269_v33  ;;  %v1581_v33 = vrot.slane %v10409_v50, 1 }
 0x184   : > { %6901 = vmatpush3.bf16.msra.mxu0 %v7305_v19  ;;  %v7309_v19 = vld [vmem:[%s10134_s5 + $0x100] sm:$0xff]   ;;  %v10422_v47 = vpack.c.bf16 %v8386_v34, %v8347_v49  ;;  %v10424_v49 = vrot.slane %v8413_v22, 1 }
 0x185   : > { %6902 = vmatprep.subr.bf16.mxu0 %v7307_v6 }
 0x186   : > { %6857 = vmatpush3.bf16.msra.mxu1 %v7303_v58  ;;  %v5809_v58 = vpack.c.bf16 %v10420_v43, %v10419_v52  ;;  %v9051_v34 = vsel %vm1589_vm6, %v1582_v36, %v10424_v49  ;;  %v10427_v52 = vpack.c.bf16 %v8774_v53, %v8409_v38  ;;  %v10428_v38 = vpack.c.bf16 %v8503_v55, %v8473_v24 }
 0x187   : > { %6823 = vmatmul.mubr.msk.bf16.gmra.mxu0 %vm8068_vm5, %v5794_v62  ;;  %6858 = vmatprep.subr.bf16.mxu1 %v7306_v0  ;;  %v7310_v62 = vld [vmem:[%s10134_s5 + $0x148] sm:$0xff]   ;;  %v9062_v43 = vpack.c.bf16 %v8795_v41, %v9051_v34  ;;  %v10432_v55 = vpack.c.bf16 %v8878_v2, %v8529_v32  ;;  %v10433_v24 = vpack.c.bf16 %v8248_v26, %v8523_v45  ;;  %v7318_v26 = vld [vmem:[%s10134_s5 + $0x1f0] sm:$0xff]   ;;  %v10439_v45 = vld [vmem:[#allocation77_spill] sm:$0xff] }
 0x188   : > { %6826 = vmatprep.mubr.msk.bf16.mxu0 %vm8068_vm5, %v5799_v46  ;;  %6903 = vmatpush3.bf16.msra.mxu0 %v7307_v6  ;;  %v7312_v46 = vld [vmem:[%s10134_s5 + $0x1b8] sm:$0xff]   ;;  %v7311_v6 = vld [vmem:[%s10134_s5 + $0x140] sm:$0xff]   ;;  %v7314_v32 = vld [vmem:[%s10134_s5 + $0x1a8] sm:$0xff]  }
 0x189   : > { %6779 = vmatmul.mubr.msk.bf16.gmra.mxu1 %vm8553_vm9, %v8981_v31  ;;  %6904 = vmatprep.subr.bf16.mxu0 %v7308_v54 }
 0x18a   : > { %6782 = vmatprep.mubr.msk.bf16.mxu1 %vm8553_vm9, %v5713_v57  ;;  %6859 = vmatpush3.bf16.msra.mxu1 %v7306_v0  ;;  %v7317_v0 = vld [vmem:[%s10134_s5 + $0x1f8] sm:$0xff]   ;;  %v10423_v57 = vpack.c.bf16 %v8422_v1, %v8380_v18  ;;  %v10426_v18 = vld [vmem:[#allocation63_spill] sm:$0xff] }
 0x18b   : > { %6860 = vmatprep.subr.bf16.mxu1 %v7309_v19 }
 0x18c   : > { %6905 = vmatpush3.bf16.msra.mxu0 %v7308_v54  ;;  %v9027_v54 = vsel %vm1589_vm6, %v1581_v33, %v1582_v36  ;;  %v10431_v36 = vld [vmem:[#allocation13_spill] sm:$0xff] }
 0x18d   : > { %6906 = vmatprep.subr.bf16.mxu0 %v7310_v62 }
 0x18e   : > { %6861 = vmatpush3.bf16.msra.mxu1 %v7309_v19  ;;  %v1598_v19 = vsel %vm1589_vm6, 0.0, %v1581_v33 }
 0x18f   : > { %6827 = vmatmul.mubr.msk.bf16.gmra.mxu0 %vm8068_vm5, %v10421_v3  ;;  %6942 = vmatprep.subr.bf16.mxu1 %v7312_v46  ;;  %v10430_v3 = vld [vmem:[#allocation10_spill] sm:$0xff] }
 0x190   : > { %6830 = vmatprep.mubr.msk.bf16.mxu0 %vm8068_vm5, %v5809_v58  ;;  %6907 = vmatpush3.bf16.msra.mxu0 %v7310_v62  ;;  %v5733_v62 = vpack.c.bf16 %v9027_v54, %v1598_v19  ;;  %v10429_v58 = vpack.c.bf16 %v8533_v59, %v8492_v44  ;;  %v5846_v33 = vpack.c.bf16 %v10431_v36, %v10430_v3  ;;  %v7313_v59 = vld [vmem:[%s10134_s5 + $0x1b0] sm:$0xff]   ;;  %v10434_v44 = vld [vmem:[#allocation15_spill] sm:$0xff]  ;;  %v7315_v36 = vld [vmem:[%s10134_s5 + $0x1a0] sm:$0xff]  }
 0x191   : > { %6783 = vmatmul.mubr.msk.bf16.gmra.mxu1 %vm8553_vm9, %v8717_v5  ;;  %6908 = vmatprep.subr.bf16.mxu0 %v7311_v6 }
 0x192   : > { %6786 = vmatprep.mubr.msk.bf16.mxu1 %vm8553_vm9, %v8733_v12 }
 0x194   : > { %6909 = vmatpush3.bf16.msra.mxu0 %v7311_v6  ;;  %v10425_v6 = vld [vmem:[#allocation62_spill] sm:$0xff] }
 0x195   : > { %6990 = vmatprep.subr.bf16.mxu0 %v7317_v0  ;;  %v5829_v1 = vpack.c.bf16 %v10426_v18, %v10425_v6  ;;  %v10440_v6 = vld [vmem:[#allocation81_spill] sm:$0xff] }
 0x196   : > { %v5891_v18 = vpack.c.bf16 %v10440_v6, %v10439_v45  ;;  %v10454_v6 = vld [vmem:[#allocation30_spill] sm:$0xff] }
 0x197   : > { %6831 = vmatmul.mubr.msk.bf16.gmra.mxu0 %vm8068_vm5, %v10422_v47  ;;  %v10435_v47 = vld [vmem:[#allocation18_spill] sm:$0xff] }
 0x198   : > { %6834 = vmatprep.mubr.msk.bf16.mxu0 %vm8068_vm5, %v10423_v57  ;;  %v5848_v19 = vpack.c.bf16 %v10435_v47, %v10434_v44  ;;  %v10436_v57 = vld [vmem:[#allocation12_spill] sm:$0xff]  ;;  %v7316_v44 = vld [vmem:[%s10134_s5 + $0x198] sm:$0xff]   ;;  %v7321_v47 = vld [vmem:[%s10134_s5 + $0x1e0] sm:$0xff]  }
 0x199   : > { %6787 = vmatmul.mubr.msk.bf16.gmra.mxu1 %vm8553_vm9, %v8768_v42 }
 0x19a   : > { %6790 = vmatprep.mubr.msk.bf16.mxu1 %vm8553_vm9, %v5733_v62  ;;  %v10437_v62 = vld [vmem:[#allocation11_spill] sm:$0xff] }
 0x19b   : > { %v10438_v49 = vpack.c.bf16 %v10436_v57, %v10437_v62  ;;  %v10450_v62 = vld [vmem:[#allocation71_spill] sm:$0xff] }
 0x19f   : > { %6835 = vmatmul.mubr.msk.bf16.gmra.mxu0 %vm8068_vm5, %v10427_v52  ;;  %v10442_v52 = vld [vmem:[#allocation36_spill] sm:$0xff] }
 0x1a0   : > { %6838 = vmatprep.mubr.msk.bf16.mxu0 %vm8068_vm5, %v5829_v1  ;;  %v10441_v1 = vld [vmem:[#allocation68_spill] sm:$0xff] }
 0x1a1   : > { %6791 = vmatmul.mubr.msk.bf16.gmra.mxu1 %vm8553_vm9, %v9062_v43 }
 0x1a2   : > { %6794 = vmatprep.mubr.msk.bf16.mxu1 %vm8553_vm9, %v8818_v37 }
 0x1a7   : > { %6839 = vmatmul.mubr.msk.bf16.gmra.mxu0 %vm8068_vm5, %v10428_v38  ;;  %v10443_v38 = vpack.c.bf16 %v10441_v1, %v10442_v52  ;;  %v7323_v1 = vld [vmem:[%s10134_s5 + $0x1d8] sm:$0xff]   ;;  %v10455_v52 = vpack.c.bf16 %v8190_v23, %v8163_v8  ;;  %v10458_v23 = vld [vmem:[#allocation58_spill] sm:$0xff] }
 0x1a8   : > { %6842 = vmatprep.mubr.msk.bf16.mxu0 %vm8068_vm5, %v10429_v58  ;;  %v10445_v58 = vld [vmem:[#allocation44_spill] sm:$0xff] }
 0x1a9   : > { %6795 = vmatmul.mubr.msk.bf16.gmra.mxu1 %vm8553_vm9, %v8872_v17 }
 0x1aa   : > { %6862 = vmatprep.mubr.bf16.mxu1 %v5846_v33  ;;  %v10446_v33 = vld [vmem:[#allocation21_spill] sm:$0xff] }
 0x1af   : > { %6843 = vmatmul.mubr.msk.bf16.gmra.mxu0 %vm8068_vm5, %v10432_v55  ;;  %v10447_v55 = vld [vmem:[#allocation27_spill] sm:$0xff] }
 0x1b0   : > { %6910 = vmatprep.mubr.msk.bf16.mxu0 %vm8553_vm9, %v10433_v24  ;;  %v7320_v24 = vld [vmem:[%s10134_s5 + $0x1e8] sm:$0xff]  }
 0x1b1   : > { %6863 = vmatmul.mubr.bf16.vlgmr.msra.gmra.mxu1 %v10438_v49  ;;  %v10451_v49 = vld [vmem:[#allocation72_spill] sm:$0xff] }
 0x1b2   : > { %6866 = vmatprep.mubr.bf16.mxu1 %v5848_v19  ;;  %6943 = vmatpush3.bf16.msra.mxu1 %v7312_v46  ;;  %v10444_v46 = vld [vmem:[#allocation17_spill] sm:$0xff]  ;;  %v10452_v45 = vpack.c.bf16 %v10450_v62, %v10451_v49 }
 0x1b3   : > { %6944 = vmatprep.subr.bf16.mxu1 %v7313_v59  ;;  %v5849_v3 = vpack.c.bf16 %v10445_v58, %v10444_v46  ;;  %v10449_v19 = vld [vmem:[#allocation93_spill] sm:$0xff]  ;;  %v7324_v46 = vld [vmem:[%s10134_s5 + $0x1d0] sm:$0xff]  }
 0x1b6   : > { %6945 = vmatpush3.bf16.msra.mxu1 %v7313_v59  ;;  %v5850_v59 = vpack.c.bf16 %v10447_v55, %v10446_v33  ;;  %v5853_v33 = vpack.c.bf16 %v10458_v23, %v8177_v48  ;;  %v7325_v55 = vld [vmem:[%s10134_s5 + $0x180] sm:$0xff]   ;;  %v7328_v48 = vld [vmem:[%s10134_s5 + $0x238] sm:$0xff]  }
 0x1b7   : > { %6911 = vmatmul.mubr.msk.bf16.vlgmr.msra.gmra.mxu0 %vm8553_vm9, %v10443_v38  ;;  %6946 = vmatprep.subr.bf16.mxu1 %v7314_v32  ;;  %v7322_v38 = vld [vmem:[%s10134_s5 + $0x188] sm:$0xff]  }
 0x1b8   : > { %6914 = vmatprep.mubr.msk.bf16.mxu0 %vm8553_vm9, %v5891_v18  ;;  %6991 = vmatpush3.bf16.msra.mxu0 %v7317_v0  ;;  %v10448_v0 = vld [vmem:[#allocation89_spill] sm:$0xff] }
 0x1b9   : > { %6867 = vmatmul.mubr.bf16.gmra.mxu1 %v5849_v3  ;;  %6992 = vmatprep.subr.bf16.mxu0 %v7318_v26  ;;  %v5901_v57 = vpack.c.bf16 %v10449_v19, %v10448_v0  ;;  %v5911_v3 = vpack.c.bf16 %v8968_v13, %v8901_v9  ;;  %v10459_v9 = vpack.c.bf16 %v8290_v20, %v10394_v28  ;;  %v7327_v13 = vld [vmem:[%s10134_s5 + $0x1c0] sm:$0xff]  }
 0x1ba   : > { %6870 = vmatprep.mubr.bf16.mxu1 %v5850_v59  ;;  %6947 = vmatpush3.bf16.msra.mxu1 %v7314_v32  ;;  %v10453_v32 = vld [vmem:[#allocation28_spill] sm:$0xff]  ;;  %v10460_v59 = vld [vmem:[#allocation78_spill] sm:$0xff]  ;;  %v10462_v20 = vpack.c.bf16 %v8706_v63, %v8886_v4  ;;  %v10463_v28 = vpack.c.bf16 %v10403_v40, %v8283_v51  ;;  %v10468_v63 = vld [vmem:[#allocation87_spill] sm:$0xff]  ;;  %v10471_v51 = vpack.c.bf16 %v10408_v14, %v8351_v15 }
 0x1bb   : > { %6948 = vmatprep.subr.bf16.mxu1 %v7315_v36  ;;  %v5851_v18 = vpack.c.bf16 %v10454_v6, %v10453_v32  ;;  %v10469_v4 = vld [vmem:[#allocation83_spill] sm:$0xff]  ;;  %v10473_v40 = vld [vmem:[#allocation85_spill] sm:$0xff]  ;;  %v10476_v15 = vpack.c.bf16 %v10411_v21, %v8413_v22 }
 0x1bc   : > { %6993 = vmatpush3.bf16.msra.mxu0 %v7318_v26  ;;  %v7319_v26 = vld [vmem:[%s10134_s5 + $0x190] sm:$0xff]   ;;  %v10470_v19 = vpack.c.bf16 %v10468_v63, %v10469_v4  ;;  %v10482_v32 = vld [vmem:[#allocation59_spill] sm:$0xff]  ;;  %v7332_v63 = vld [vmem:[%s10134_s5 + $0x218] sm:$0xff]  }
 0x1bd   : > { %6994 = vmatprep.subr.bf16.mxu0 %v7320_v24  ;;  %v10484_v21 = vld [vmem:[#allocation19_spill] sm:$0xff] }
 0x1be   : > { %6949 = vmatpush3.bf16.msra.mxu1 %v7315_v36  ;;  %v10456_v36 = vld [vmem:[#allocation75_spill] sm:$0xff] }
 0x1bf   : > { %6915 = vmatmul.mubr.msk.bf16.gmra.mxu0 %vm8553_vm9, %v10452_v45  ;;  %6950 = vmatprep.subr.bf16.mxu1 %v7316_v44  ;;  %v10457_v8 = vpack.c.bf16 %v8628_v29, %v10456_v36  ;;  %v7326_v29 = vld [vmem:[%s10134_s5 + $0x1c8] sm:$0xff]   ;;  %v10481_v45 = vld [vmem:[#allocation76_spill] sm:$0xff] }
 0x1c0   : > { %6918 = vmatprep.mubr.msk.bf16.mxu0 %vm8553_vm9, %v5901_v57  ;;  %6995 = vmatpush3.bf16.msra.mxu0 %v7320_v24  ;;  %v10461_v24 = vpack.c.bf16 %v10460_v59, %v8653_v27  ;;  %v10465_v27 = vld [vmem:[#allocation84_spill] sm:$0xff]  ;;  %v10474_v57 = vld [vmem:[#allocation86_spill] sm:$0xff]  ;;  %v10483_v22 = vpack.c.bf16 %v10481_v45, %v10482_v32 }
 0x1c1   : > { %6871 = vmatmul.mubr.bf16.gmra.mxu1 %v5851_v18  ;;  %6996 = vmatprep.subr.bf16.mxu0 %v7321_v47  ;;  %v10475_v49 = vpack.c.bf16 %v10473_v40, %v10474_v57  ;;  %v10499_v32 = vld [vmem:[#allocation42_spill] sm:$0xff] }
 0x1c2   : > { %6874 = vmatprep.mubr.bf16.mxu1 %v10455_v52  ;;  %6951 = vmatpush3.bf16.msra.mxu1 %v7316_v44  ;;  %v10464_v44 = vpack.c.bf16 %v8338_v60, %v8313_v39  ;;  %v10472_v60 = vpack.c.bf16 %v10410_v10, %v10409_v50  ;;  %v5941_v39 = vpack.c.bf16 %v9051_v34, %v9027_v54  ;;  %v10478_v50 = vld [vmem:[#allocation26_spill] sm:$0xff] }
 0x1c3   : > { %6952 = vmatprep.subr.bf16.mxu1 %v7319_v26  ;;  %v10477_v10 = vpack.c.bf16 %v8480_v16, %v10412_v7  ;;  %v10479_v54 = vpack.c.bf16 %v10478_v50, %v8795_v41  ;;  %v10480_v34 = vpack.c.bf16 %v8864_v61, %v8801_v35  ;;  %v10485_v7 = vld [vmem:[#allocation90_spill] sm:$0xff]  ;;  %v10486_v41 = vld [vmem:[#allocation91_spill] sm:$0xff]  ;;  %v7329_v35 = vld [vmem:[%s10134_s5 + $0x230] sm:$0xff]  }
 0x1c4   : > { %6997 = vmatpush3.bf16.msra.mxu0 %v7321_v47  ;;  %v10466_v47 = vld [vmem:[#allocation82_spill] sm:$0xff]  ;;  %v10487_v6 = vpack.c.bf16 %v10485_v7, %v10486_v41 }
 0x1c5   : > { %6998 = vmatprep.subr.bf16.mxu0 %v7323_v1  ;;  %v10467_v0 = vpack.c.bf16 %v10465_v27, %v10466_v47  ;;  %v10488_v61 = vld [vmem:[#allocation14_spill] sm:$0xff]  ;;  %v10496_v27 = vld [vmem:[#allocation37_spill] sm:$0xff] }
 0x1c6   : > { %6953 = vmatpush3.bf16.msra.mxu1 %v7319_v26  ;;  %v10489_v26 = vld [vmem:[#allocation23_spill] sm:$0xff] }
 0x1c7   : > { %6919 = vmatmul.mubr.msk.bf16.gmra.mxu0 %vm8553_vm9, %v10457_v8  ;;  %6954 = vmatprep.subr.bf16.mxu1 %v7322_v38  ;;  %v10491_v8 = vld [vmem:[#allocation20_spill] sm:$0xff] }
 0x1c8   : > { %6922 = vmatprep.mubr.msk.bf16.mxu0 %vm8553_vm9, %v5911_v3  ;;  %6999 = vmatpush3.bf16.msra.mxu0 %v7323_v1  ;;  %v10490_v1 = vld [vmem:[#allocation29_spill] sm:$0xff] }
 0x1c9   : > { %6875 = vmatmul.mubr.bf16.gmra.mxu1 %v5853_v33  ;;  %7000 = vmatprep.subr.bf16.mxu0 %v7324_v46  ;;  %v7331_v33 = vld [vmem:[%s10134_s5 + $0x220] sm:$0xff]  }
 0x1ca   : > { %6878 = vmatprep.mubr.bf16.mxu1 %v10459_v9  ;;  %6955 = vmatpush3.bf16.msra.mxu1 %v7322_v38  ;;  %v7330_v38 = vld [vmem:[%s10134_s5 + $0x228] sm:$0xff]  }
 0x1cb   : > { %6956 = vmatprep.subr.bf16.mxu1 %v7325_v55 }
 0x1cc   : > { %7001 = vmatpush3.bf16.msra.mxu0 %v7324_v46 }
 0x1cd   : > { %7002 = vmatprep.subr.bf16.mxu0 %v7326_v29 }
 0x1ce   : > { %6957 = vmatpush3.bf16.msra.mxu1 %v7325_v55  ;;  %v10492_v55 = vld [vmem:[#allocation24_spill] sm:$0xff] }
 0x1cf   : > { %6923 = vmatmul.mubr.msk.bf16.gmra.mxu0 %vm8553_vm9, %v10461_v24  ;;  %7038 = vmatprep.subr.bf16.mxu1 %v7328_v48  ;;  %v10494_v24 = vld [vmem:[#allocation74_spill] sm:$0xff] }
 0x1d0   : > { %6926 = vmatprep.mubr.msk.bf16.mxu0 %vm8553_vm9, %v10462_v20  ;;  %7003 = vmatpush3.bf16.msra.mxu0 %v7326_v29 }
 0x1d1   : > { %6879 = vmatmul.mubr.bf16.gmra.mxu1 %v10463_v28  ;;  %7004 = vmatprep.subr.bf16.mxu0 %v7327_v13  ;;  %v1711_v28 = vpack.c.bf16 %v10445_v58, %v10445_v58 }
 0x1d2   : > { %6882 = vmatprep.mubr.bf16.mxu1 %v10464_v44 }
 0x1d4   : > { %7005 = vmatpush3.bf16.msra.mxu0 %v7327_v13  ;;  %v10493_v13 = vld [vmem:[#allocation73_spill] sm:$0xff] }
 0x1d5   : > { %v10495_v20 = vpack.c.bf16 %v10493_v13, %v10494_v24  ;;  %v10505_v24 = vld [vmem:[#allocation51_spill] sm:$0xff] }
 0x1d7   : > { %6927 = vmatmul.mubr.msk.bf16.gmra.mxu0 %vm8553_vm9, %v10467_v0 }
 0x1d8   : > { %6930 = vmatprep.mubr.msk.bf16.mxu0 %vm8553_vm9, %v10470_v19 }
 0x1d9   : > { %6883 = vmatmul.mubr.bf16.gmra.mxu1 %v10471_v51  ;;  %v10497_v51 = vmov 0.0|0.0  }
 0x1da   : > { %6886 = vmatprep.mubr.bf16.mxu1 %v10472_v60  ;;  %v5505_v60 = vcombine.low %v1711_v28, %v10497_v51 }
 0x1df   : > { %6931 = vmatmul.mubr.msk.bf16.gmra.mxu0 %vm8553_vm9, %v10475_v49 }
 0x1e0   : > { %6934 = vmatprep.mubr.msk.bf16.mxu0 %vm8553_vm9, %v5941_v39 }
 0x1e1   : > { %6887 = vmatmul.mubr.bf16.gmra.mxu1 %v10476_v15  ;;  %v7333_v15 = vld [vmem:[%s10134_s5 + $0x210] sm:$0xff]  }
 0x1e2   : > { %6890 = vmatprep.mubr.bf16.mxu1 %v10477_v10  ;;  %v10498_v10 = vld [vmem:[#allocation31_spill] sm:$0xff] }
 0x1e7   : > { %6935 = vmatmul.mubr.msk.bf16.gmra.mxu0 %vm8553_vm9, %v10479_v54 }
 0x1e8   : > { %6938 = vmatprep.mubr.msk.bf16.mxu0 %vm8553_vm9, %v10480_v34 }
 0x1e9   : > { %6891 = vmatmul.mubr.bf16.gmra.mxu1 %v10483_v22 }
 0x1ea   : > { %6958 = vmatprep.mubr.msk.bf16.mxu1 %vm8068_vm5, %v10484_v21  ;;  %v10500_v21 = vld [vmem:[#allocation45_spill] sm:$0xff] }
 0x1eb   : > { %v6672_v16 = vpop.f32.mrf.mxu1 }
 0x1ed   : > { %v2018_v18 = vpop.f32.mrf.mxu1 }
 0x1ef   : > { %6939 = vmatmul.mubr.msk.bf16.gmra.mxu0 %vm8553_vm9, %v10487_v6  ;;  %v6673_v52 = vpop.f32.mrf.mxu1  ;;  %v7334_v6 = vld [vmem:[%s10134_s5 + $0x208] sm:$0xff]  }
 0x1f0   : > { %7006 = vmatprep.mubr.bf16.mxu0 %v10488_v61 }
 0x1f1   : > { %6959 = vmatmul.mubr.msk.bf16.vlgmr.msra.gmra.mxu1 %vm8068_vm5, %v10489_v26  ;;  %v2021_v46 = vpop.f32.mrf.mxu1 }
 0x1f2   : > { %6962 = vmatprep.mubr.msk.bf16.mxu1 %vm8068_vm5, %v10490_v1  ;;  %7039 = vmatpush3.bf16.msra.mxu1 %v7328_v48  ;;  %v6720_v3 = vpop.f32.mrf.mxu0  ;;  %v10501_v1 = vld [vmem:[#allocation35_spill] sm:$0xff] }
 0x1f3   : > { %7040 = vmatprep.subr.bf16.mxu1 %v7329_v35  ;;  %v9269_v36 = vadd.f32 %v6720_v3, %v6672_v16  ;;  %v6676_v48 = vpop.f32.mrf.mxu1  ;;  %v10502_v3 = vld [vmem:[#allocation40_spill] sm:$0xff] }
 0x1f4   : > { %v2317_v29 = vpop.f32.mrf.mxu0 }
 0x1f5   : > { %v9276_v9 = vadd.f32 %v2317_v29, %v2018_v18  ;;  %v2034_v0 = vpop.f32.mrf.mxu1 }
 0x1f6   : > { %7041 = vmatpush3.bf16.msra.mxu1 %v7329_v35  ;;  %v6721_v44 = vpop.f32.mrf.mxu0 }
 0x1f7   : > { %7007 = vmatmul.mubr.bf16.vlgmr.msra.gmra.mxu0 %v10491_v8  ;;  %7042 = vmatprep.subr.bf16.mxu1 %v7330_v38  ;;  %v9288_v47 = vadd.f32 %v6721_v44, %v6673_v52  ;;  %v6677_v58 = vpop.f32.mrf.mxu1 }
 0x1f8   : > { %7010 = vmatprep.mubr.bf16.mxu0 %v10492_v55  ;;  %v2320_v4 = vpop.f32.mrf.mxu0  ;;  %v10503_v55 = vld [vmem:[#allocation79_spill] sm:$0xff] }
 0x1f9   : > { %6963 = vmatmul.mubr.msk.bf16.gmra.mxu1 %vm8068_vm5, %v10495_v20  ;;  %v9293_v19 = vadd.f32 %v2320_v4, %v2021_v46  ;;  %v2037_v49 = vpop.f32.mrf.mxu1  ;;  %v10504_v29 = vpack.c.bf16 %v10503_v55, %v8671_v56  ;;  %v1727_v55 = vpack.c.bf16 %v10408_v14, %v10408_v14 }
 0x1fa   : > { %6966 = vmatprep.mubr.msk.bf16.mxu1 %vm8068_vm5, %v10496_v27  ;;  %7043 = vmatpush3.bf16.msra.mxu1 %v7330_v38  ;;  %v6724_v39 = vpop.f32.mrf.mxu0  ;;  %v7335_v38 = vld [vmem:[%s10134_s5 + $0x200] sm:$0xff]  }
 0x1fb   : > { %7044 = vmatprep.subr.bf16.mxu1 %v7331_v33  ;;  %v9296_v57 = vadd.f32 %v6724_v39, %v6676_v48  ;;  %v6680_v34 = vpop.f32.mrf.mxu1  ;;  %v1719_v48 = vpack.c.bf16 %v10458_v23, %v10458_v23 }
 0x1fc   : > { %v2333_v50 = vpop.f32.mrf.mxu0 }
 0x1fd   : > { %v9302_v54 = vadd.f32 %v2333_v50, %v2034_v0  ;;  %v2050_v41 = vpop.f32.mrf.mxu1  ;;  %v5506_v56 = vcombine.low %v1719_v48, %v10497_v51  ;;  %v10508_v50 = vld [vmem:[#allocation56_spill] sm:$0xff]  ;;  %v10513_v48 = vld [vmem:[#allocation65_spill] sm:$0xff] }
 0x1fe   : > { %7045 = vmatpush3.bf16.msra.mxu1 %v7331_v33  ;;  %v6725_v22 = vpop.f32.mrf.mxu0 }
 0x1ff   : > { %7011 = vmatmul.mubr.bf16.gmra.mxu0 %v5505_v60  ;;  %7046 = vmatprep.subr.bf16.mxu1 %v7332_v63  ;;  %v9310_v16 = vadd.f32 %v6725_v22, %v6677_v58  ;;  %v6681_v18 = vpop.f32.mrf.mxu1  ;;  %v10506_v58 = vld [vmem:[#allocation47_spill] sm:$0xff] }
 0x200   : > { %7014 = vmatprep.mubr.bf16.mxu0 %v10498_v10  ;;  %v2336_v35 = vpop.f32.mrf.mxu0 }
 0x201   : > { %6967 = vmatmul.mubr.msk.bf16.gmra.mxu1 %vm8068_vm5, %v10499_v32  ;;  %v9315_v61 = vadd.f32 %v2336_v35, %v2037_v49  ;;  %v2053_v52 = vpop.f32.mrf.mxu1 }
 0x202   : > { %6970 = vmatprep.mubr.msk.bf16.mxu1 %vm8068_vm5, %v10500_v21  ;;  %7047 = vmatpush3.bf16.msra.mxu1 %v7332_v63 }
 0x203   : > { %7048 = vmatprep.subr.bf16.mxu1 %v7333_v15 }
 0x204   : > { %v6728_v26 = vpop.f32.mrf.mxu0 }
 0x205   : > { %v9321_v46 = vadd.f32 %v6728_v26, %v6680_v34 }
 0x206   : > { %7049 = vmatpush3.bf16.msra.mxu1 %v7333_v15  ;;  %v2349_v8 = vpop.f32.mrf.mxu0  ;;  %v10507_v15 = vld [vmem:[#allocation53_spill] sm:$0xff] }
 0x207   : > { %7015 = vmatmul.mubr.bf16.gmra.mxu0 %v10501_v1  ;;  %7050 = vmatprep.subr.bf16.mxu1 %v7334_v6  ;;  %v6684_v33 = vpop.f32.mrf.mxu1  ;;  %v9331_v13 = vadd.f32 %v2349_v8, %v2050_v41  ;;  %v10511_v8 = vld [vmem:[#allocation88_spill] sm:$0xff] }
 0x208   : > { %7018 = vmatprep.mubr.bf16.mxu0 %v10502_v3  ;;  %v6729_v20 = vpop.f32.mrf.mxu0 }
 0x209   : > { %6971 = vmatmul.mubr.msk.bf16.gmra.mxu1 %vm8068_vm5, %v10504_v29  ;;  %v2066_v28 = vpop.f32.mrf.mxu1  ;;  %v9336_v44 = vadd.f32 %v6729_v20, %v6681_v18  ;;  %v10509_v18 = vld [vmem:[#allocation50_spill] sm:$0xff] }
 0x20a   : > { %6974 = vmatprep.mubr.msk.bf16.mxu1 %vm8068_vm5, %v10505_v24  ;;  %7051 = vmatpush3.bf16.msra.mxu1 %v7334_v6  ;;  %v2352_v27 = vpop.f32.mrf.mxu0 }
 0x20b   : > { %7052 = vmatprep.subr.bf16.mxu1 %v7335_v38  ;;  %v6685_v0 = vpop.f32.mrf.mxu1  ;;  %v9339_v63 = vadd.f32 %v2352_v27, %v2053_v52  ;;  %v10510_v52 = vld [vmem:[#allocation54_spill] sm:$0xff] }
 0x20d   : > { %v6732_v23 = vpop.f32.mrf.mxu0  ;;  %v2069_v4 = vpop.f32.mrf.mxu1 }
 0x20e   : > { %7053 = vmatpush3.bf16.msra.mxu1 %v7335_v38  ;;  %v9341_v60 = vadd.f32 %v6732_v23, %v6684_v33  ;;  %v10512_v33 = vpack.c.bf16 %v10511_v8, %v8774_v53  ;;  %v5507_v53 = vcombine.low %v1727_v55, %v10497_v51  ;;  %v10518_v8 = vld [vmem:[#allocation67_spill] sm:$0xff] }
 0x20f   : > { %7019 = vmatmul.mubr.bf16.gmra.mxu0 %v5506_v56  ;;  %v2365_v39 = vpop.f32.mrf.mxu0  ;;  %v6688_v49 = vpop.f32.mrf.mxu1 }
 0x210   : > { %7022 = vmatprep.mubr.bf16.mxu0 %v10506_v58  ;;  %v9347_v10 = vadd.f32 %v2365_v39, %v2066_v28 }
 0x211   : > { %6975 = vmatmul.mubr.msk.bf16.gmra.mxu1 %vm8068_vm5, %v10507_v15  ;;  %v6733_v34 = vpop.f32.mrf.mxu0  ;;  %v2082_v32 = vpop.f32.mrf.mxu1 }
 0x212   : > { %6978 = vmatprep.mubr.msk.bf16.mxu1 %vm8068_vm5, %v10508_v50  ;;  %v9352_v22 = vadd.f32 %v6733_v34, %v6685_v0  ;;  %v10516_v50 = vld [vmem:[#allocation70_spill] sm:$0xff] }
 0x213   : > { %v2368_v21 = vpop.f32.mrf.mxu0  ;;  %v6689_v41 = vpop.f32.mrf.mxu1 }
 0x214   : > { %v9354_v6 = vadd.f32 %v2368_v21, %v2069_v4  ;;  %v10514_v4 = vld [vmem:[#allocation61_spill] sm:$0xff] }
 0x215   : > { %v6736_v35 = vpop.f32.mrf.mxu0  ;;  %v9357_v26 = vpop.f32.mrf.mxu1 }
 0x216   : > { %v9359_v1 = vadd.f32 %v6736_v35, %v6688_v49  ;;  %v10515_v49 = vld [vmem:[#allocation66_spill] sm:$0xff] }
 0x217   : > { %7023 = vmatmul.mubr.bf16.gmra.mxu0 %v10509_v18  ;;  %v2381_v38 = vpop.f32.mrf.mxu0  ;;  %v6692_v3 = vpop.f32.mrf.mxu1 }
 0x218   : > { %7026 = vmatprep.mubr.bf16.mxu0 %v10510_v52  ;;  %v9369_v29 = vadd.f32 %v2381_v38, %v2082_v32  ;;  %v10517_v52 = vld [vmem:[#allocation64_spill] sm:$0xff] }
 0x219   : > { %6979 = vmatmul.mubr.msk.bf16.gmra.mxu1 %vm8068_vm5, %v10512_v33  ;;  %v6737_v24 = vpop.f32.mrf.mxu0  ;;  %v2098_v20 = vpop.f32.mrf.mxu1 }
 0x21a   : > { %6982 = vmatprep.mubr.msk.bf16.mxu1 %vm8068_vm5, %v10513_v48  ;;  %v9374_v28 = vadd.f32 %v6737_v24, %v6689_v41  ;;  %v10519_v48 = vld [vmem:[#allocation92_spill] sm:$0xff] }
 0x21b   : > { %v9376_v27 = vpop.f32.mrf.mxu0  ;;  %v6693_v56 = vpop.f32.mrf.mxu1  ;;  %v10520_v24 = vpack.c.bf16 %v10519_v48, %v8878_v2 }
 0x21d   : > { %v6740_v0 = vpop.f32.mrf.mxu0  ;;  %v9379_v23 = vpop.f32.mrf.mxu1 }
 0x21e   : > { %v9381_v14 = vadd.f32 %v6740_v0, %v6692_v3 }
 0x21f   : > { %7027 = vmatmul.mubr.bf16.gmra.mxu0 %v5507_v53  ;;  %v2397_v58 = vpop.f32.mrf.mxu0  ;;  %v6696_v39 = vpop.f32.mrf.mxu1 }
 0x220   : > { %7030 = vmatprep.mubr.bf16.mxu0 %v10514_v4  ;;  %v9387_v15 = vadd.f32 %v2397_v58, %v2098_v20  ;;  %v1735_v20 = vpack.c.bf16 %v10481_v45, %v10481_v45 }
 0x221   : > { %6983 = vmatmul.mubr.msk.bf16.gmra.mxu1 %vm8068_vm5, %v10515_v49  ;;  %v6741_v34 = vpop.f32.mrf.mxu0  ;;  %v2114_v32 = vpop.f32.mrf.mxu1 }
 0x222   : > { %6986 = vmatprep.mubr.msk.bf16.mxu1 %vm8068_vm5, %v10516_v50  ;;  %v9392_v21 = vadd.f32 %v6741_v34, %v6693_v56  ;;  %v10521_v56 = vld [vmem:[#allocation16_spill] sm:$0xff]  ;;  %v5508_v2 = vcombine.low %v1735_v20, %v10497_v51  ;;  %v1747_v34 = vsel %vm1736_vm7, 0.0, %v10450_v62 }
 0x223   : > { %v9394_v41 = vpop.f32.mrf.mxu0  ;;  %v6697_v35 = vpop.f32.mrf.mxu1 }
 0x225   : > { %v6744_v18 = vpop.f32.mrf.mxu0  ;;  %v9397_v38 = vpop.f32.mrf.mxu1 }
 0x226   : > { %v9399_v3 = vadd.f32 %v6744_v18, %v6696_v39 }
 0x227   : > { %7031 = vmatmul.mubr.bf16.gmra.mxu0 %v10517_v52  ;;  %v2413_v33 = vpop.f32.mrf.mxu0  ;;  %v6700_v55 = vpop.f32.mrf.mxu1  ;;  %v10522_v52 = vld [vmem:[#allocation80_spill] sm:$0xff] }
 0x228   : > { %7034 = vmatprep.mubr.bf16.mxu0 %v10518_v8  ;;  %v9409_v53 = vadd.f32 %v2413_v33, %v2114_v32  ;;  %v10523_v33 = vld [vmem:[#allocation22_spill] sm:$0xff] }
 0x229   : > { %6987 = vmatmul.mubr.msk.bf16.gmra.mxu1 %vm8068_vm5, %v10520_v24  ;;  %v6745_v0 = vpop.f32.mrf.mxu0  ;;  %v2130_v4 = vpop.f32.mrf.mxu1  ;;  %v1784_v24 = vpack.c.bf16 %v1747_v34, %v1747_v34 }
 0x22a   : > { %7054 = vmatprep.mubr.msk.bf16.mxu1 %vm8553_vm9, %v10521_v56  ;;  %v9414_v58 = vadd.f32 %v6745_v0, %v6697_v35 }
 0x22b   : > { %v9416_v39 = vpop.f32.mrf.mxu0  ;;  %v6701_v49 = vpop.f32.mrf.mxu1 }
 0x22d   : > { %v6748_v25 = vpop.f32.mrf.mxu0  ;;  %v9419_v50 = vpop.f32.mrf.mxu1 }
 0x22e   : > { %v9421_v45 = vadd.f32 %v6748_v25, %v6700_v55 }
 0x22f   : > { %7035 = vmatmul.mubr.bf16.gmra.mxu0 %v5508_v2  ;;  %v2429_v32 = vpop.f32.mrf.mxu0  ;;  %v6768_v18 = vpop.f32.mrf.mxu1 }
 0x230   : > { %v9429_v35 = vadd.f32 %v2429_v32, %v2130_v4  ;;  %v2768_v8 = vadd.f32 %v6768_v18, %v9269_v36  ;;  %v5533_v36 = vcombine.low %v1784_v24, %v10497_v51 }
 0x231   : > { %7055 = vmatmul.mubr.msk.bf16.vlgmr.msra.gmra.mxu1 %vm8553_vm9, %v10522_v52  ;;  %v6749_v55 = vpop.f32.mrf.mxu0  ;;  %v2639_v48 = vpop.f32.mrf.mxu1 }
 0x232   : > { %7058 = vmatprep.mubr.msk.bf16.mxu1 %vm8553_vm9, %v10523_v33  ;;  %v9435_v20 = vadd.f32 %v6749_v55, %v6701_v49  ;;  %v2766_v62 = vadd.f32 %v2639_v48, %v9276_v9  ;;  %v10524_v33 = vld [vmem:[#allocation41_spill] sm:$0xff] }
 0x233   : > { %v9438_v56 = vpop.f32.mrf.mxu0  ;;  %v6769_v0 = vpop.f32.mrf.mxu1 }
 0x234   : > { %v2769_v2 = vadd.f32 %v6769_v0, %v9288_v47 }
 0x235   : > { %v2642_v25 = vpop.f32.mrf.mxu1 }
 0x236   : > { %v9445_v18 = vadd.f32 %v2642_v25, %v9293_v19 }
 0x237   : > { %v6816_v4 = vpop.f32.mrf.mxu0  ;;  %v6772_v34 = vpop.f32.mrf.mxu1 }
 0x238   : > { %v9442_v32 = vadd.f32 %v6816_v4, %v2768_v8  ;;  %v2772_v9 = vadd.f32 %v6772_v34, %v9296_v57  ;;  %v10525_v34 = vld [vmem:[#allocation32_spill] sm:$0xff] }
 0x239   : > { %v2937_v52 = vpop.f32.mrf.mxu0  ;;  %7059 = vmatmul.mubr.bf16.gmra.mxu1 %v5533_v36  ;;  %v2655_v55 = vpop.f32.mrf.mxu1  ;;  %v1757_v36 = vsel %vm1736_vm7, 0.0, %v10460_v59 }
 0x23a   : > { %v9447_v49 = vadd.f32 %v2937_v52, %v2766_v62  ;;  %7062 = vmatprep.mubr.msk.bf16.mxu1 %vm8553_vm9, %v10524_v33  ;;  %v2770_v8 = vadd.f32 %v2655_v55, %v9302_v54  ;;  %v1794_v33 = vpack.c.bf16 %v1757_v36, %v1757_v36  ;;  %v7336_v55 = vld [vmem:[%s10136_s7 + $0x38] sm:$0xff]  }
 0x23b   : > { %v6817_v47 = vpop.f32.mrf.mxu0  ;;  %v6773_v19 = vpop.f32.mrf.mxu1  ;;  %7086 = vmatprep.subr.bf16.mxu0 %v7336_v55 }
 0x23c   : > { %v9453_v48 = vadd.f32 %v6817_v47, %v2769_v2  ;;  %v2773_v0 = vadd.f32 %v6773_v19, %v9310_v16  ;;  %7087 = vmatpush3.bf16.msra.mxu0 %v7336_v55 }
 0x23d   : > { %v9456_v24 = vpop.f32.mrf.mxu0  ;;  %v2658_v62 = vpop.f32.mrf.mxu1 }
 0x23e   : > { %v9462_v57 = vadd.f32 %v2658_v62, %v9315_v61 }
 0x23f   : > { %v6820_v4 = vpop.f32.mrf.mxu0 }
 0x240   : > { %v9459_v25 = vadd.f32 %v6820_v4, %v2772_v9 }
 0x241   : > { %v2953_v2 = vpop.f32.mrf.mxu0  ;;  %v6776_v52 = vpop.f32.mrf.mxu1  ;;  %7063 = vmatmul.mubr.msk.bf16.gmra.mxu1 %vm8553_vm9, %v10525_v34 }
 0x242   : > { %v9470_v54 = vadd.f32 %v2953_v2, %v2770_v8  ;;  %v2776_v16 = vadd.f32 %v6776_v52, %v9321_v46  ;;  %7066 = vmatprep.mubr.msk.bf16.mxu1 %vm8553_vm9, %v8981_v31  ;;  %v5534_v31 = vcombine.low %v1794_v33, %v10497_v51 }
 0x243   : > { %v6821_v61 = vpop.f32.mrf.mxu0  ;;  %v2671_v9 = vpop.f32.mrf.mxu1 }
 0x244   : > { %v9476_v47 = vadd.f32 %v6821_v61, %v2773_v0  ;;  %v2774_v59 = vadd.f32 %v2671_v9, %v9331_v13 }
 0x245   : > { %v9482_v19 = vpop.f32.mrf.mxu0  ;;  %v6777_v8 = vpop.f32.mrf.mxu1 }
 0x246   : > { %v2777_v46 = vadd.f32 %v6777_v8, %v9336_v44 }
 0x247   : > { %v6824_v4 = vpop.f32.mrf.mxu0  ;;  %v2674_v62 = vpop.f32.mrf.mxu1 }
 0x248   : > { %v9486_v36 = vadd.f32 %v6824_v4, %v2776_v16  ;;  %v9489_v0 = vadd.f32 %v2674_v62, %v9339_v63  ;;  %v7337_v63 = vld [vmem:[%s10136_s7 + $0x30] sm:$0xff]  }
 0x249   : > { %v2969_v13 = vpop.f32.mrf.mxu0  ;;  %v6780_v2 = vpop.f32.mrf.mxu1  ;;  %7067 = vmatmul.mubr.bf16.gmra.mxu1 %v5534_v31  ;;  %7088 = vmatprep.subr.bf16.mxu0 %v7337_v63 }
 0x24a   : > { %v9491_v52 = vadd.f32 %v2969_v13, %v2774_v59  ;;  %v2780_v34 = vadd.f32 %v6780_v2, %v9341_v60  ;;  %7070 = vmatprep.mubr.msk.bf16.mxu1 %vm8553_vm9, %v8717_v5  ;;  %7089 = vmatpush3.bf16.msra.mxu0 %v7337_v63 }
 0x24b   : > { %v6825_v44 = vpop.f32.mrf.mxu0  ;;  %v2687_v61 = vpop.f32.mrf.mxu1 }
 0x24c   : > { %v9497_v9 = vadd.f32 %v6825_v44, %v2777_v46  ;;  %v2778_v16 = vadd.f32 %v2687_v61, %v9347_v10  ;;  %v1766_v10 = vsel %vm1736_vm7, 0.0, %v10473_v40  ;;  %v7338_v44 = vld [vmem:[%s10136_s7 + $0x28] sm:$0xff]  }
 0x24d   : > { %v9503_v33 = vpop.f32.mrf.mxu0  ;;  %v6781_v59 = vpop.f32.mrf.mxu1  ;;  %v1803_v2 = vpack.c.bf16 %v1766_v10, %v1766_v10  ;;  %7090 = vmatprep.subr.bf16.mxu0 %v7338_v44 }
 0x24e   : > { %v2781_v55 = vadd.f32 %v6781_v59, %v9352_v22  ;;  %7091 = vmatpush3.bf16.msra.mxu0 %v7338_v44 }
 0x24f   : > { %v6828_v60 = vpop.f32.mrf.mxu0  ;;  %v2690_v8 = vpop.f32.mrf.mxu1  ;;  %v5535_v59 = vcombine.low %v1803_v2, %v10497_v51  ;;  %v2401_v2 = vadd.f32 %v9394_v41, %v9379_v23 }
 0x250   : > { %v9506_v5 = vadd.f32 %v6828_v60, %v2780_v34  ;;  %v9509_v46 = vadd.f32 %v2690_v8, %v9354_v6 }
 0x251   : > { %v2985_v4 = vpop.f32.mrf.mxu0  ;;  %v6784_v62 = vpop.f32.mrf.mxu1  ;;  %7071 = vmatmul.mubr.msk.bf16.gmra.mxu1 %vm8553_vm9, %v8733_v12 }
 0x252   : > { %v9517_v22 = vadd.f32 %v2985_v4, %v2778_v16  ;;  %v2784_v31 = vadd.f32 %v6784_v62, %v9359_v1  ;;  %7074 = vmatprep.mubr.msk.bf16.mxu1 %vm8553_vm9, %v8768_v42  ;;  %v2385_v1 = vadd.f32 %v9376_v27, %v9357_v26 }
 0x253   : > { %v6829_v6 = vpop.f32.mrf.mxu0  ;;  %v2703_v13 = vpop.f32.mrf.mxu1 }
 0x254   : > { %v9523_v34 = vadd.f32 %v6829_v6, %v2781_v55  ;;  %v2782_v40 = vadd.f32 %v2703_v13, %v9369_v29 }
 0x255   : > { %v9529_v12 = vpop.f32.mrf.mxu0  ;;  %v6785_v61 = vpop.f32.mrf.mxu1 }
 0x256   : > { %v2785_v16 = vadd.f32 %v6785_v61, %v9374_v28 }
 0x257   : > { %v6832_v42 = vpop.f32.mrf.mxu0  ;;  %v2706_v63 = vpop.f32.mrf.mxu1 }
 0x258   : > { %v9535_v55 = vadd.f32 %v6832_v42, %v2784_v31  ;;  %v2783_v29 = vadd.f32 %v2706_v63, %v2385_v1  ;;  %v7339_v31 = vld [vmem:[%s10136_s7 + $0x20] sm:$0xff]   ;;  %v1775_v1 = vsel %vm1736_vm7, 0.0, %v10485_v7  ;;  %v7340_v7 = vld [vmem:[%s10136_s7 + $0x18] sm:$0xff]  }
 0x259   : > { %v3001_v60 = vpop.f32.mrf.mxu0  ;;  %v6788_v8 = vpop.f32.mrf.mxu1  ;;  %7075 = vmatmul.mubr.bf16.gmra.mxu1 %v5535_v59  ;;  %7092 = vmatprep.subr.bf16.mxu0 %v7339_v31  ;;  %v1812_v59 = vpack.c.bf16 %v1775_v1, %v1775_v1 }
 0x25a   : > { %v9537_v10 = vadd.f32 %v3001_v60, %v2782_v40  ;;  %v2788_v4 = vadd.f32 %v6788_v8, %v9381_v14  ;;  %7078 = vmatprep.mubr.msk.bf16.mxu1 %vm8553_vm9, %v9062_v43  ;;  %7093 = vmatpush3.bf16.msra.mxu0 %v7339_v31 }
 0x25b   : > { %v6833_v26 = vpop.f32.mrf.mxu0  ;;  %v2719_v28 = vpop.f32.mrf.mxu1  ;;  %7094 = vmatprep.subr.bf16.mxu0 %v7340_v7 }
 0x25c   : > { %v9543_v27 = vadd.f32 %v6833_v26, %v2785_v16  ;;  %v2786_v62 = vadd.f32 %v2719_v28, %v9387_v15  ;;  %v5536_v26 = vcombine.low %v1812_v59, %v10497_v51  ;;  %v7341_v51 = vld [vmem:[%s10136_s7 + $0x10] sm:$0xff]  }
 0x25d   : > { %v3004_v6 = vpop.f32.mrf.mxu0  ;;  %v6789_v13 = vpop.f32.mrf.mxu1 }
 0x25e   : > { %v9551_v14 = vadd.f32 %v3004_v6, %v2783_v29  ;;  %v2789_v40 = vadd.f32 %v6789_v13, %v9392_v21  ;;  %7095 = vmatpush3.bf16.msra.mxu0 %v7340_v7 }
 0x25f   : > { %v6836_v43 = vpop.f32.mrf.mxu0  ;;  %v2722_v44 = vpop.f32.mrf.mxu1  ;;  %7096 = vmatprep.subr.bf16.mxu0 %v7341_v51 }
 0x260   : > { %v9554_v61 = vadd.f32 %v6836_v43, %v2788_v4  ;;  %v2787_v15 = vadd.f32 %v2722_v44, %v2401_v2  ;;  %v2433_v44 = vadd.f32 %v9438_v56, %v9419_v50 }
 0x261   : > { %v3017_v16 = vpop.f32.mrf.mxu0  ;;  %v6792_v42 = vpop.f32.mrf.mxu1  ;;  %7079 = vmatmul.mubr.msk.bf16.gmra.mxu1 %vm8553_vm9, %v8818_v37 }
 0x262   : > { %v9562_v23 = vadd.f32 %v3017_v16, %v2786_v62  ;;  %v2792_v21 = vadd.f32 %v6792_v42, %v9399_v3  ;;  %7082 = vmatprep.mubr.msk.bf16.mxu1 %vm8553_vm9, %v8872_v17  ;;  %v2417_v3 = vadd.f32 %v9416_v39, %v9397_v38  ;;  %7097 = vmatpush3.bf16.msra.mxu0 %v7341_v51 }
 0x263   : > { %v6837_v41 = vpop.f32.mrf.mxu0  ;;  %v2735_v63 = vpop.f32.mrf.mxu1 }
 0x264   : > { %v9568_v29 = vadd.f32 %v6837_v41, %v2789_v40  ;;  %v2790_v30 = vadd.f32 %v2735_v63, %v9409_v53 }
 0x265   : > { %v3020_v37 = vpop.f32.mrf.mxu0  ;;  %v6793_v60 = vpop.f32.mrf.mxu1 }
 0x266   : > { %v9576_v8 = vadd.f32 %v3020_v37, %v2787_v15  ;;  %v2793_v11 = vadd.f32 %v6793_v60, %v9414_v58  ;;  %v3065_v60 = vadd.f32 %v9456_v24, %v9445_v18 }
 0x267   : > { %v6840_v17 = vpop.f32.mrf.mxu0  ;;  %v2738_v4 = vpop.f32.mrf.mxu1 }
 0x268   : > { %v9580_v53 = vadd.f32 %v6840_v17, %v2792_v21  ;;  %v2791_v28 = vadd.f32 %v2738_v4, %v2417_v3 }
 0x269   : > { %v3033_v62 = vpop.f32.mrf.mxu0  ;;  %v6796_v31 = vpop.f32.mrf.mxu1  ;;  %7083 = vmatmul.mubr.bf16.gmra.mxu1 %v5536_v26 }
 0x26a   : > { %v9582_v6 = vadd.f32 %v3033_v62, %v2790_v30  ;;  %v2796_v38 = vadd.f32 %v6796_v31, %v9421_v45 }
 0x26b   : > { %v6841_v39 = vpop.f32.mrf.mxu0  ;;  %v2751_v13 = vpop.f32.mrf.mxu1 }
 0x26c   : > { %v9585_v2 = vadd.f32 %v6841_v39, %v2793_v11  ;;  %v2794_v58 = vadd.f32 %v2751_v13, %v9429_v35 }
 0x26d   : > { %v3036_v40 = vpop.f32.mrf.mxu0  ;;  %v6797_v43 = vpop.f32.mrf.mxu1 }
 0x26e   : > { %v9593_v15 = vadd.f32 %v3036_v40, %v2791_v28  ;;  %v2797_v1 = vadd.f32 %v6797_v43, %v9435_v20  ;;  %v7343_v40 = vld [vmem:[%s10136_s7] sm:$0xff]  }
 0x26f   : > { %v6844_v45 = vpop.f32.mrf.mxu0  ;;  %v2754_v16 = vpop.f32.mrf.mxu1 }
 0x270   : > { %v9596_v42 = vadd.f32 %v6844_v45, %v2796_v38  ;;  %v2795_v35 = vadd.f32 %v2754_v16, %v2433_v44 }
 0x271   : > { %v3049_v21 = vpop.f32.mrf.mxu0  ;;  %v6864_v41 = vpop.f32.mrf.mxu1 }
 0x272   : > { %v9598_v63 = vadd.f32 %v3049_v21, %v2794_v58  ;;  %v3364_v59 = vadd.f32 %v6864_v41, %v9442_v32  ;;  %v7342_v32 = vld [vmem:[%s10136_s7 + $0x8] sm:$0xff]   ;;  %v3069_v58 = vadd.f32 %v9482_v19, %v9462_v57 }
 0x273   : > { %v6845_v30 = vpop.f32.mrf.mxu0  ;;  %v3235_v7 = vpop.f32.mrf.mxu1  ;;  %7098 = vmatprep.subr.bf16.mxu0 %v7342_v32 }
 0x274   : > { %v9601_v50 = vadd.f32 %v6845_v30, %v2797_v1  ;;  %v3362_v56 = vadd.f32 %v3235_v7, %v9447_v49  ;;  %7099 = vmatpush3.bf16.msra.mxu0 %v7342_v32 }
 0x275   : > { %v3052_v20 = vpop.f32.mrf.mxu0  ;;  %v6865_v37 = vpop.f32.mrf.mxu1  ;;  %7100 = vmatprep.subr.bf16.mxu0 %v7343_v40 }
 0x276   : > { %v9606_v3 = vadd.f32 %v3052_v20, %v2795_v35  ;;  %v9609_v11 = vadd.f32 %v6865_v37, %v9453_v48 }
 0x277   : > { %v6912_v17 = vpop.f32.mrf.mxu0  ;;  %v3238_v4 = vpop.f32.mrf.mxu1 }
 0x278   : > { %v9614_v26 = vadd.f32 %v6912_v17, %v3364_v59  ;;  %v9616_v28 = vadd.f32 %v3238_v4, %v3065_v60  ;;  %7101 = vmatpush3.bf16.msra.mxu0 %v7343_v40  ;;  %v3073_v59 = vadd.f32 %v9503_v33, %v9489_v0 }
 0x279   : > { %v3533_v49 = vpop.f32.mrf.mxu0  ;;  %v6868_v62 = vpop.f32.mrf.mxu1 }
 0x27a   : > { %v9618_v18 = vadd.f32 %v3533_v49, %v3362_v56  ;;  %v3368_v24 = vadd.f32 %v6868_v62, %v9459_v25  ;;  %v3077_v49 = vadd.f32 %v9529_v12, %v9509_v46 }
 0x27b   : > { %v9621_v48 = vpop.f32.mrf.mxu0  ;;  %v3251_v31 = vpop.f32.mrf.mxu1 }
 0x27c   : > { %v3366_v38 = vadd.f32 %v3251_v31, %v9470_v54 }
 0x27d   : > { %v9624_v39 = vpop.f32.mrf.mxu0  ;;  %v6869_v13 = vpop.f32.mrf.mxu1 }
 0x27e   : > { %v9629_v51 = vadd.f32 %v6869_v13, %v9476_v47 }
 0x27f   : > { %v6916_v43 = vpop.f32.mrf.mxu0  ;;  %v3254_v25 = vpop.f32.mrf.mxu1 }
 0x280   : > { %v9634_v44 = vadd.f32 %v6916_v43, %v3368_v24  ;;  %v9636_v1 = vadd.f32 %v3254_v25, %v3069_v58 }
 0x281   : > { %v3549_v54 = vpop.f32.mrf.mxu0  ;;  %v6872_v45 = vpop.f32.mrf.mxu1 }
 0x282   : > { %v9638_v16 = vadd.f32 %v3549_v54, %v3366_v38  ;;  %v3372_v57 = vadd.f32 %v6872_v45, %v9486_v36 }
 0x283   : > { %v9641_v47 = vpop.f32.mrf.mxu0  ;;  %v3267_v19 = vpop.f32.mrf.mxu1 }
 0x284   : > { %v3370_v35 = vadd.f32 %v3267_v19, %v9491_v52 }
 0x285   : > { %v9644_v21 = vpop.f32.mrf.mxu0  ;;  %v6873_v41 = vpop.f32.mrf.mxu1 }
 0x286   : > { %v9649_v30 = vadd.f32 %v6873_v41, %v9497_v9 }
 0x287   : > { %v6920_v7 = vpop.f32.mrf.mxu0  ;;  %v3270_v56 = vpop.f32.mrf.mxu1 }
 0x288   : > { %v9651_v20 = vadd.f32 %v6920_v7, %v3372_v57  ;;  %v9653_v37 = vadd.f32 %v3270_v56, %v3073_v59 }
 0x289   : > { %v3565_v36 = vpop.f32.mrf.mxu0  ;;  %v6876_v60 = vpop.f32.mrf.mxu1 }
 0x28a   : > { %v9655_v32 = vadd.f32 %v3565_v36, %v3370_v35  ;;  %v3376_v52 = vadd.f32 %v6876_v60, %v9506_v5 }
 0x28b   : > { %v9658_v17 = vpop.f32.mrf.mxu0  ;;  %v3283_v4 = vpop.f32.mrf.mxu1 }
 0x28c   : > { %v3374_v0 = vadd.f32 %v3283_v4, %v9517_v22 }
 0x28d   : > { %v9661_v33 = vpop.f32.mrf.mxu0  ;;  %v6877_v9 = vpop.f32.mrf.mxu1 }
 0x28e   : > { %v9666_v62 = vadd.f32 %v6877_v9, %v9523_v34 }
 0x28f   : > { %v6924_v24 = vpop.f32.mrf.mxu0  ;;  %v3286_v31 = vpop.f32.mrf.mxu1 }
 0x290   : > { %v9668_v38 = vadd.f32 %v6924_v24, %v3376_v52  ;;  %v9670_v13 = vadd.f32 %v3286_v31, %v3077_v49 }
 0x291   : > { %v3581_v5 = vpop.f32.mrf.mxu0  ;;  %v6880_v58 = vpop.f32.mrf.mxu1 }
 0x292   : > { %v9672_v40 = vadd.f32 %v3581_v5, %v3374_v0  ;;  %v3380_v22 = vadd.f32 %v6880_v58, %v9535_v55 }
 0x293   : > { %v9675_v43 = vpop.f32.mrf.mxu0  ;;  %v3299_v25 = vpop.f32.mrf.mxu1 }
 0x294   : > { %v3378_v46 = vadd.f32 %v3299_v25, %v9537_v10 }
 0x295   : > { %v9678_v12 = vpop.f32.mrf.mxu0  ;;  %v6881_v34 = vpop.f32.mrf.mxu1 }
 0x296   : > { %v9681_v54 = vadd.f32 %v6881_v34, %v9543_v27 }
 0x297   : > { %v6928_v45 = vpop.f32.mrf.mxu0  ;;  %v3302_v57 = vpop.f32.mrf.mxu1 }
 0x298   : > { %v9683_v19 = vadd.f32 %v6928_v45, %v3380_v22  ;;  %v9686_v35 = vadd.f32 %v3302_v57, %v9551_v14 }
 0x299   : > { %v3597_v41 = vpop.f32.mrf.mxu0  ;;  %v6884_v55 = vpop.f32.mrf.mxu1 }
 0x29a   : > { %v9688_v59 = vadd.f32 %v3597_v41, %v3378_v46  ;;  %v3384_v7 = vadd.f32 %v6884_v55, %v9554_v61 }
 0x29b   : > { %v9691_v10 = vpop.f32.mrf.mxu0  ;;  %v3315_v56 = vpop.f32.mrf.mxu1 }
 0x29c   : > { %v3382_v36 = vadd.f32 %v3315_v56, %v9562_v23 }
 0x29d   : > { %v9694_v27 = vpop.f32.mrf.mxu0  ;;  %v6885_v60 = vpop.f32.mrf.mxu1 }
 0x29e   : > { %v9697_v52 = vadd.f32 %v6885_v60, %v9568_v29 }
 0x29f   : > { %v6932_v4 = vpop.f32.mrf.mxu0  ;;  %v3318_v14 = vpop.f32.mrf.mxu1 }
 0x2a0   : > { %10526 = vst [vmem:[#allocation34_spill] sm:$0xff] %v9697_v52  ;;  %v9699_v0 = vadd.f32 %v6932_v4, %v3384_v7  ;;  %v9702_v9 = vadd.f32 %v3318_v14, %v9576_v8 }
 0x2a1   : > { %v3613_v49 = vpop.f32.mrf.mxu0  ;;  %v6888_v61 = vpop.f32.mrf.mxu1 }
 0x2a2   : > { %10527 = vst [vmem:[#allocation46_spill] sm:$0xff] %v9702_v9  ;;  %v9704_v24 = vadd.f32 %v3613_v49, %v3382_v36  ;;  %v3388_v31 = vadd.f32 %v6888_v61, %v9580_v53 }
 0x2a3   : > { %v9707_v23 = vpop.f32.mrf.mxu0  ;;  %v3331_v5 = vpop.f32.mrf.mxu1 }
 0x2a4   : > { %10528 = vst [vmem:[#allocation25_spill] sm:$0xff] %v9707_v23  ;;  %v3386_v58 = vadd.f32 %v3331_v5, %v9582_v6 }
 0x2a5   : > { %v9710_v29 = vpop.f32.mrf.mxu0  ;;  %v6889_v22 = vpop.f32.mrf.mxu1 }
 0x2a6   : > { %10529 = vst [vmem:[#allocation69_spill] sm:$0xff] %v9710_v29  ;;  %v9713_v25 = vadd.f32 %v6889_v22, %v9585_v2 }
 0x2a7   : > { %v6936_v46 = vpop.f32.mrf.mxu0  ;;  %v3334_v8 = vpop.f32.mrf.mxu1 }
 0x2a8   : > { %10530 = vst [vmem:[#allocation52_spill] sm:$0xff] %v9713_v25  ;;  %v9715_v34 = vadd.f32 %v6936_v46, %v3388_v31  ;;  %v9718_v45 = vadd.f32 %v3334_v8, %v9593_v15 }
 0x2a9   : > { %v3629_v57 = vpop.f32.mrf.mxu0  ;;  %v6892_v53 = vpop.f32.mrf.mxu1 }
 0x2aa   : > { %10531 = vst [vmem:[#allocation55_spill] sm:$0xff] %v9718_v45  ;;  %v9720_v41 = vadd.f32 %v3629_v57, %v3386_v58  ;;  %v3392_v55 = vadd.f32 %v6892_v53, %v9596_v42 }
 0x2ab   : > { %v9723_v6 = vpop.f32.mrf.mxu0  ;;  %v3347_v7 = vpop.f32.mrf.mxu1 }
 0x2ac   : > { %10532 = vst [vmem:[#allocation57_spill] sm:$0xff] %v9723_v6  ;;  %v3390_v56 = vadd.f32 %v3347_v7, %v9598_v63 }
 0x2ad   : > { %v9726_v2 = vpop.f32.mrf.mxu0  ;;  %v6893_v36 = vpop.f32.mrf.mxu1 }
 0x2ae   : > { %10533 = vst [vmem:[#allocation60_spill] sm:$0xff] %v9726_v2  ;;  %v9729_v60 = vadd.f32 %v6893_v36, %v9601_v50 }
 0x2af   : > { %v6940_v4 = vpop.f32.mrf.mxu0  ;;  %v3350_v15 = vpop.f32.mrf.mxu1 }
 0x2b0   : > { %10534 = vst [vmem:[#allocation33_spill] sm:$0xff] %v9729_v60  ;;  %v9731_v14 = vadd.f32 %v6940_v4, %v3392_v55  ;;  %v9734_v49 = vadd.f32 %v3350_v15, %v9606_v3 }
 0x2b1   : > { %v3645_v61 = vpop.f32.mrf.mxu0  ;;  %v6960_v42 = vpop.f32.mrf.mxu1 }
 0x2b2   : > { %10535 = vst [vmem:[#allocation39_spill] sm:$0xff] %v9734_v49  ;;  %v9736_v31 = vadd.f32 %v3645_v61, %v3390_v56  ;;  %v9739_v5 = vadd.f32 %v6960_v42, %v9614_v26 }
 0x2b3   : > { %v9741_v63 = vpop.f32.mrf.mxu0  ;;  %v3807_v58 = vpop.f32.mrf.mxu1 }
 0x2b4   : > { %10536 = vst [vmem:[#allocation38_spill] sm:$0xff] %v9741_v63  ;;  %v9744_v50 = vadd.f32 %v3807_v58, %v9618_v18 }
 0x2b5   : > { %v9746_v22 = vpop.f32.mrf.mxu0  ;;  %v9748_v46 = vpop.f32.mrf.mxu1 }
 0x2b6   : > { %10537 = vst [vmem:[#allocation43_spill] sm:$0xff] %v9746_v22 }
 0x2b7   : > { %v7008_v8 = vpop.f32.mrf.mxu0  ;;  %v9750_v3 = vpop.f32.mrf.mxu1 }
 0x2b9   : > { %v9752_v57 = vpop.f32.mrf.mxu0  ;;  %v6964_v53 = vpop.f32.mrf.mxu1 }
 0x2ba   : > { %v9755_v55 = vadd.f32 %v6964_v53, %v9634_v44 }
 0x2bb   : > { %v9757_v26 = vpop.f32.mrf.mxu0  ;;  %v3823_v7 = vpop.f32.mrf.mxu1 }
 0x2bc   : > { %v9760_v56 = vadd.f32 %v3823_v7, %v9638_v16 }
 0x2bd   : > { %v9762_v18 = vpop.f32.mrf.mxu0  ;;  %v9764_v36 = vpop.f32.mrf.mxu1 }
 0x2bf   : > { %v9766_v4 = vpop.f32.mrf.mxu0  ;;  %v9768_v15 = vpop.f32.mrf.mxu1 }
 0x2c1   : > { %v6968_v61 = vpop.f32.mrf.mxu1  ;;  %v9773_v44 = vpop.f32.mrf.mxu0 }
 0x2c2   : > { %v9771_v42 = vadd.f32 %v6968_v61, %v9651_v20 }
 0x2c3   : > { %v3839_v58 = vpop.f32.mrf.mxu1  ;;  %v9780_v7 = vpop.f32.mrf.mxu0 }
 0x2c4   : > { %v9776_v53 = vadd.f32 %v3839_v58, %v9655_v32 }
 0x2c5   : > { %v9778_v16 = vpop.f32.mrf.mxu1  ;;  %v9787_v60 = vpop.f32.mrf.mxu0 }
 0x2c7   : > { %v9782_v22 = vpop.f32.mrf.mxu1  ;;  %v9794_v32 = vpop.f32.mrf.mxu0 }
 0x2c9   : > { %v6972_v49 = vpop.f32.mrf.mxu1  ;;  %v9801_v25 = vpop.f32.mrf.mxu0 }
 0x2ca   : > { %v9785_v63 = vadd.f32 %v6972_v49, %v9668_v38 }
 0x2cb   : > { %v3855_v20 = vpop.f32.mrf.mxu1 }
 0x2cc   : > { %v9790_v61 = vadd.f32 %v3855_v20, %v9672_v40  ;;  %v9808_v40 = vpop.f32.mrf.mxu0 }
 0x2cd   : > { %v9792_v2 = vpop.f32.mrf.mxu1 }
 0x2ce   : > { %v9815_v52 = vpop.f32.mrf.mxu0 }
 0x2cf   : > { %v9796_v58 = vpop.f32.mrf.mxu1 }
 0x2d1   : > { %v6976_v45 = vpop.f32.mrf.mxu1 }
 0x2d2   : > { %v9799_v6 = vadd.f32 %v6976_v45, %v9683_v19 }
 0x2d3   : > { %v3871_v38 = vpop.f32.mrf.mxu1 }
 0x2d4   : > { %10538 = vst [vmem:[#allocation48_spill] sm:$0xff] %v9799_v6  ;;  %v9804_v49 = vadd.f32 %v3871_v38, %v9688_v59  ;;  %v9822_v59 = vpop.f32.mrf.mxu0 }
 0x2d5   : > { %v9806_v29 = vpop.f32.mrf.mxu1 }
 0x2d6   : > { %10539 = vst [vmem:[#allocation49_spill] sm:$0xff] %v9804_v49  ;;  %10540 = vst [vmem:[#allocation62_spill] sm:$0xff] %v9806_v29 }
 0x2d7   : > { %v9810_v20 = vpop.f32.mrf.mxu1 }
 0x2d8   : > { %10541 = vst [vmem:[#allocation63_spill] sm:$0xff] %v9810_v20  ;;  %v9829_v20 = vpop.f32.mrf.mxu0 }
 0x2d9   : > { %v6980_v9 = vpop.f32.mrf.mxu1 }
 0x2da   : > { %v9813_v23 = vadd.f32 %v6980_v9, %v9699_v0 }
 0x2db   : > { %v3887_v19 = vpop.f32.mrf.mxu1 }
 0x2dc   : > { %10542 = vst [vmem:[#allocation10_spill] sm:$0xff] %v9813_v23  ;;  %v9818_v45 = vadd.f32 %v3887_v19, %v9704_v24  ;;  %v9836_v24 = vpop.f32.mrf.mxu0 }
 0x2dd   : > { %v9820_v6 = vpop.f32.mrf.mxu1 }
 0x2de   : > { %10543 = vst [vmem:[#allocation13_spill] sm:$0xff] %v9818_v45  ;;  %10544 = vst [vmem:[#allocation15_spill] sm:$0xff] %v9820_v6 }
 0x2df   : > { %v9824_v38 = vpop.f32.mrf.mxu1 }
 0x2e0   : > { %10545 = vst [vmem:[#allocation18_spill] sm:$0xff] %v9824_v38  ;;  %v9843_v38 = vpop.f32.mrf.mxu0 }
 0x2e1   : > { %v6984_v49 = vpop.f32.mrf.mxu1 }
 0x2e2   : > { %v9827_v29 = vadd.f32 %v6984_v49, %v9715_v34 }
 0x2e3   : > { %v3903_v0 = vpop.f32.mrf.mxu1 }
 0x2e4   : > { %10546 = vst [vmem:[#allocation12_spill] sm:$0xff] %v9827_v29  ;;  %v9832_v9 = vadd.f32 %v3903_v0, %v9720_v41  ;;  %v3663_v41 = vadd.f32 %v9621_v48, %v9609_v11  ;;  %v9852_v0 = vpop.f32.mrf.mxu0  ;;  %v9868_v11 = vld [vmem:[%s10135_s6] ss:$0 sm:$0xff] }
 0x2e5   : > { %v9834_v23 = vpop.f32.mrf.mxu1 }
 0x2e6   : > { %10547 = vst [vmem:[#allocation11_spill] sm:$0xff] %v9832_v9 }
 0x2e7   : > { %v9838_v19 = vpop.f32.mrf.mxu1 }
 0x2e8   : > { %10548 = vst [vmem:[#allocation77_spill] sm:$0xff] %v9838_v19  ;;  %v3661_v19 = vadd.f32 %v9624_v39, %v9616_v28 }
 0x2e9   : > { %v6988_v45 = vpop.f32.mrf.mxu1 }
 0x2ea   : > { %v9841_v6 = vadd.f32 %v6988_v45, %v9731_v14  ;;  %v4202_v14 = vadd.f32 %v7008_v8, %v9739_v5  ;;  %v3937_v45 = vadd.f32 %v9748_v46, %v3663_v41  ;;  %v3667_v5 = vadd.f32 %v9641_v47, %v9629_v51 }
 0x2eb   : > { %v3919_v34 = vpop.f32.mrf.mxu1 }
 0x2ec   : > { %10549 = vst [vmem:[#allocation81_spill] sm:$0xff] %v9841_v6  ;;  %v9846_v49 = vadd.f32 %v3919_v34, %v9736_v31  ;;  %v4200_v31 = vadd.f32 %v9752_v57, %v9744_v50  ;;  %v3935_v34 = vadd.f32 %v9750_v3, %v3661_v19  ;;  %v4203_v28 = vadd.f32 %v9757_v26, %v3937_v45 }
 0x2ed   : > { %v9848_v29 = vpop.f32.mrf.mxu1  ;;  %v3665_v3 = vadd.f32 %v9644_v21, %v9636_v1  ;;  %v3941_v57 = vadd.f32 %v9764_v36, %v3667_v5  ;;  %v4206_v26 = vadd.f32 %v9766_v4, %v9755_v55 }
 0x2ee   : > { %10550 = vst [vmem:[#allocation68_spill] sm:$0xff] %v9846_v49  ;;  %10551 = vst [vmem:[#allocation36_spill] sm:$0xff] %v9848_v29  ;;  %v9863_v29 = vpop.f32.mrf.mxu0  ;;  %v4201_v50 = vadd.f32 %v9762_v18, %v3935_v34  ;;  %v4204_v18 = vadd.f32 %v9773_v44, %v9760_v56  ;;  %v3671_v56 = vadd.f32 %v9658_v17, %v9649_v30 }
 0x2ef   : > { %v9854_v9 = vpop.f32.mrf.mxu1  ;;  %v4207_v34 = vadd.f32 %v9780_v7, %v3941_v57  ;;  %v3669_v7 = vadd.f32 %v9661_v33, %v9653_v37 }
 0x2f0   : > { %v9878_v19 = vpop.f32.mrf.mxu0 }
 0x2f1   : > { %v7056_v6 = vpop.f32.mrf.mxu1 }
 0x2f2   : > { %v4470_v49 = vadd.f32 %v7056_v6, %v4202_v14 }
 0x2f3   : > { %v4341_v48 = vpop.f32.mrf.mxu1 }
 0x2f4   : > { %v4468_v39 = vadd.f32 %v4341_v48, %v4200_v31  ;;  %v4509_v8 = vadd.f32 %v9868_v11, %v4470_v49  ;;  %v3939_v49 = vadd.f32 %v9768_v15, %v3665_v3  ;;  %v9889_v48 = vpop.f32.mrf.mxu0 }
 0x2f5   : > { %v7057_v46 = vpop.f32.mrf.mxu1 }
 0x2f6   : > { %v4471_v6 = vadd.f32 %v7057_v46, %v4203_v28  ;;  %v4507_v14 = vadd.f32 %v9868_v11, %v4468_v39  ;;  %v4541_v1 = vmax.f32 %v4509_v8, 0.0  ;;  %v4205_v15 = vadd.f32 %v9787_v60, %v3939_v49  ;;  %v9898_v3 = vpop.f32.mrf.mxu0 }
 0x2f7   : > { %v4344_v41 = vpop.f32.mrf.mxu1 }
 0x2f8   : > { %v4510_v51 = vadd.f32 %v9868_v11, %v4471_v6  ;;  %v4469_v47 = vadd.f32 %v4344_v41, %v4201_v50  ;;  %v4539_v4 = vmax.f32 %v4507_v14, 0.0  ;;  %v3945_v6 = vadd.f32 %v9778_v16, %v3671_v56 }
 0x2f9   : > { %v7060_v45 = vpop.f32.mrf.mxu1  ;;  %v4210_v41 = vadd.f32 %v9794_v32, %v9771_v42  ;;  %v3943_v14 = vadd.f32 %v9782_v22, %v3669_v7  ;;  %v9909_v32 = vpop.f32.mrf.mxu0 }
 0x2fa   : > { %v4542_v21 = vmax.f32 %v4510_v51, 0.0  ;;  %v4508_v36 = vadd.f32 %v9868_v11, %v4469_v47  ;;  %v4474_v31 = vadd.f32 %v7060_v45, %v4206_v26  ;;  %v4208_v26 = vadd.f32 %v9801_v25, %v9776_v53 }
 0x2fb   : > { %v4357_v55 = vpop.f32.mrf.mxu1  ;;  %v4211_v42 = vadd.f32 %v9808_v40, %v3945_v6  ;;  %v3675_v25 = vadd.f32 %v9675_v43, %v9666_v62  ;;  %v4209_v53 = vadd.f32 %v9815_v52, %v3943_v14  ;;  %v3673_v40 = vadd.f32 %v9678_v12, %v9670_v13 }
 0x2fc   : > { %v4572_v28 = vpack.c.bf16 %v4542_v21, %v4541_v1  ;;  %v4540_v39 = vmax.f32 %v4508_v36, 0.0  ;;  %v4472_v5 = vadd.f32 %v4357_v55, %v4204_v18  ;;  %v4513_v46 = vadd.f32 %v9868_v11, %v4474_v31 }
 0x2fd   : > { %v7061_v44 = vpop.f32.mrf.mxu1  ;;  %v3949_v55 = vadd.f32 %v9792_v2, %v3675_v25  ;;  %v3947_v56 = vadd.f32 %v9796_v58, %v3673_v40 }
 0x2fe   : > { %v4475_v50 = vadd.f32 %v7061_v44, %v4207_v34  ;;  %v4571_v8 = vpack.c.bf16 %v4540_v39, %v4539_v4  ;;  %v4511_v30 = vadd.f32 %v9868_v11, %v4472_v5  ;;  %v4545_v33 = vmax.f32 %v4513_v46, 0.0  ;;  %v9918_v4 = vpop.f32.mrf.mxu0 }
 0x2ff   : > { %v4360_v57 = vpop.f32.mrf.mxu1  ;;  %v4214_v39 = vadd.f32 %v9822_v59, %v9785_v63  ;;  %v4212_v5 = vadd.f32 %v9829_v20, %v9790_v61  ;;  %v4215_v63 = vadd.f32 %v9836_v24, %v3949_v55  ;;  %v3679_v61 = vadd.f32 %v9691_v10, %v9681_v54 }
 0x300   : > { %v4514_v17 = vadd.f32 %v9868_v11, %v4475_v50  ;;  %v4473_v60 = vadd.f32 %v4360_v57, %v4205_v15  ;;  %7102 = vmatprep.mubr.bf16.mxu0 %v4571_v8  ;;  %v4543_v49 = vmax.f32 %v4511_v30, 0.0  ;;  %v9929_v59 = vpop.f32.mrf.mxu0  ;;  %v4213_v20 = vadd.f32 %v9843_v38, %v3947_v56  ;;  %v10554_v38 = vld [vmem:[#allocation49_spill] sm:$0xff] }
 0x301   : > { %v7064_v37 = vpop.f32.mrf.mxu1  ;;  %7103 = vmatmul.mubr.bf16.vlgmr.msra.gmra.mxu0 %v4572_v28  ;;  %v3677_v24 = vadd.f32 %v9694_v27, %v9686_v35 }
 0x302   : > { %v4546_v16 = vmax.f32 %v4514_v17, 0.0  ;;  %v4512_v51 = vadd.f32 %v9868_v11, %v4473_v60  ;;  %v4478_v47 = vadd.f32 %v7064_v37, %v4210_v41  ;;  %v10552_v17 = vld [vmem:[#allocation62_spill] sm:$0xff]  ;;  %v10553_v37 = vld [vmem:[#allocation48_spill] sm:$0xff] }
 0x303   : > { %v4373_v18 = vpop.f32.mrf.mxu1  ;;  %v3953_v60 = vadd.f32 %v10552_v17, %v3679_v61 }
 0x304   : > { %v4574_v45 = vpack.c.bf16 %v4546_v16, %v4545_v33  ;;  %v4544_v1 = vmax.f32 %v4512_v51, 0.0  ;;  %v4476_v21 = vadd.f32 %v4373_v18, %v4208_v26  ;;  %v4517_v36 = vadd.f32 %v9868_v11, %v4478_v47  ;;  %v7032_v26 = vpop.f32.mrf.mxu0  ;;  %v10555_v47 = vld [vmem:[#allocation63_spill] sm:$0xff] }
 0x305   : > { %v7065_v22 = vpop.f32.mrf.mxu1  ;;  %v4218_v33 = vadd.f32 %v9852_v0, %v10553_v37  ;;  %v4216_v51 = vadd.f32 %v9863_v29, %v10554_v38  ;;  %v4219_v0 = vadd.f32 %v9878_v19, %v3953_v60  ;;  %v10560_v19 = vld [vmem:[#allocation15_spill] sm:$0xff]  ;;  %v10564_v37 = vld [vmem:[#allocation52_spill] sm:$0xff] }
 0x306   : > { %v4479_v31 = vadd.f32 %v7065_v22, %v4211_v42  ;;  %v4573_v34 = vpack.c.bf16 %v4544_v1, %v4543_v49  ;;  %v4515_v62 = vadd.f32 %v9868_v11, %v4476_v21  ;;  %v4549_v12 = vmax.f32 %v4517_v36, 0.0  ;;  %v4169_v1 = vpop.f32.mrf.mxu0 }
 0x307   : > { %v4376_v28 = vpop.f32.mrf.mxu1  ;;  %v3951_v42 = vadd.f32 %v10555_v47, %v3677_v24  ;;  %v10566_v47 = vld [vmem:[#allocation55_spill] sm:$0xff] }
 0x308   : > { %v4518_v43 = vadd.f32 %v9868_v11, %v4479_v31  ;;  %v4477_v52 = vadd.f32 %v4376_v28, %v4209_v53  ;;  %7106 = vmatprep.mubr.bf16.mxu0 %v4573_v34  ;;  %v4547_v50 = vmax.f32 %v4515_v62, 0.0  ;;  %v10556_v31 = vld [vmem:[#allocation34_spill] sm:$0xff]  ;;  %v10557_v34 = vld [vmem:[#allocation25_spill] sm:$0xff] }
 0x309   : > { %v7068_v13 = vpop.f32.mrf.mxu1  ;;  %7107 = vmatmul.mubr.bf16.gmra.mxu0 %v4574_v45  ;;  %v3683_v29 = vadd.f32 %v10557_v34, %v10556_v31  ;;  %v4217_v55 = vadd.f32 %v9889_v48, %v3951_v42  ;;  %v10562_v48 = vld [vmem:[#allocation13_spill] sm:$0xff]  ;;  %v10567_v42 = vld [vmem:[#allocation60_spill] sm:$0xff] }
 0x30a   : > { %v4550_v2 = vmax.f32 %v4518_v43, 0.0  ;;  %v4516_v44 = vadd.f32 %v9868_v11, %v4477_v52  ;;  %v4482_v15 = vadd.f32 %v7068_v13, %v4214_v39  ;;  %v10558_v43 = vld [vmem:[#allocation46_spill] sm:$0xff]  ;;  %v10559_v52 = vld [vmem:[#allocation69_spill] sm:$0xff]  ;;  %v7033_v13 = vpop.f32.mrf.mxu0 }
 0x30b   : > { %v4389_v46 = vpop.f32.mrf.mxu1  ;;  %v3957_v56 = vadd.f32 %v10560_v19, %v3683_v29  ;;  %v10572_v19 = vld [vmem:[#allocation38_spill] sm:$0xff] }
 0x30c   : > { %v4576_v8 = vpack.c.bf16 %v4550_v2, %v4549_v12  ;;  %v4548_v7 = vmax.f32 %v4516_v44, 0.0  ;;  %v4480_v6 = vadd.f32 %v4389_v46, %v4212_v5  ;;  %v4521_v57 = vadd.f32 %v9868_v11, %v4482_v15  ;;  %v10561_v2 = vld [vmem:[#allocation10_spill] sm:$0xff] }
 0x30d   : > { %v7069_v58 = vpop.f32.mrf.mxu1  ;;  %v3681_v5 = vadd.f32 %v10559_v52, %v10558_v43  ;;  %v4222_v44 = vadd.f32 %v9898_v3, %v10561_v2  ;;  %v4223_v3 = vadd.f32 %v9918_v4, %v3957_v56 }
 0x30e   : > { %v4483_v41 = vadd.f32 %v7069_v58, %v4215_v63  ;;  %v4575_v30 = vpack.c.bf16 %v4548_v7, %v4547_v50  ;;  %v4519_v16 = vadd.f32 %v9868_v11, %v4480_v6  ;;  %v4553_v35 = vmax.f32 %v4521_v57, 0.0 }
 0x30f   : > { %v4392_v14 = vpop.f32.mrf.mxu1  ;;  %v4220_v50 = vadd.f32 %v9909_v32, %v10562_v48 }
 0x310   : > { %v4522_v54 = vadd.f32 %v9868_v11, %v4483_v41  ;;  %v4481_v10 = vadd.f32 %v4392_v14, %v4213_v20  ;;  %7110 = vmatprep.mubr.bf16.mxu0 %v4575_v30  ;;  %v4551_v25 = vmax.f32 %v4519_v16, 0.0  ;;  %v4172_v41 = vpop.f32.mrf.mxu0 }
 0x311   : > { %v7072_v18 = vpop.f32.mrf.mxu1  ;;  %7111 = vmatmul.mubr.bf16.gmra.mxu0 %v4576_v8  ;;  %v10563_v8 = vld [vmem:[#allocation18_spill] sm:$0xff] }
 0x312   : > { %v4554_v27 = vmax.f32 %v4522_v54, 0.0  ;;  %v4520_v49 = vadd.f32 %v9868_v11, %v4481_v10  ;;  %v4486_v45 = vadd.f32 %v7072_v18, %v4218_v33  ;;  %v3955_v7 = vadd.f32 %v10563_v8, %v3681_v5  ;;  %v10565_v33 = vld [vmem:[#allocation57_spill] sm:$0xff] }
 0x313   : > { %v4405_v21 = vpop.f32.mrf.mxu1  ;;  %v3687_v32 = vadd.f32 %v10565_v33, %v10564_v37  ;;  %v3685_v18 = vadd.f32 %v10567_v42, %v10566_v47  ;;  %v10571_v5 = vld [vmem:[#allocation33_spill] sm:$0xff] }
 0x314   : > { %v4578_v22 = vpack.c.bf16 %v4554_v27, %v4553_v35  ;;  %v4552_v53 = vmax.f32 %v4520_v49, 0.0  ;;  %v4484_v36 = vadd.f32 %v4405_v21, %v4216_v51  ;;  %v4525_v28 = vadd.f32 %v9868_v11, %v4486_v45  ;;  %v7036_v35 = vpop.f32.mrf.mxu0  ;;  %v10568_v49 = vld [vmem:[#allocation12_spill] sm:$0xff] }
 0x315   : > { %v7073_v40 = vpop.f32.mrf.mxu1  ;;  %v4221_v54 = vadd.f32 %v9929_v59, %v3955_v7  ;;  %v3961_v4 = vadd.f32 %v9834_v23, %v3687_v32  ;;  %v4226_v45 = vadd.f32 %v7032_v26, %v10568_v49  ;;  %v10569_v59 = vld [vmem:[#allocation11_spill] sm:$0xff]  ;;  %v3691_v56 = vadd.f32 %v10572_v19, %v10571_v5 }
 0x316   : > { %v4487_v39 = vadd.f32 %v7073_v40, %v4219_v0  ;;  %v4577_v62 = vpack.c.bf16 %v4552_v53, %v4551_v25  ;;  %v4523_v15 = vadd.f32 %v9868_v11, %v4484_v36  ;;  %v4557_v61 = vmax.f32 %v4525_v28, 0.0  ;;  %v10570_v53 = vld [vmem:[#allocation77_spill] sm:$0xff]  ;;  %v4185_v28 = vpop.f32.mrf.mxu0 }
 0x317   : > { %v4408_v12 = vpop.f32.mrf.mxu1  ;;  %v3959_v36 = vadd.f32 %v10570_v53, %v3685_v18 }
 0x318   : > { %v4526_v63 = vadd.f32 %v9868_v11, %v4487_v39  ;;  %v4485_v46 = vadd.f32 %v4408_v12, %v4217_v55  ;;  %7114 = vmatprep.mubr.bf16.mxu0 %v4577_v62  ;;  %v4555_v24 = vmax.f32 %v4523_v15, 0.0  ;;  %v4227_v55 = vadd.f32 %v7033_v13, %v3961_v4  ;;  %v7037_v8 = vpop.f32.mrf.mxu0 }
 0x319   : > { %v7076_v6 = vpop.f32.mrf.mxu1  ;;  %7115 = vmatmul.mubr.bf16.gmra.mxu0 %v4578_v22  ;;  %v4224_v22 = vadd.f32 %v4169_v1, %v10569_v59  ;;  %v4225_v12 = vadd.f32 %v4172_v41, %v3959_v36 }
 0x31a   : > { %v4558_v58 = vmax.f32 %v4526_v63, 0.0  ;;  %v4524_v20 = vadd.f32 %v9868_v11, %v4485_v46  ;;  %v4490_v57 = vadd.f32 %v7076_v6, %v4222_v44  ;;  %v10573_v63 = vld [vmem:[#allocation39_spill] sm:$0xff]  ;;  %v10576_v6 = vld [vmem:[#allocation81_spill] sm:$0xff]  ;;  %v4188_v32 = vpop.f32.mrf.mxu0 }
 0x31b   : > { %v4421_v30 = vpop.f32.mrf.mxu1  ;;  %v10574_v46 = vld [vmem:[#allocation43_spill] sm:$0xff] }
 0x31c   : > { %v4580_v17 = vpack.c.bf16 %v4558_v58, %v4557_v61  ;;  %v4556_v60 = vmax.f32 %v4524_v20, 0.0  ;;  %v4488_v14 = vadd.f32 %v4421_v30, %v4220_v50  ;;  %v4529_v10 = vadd.f32 %v9868_v11, %v4490_v57  ;;  %v10575_v50 = vld [vmem:[#allocation36_spill] sm:$0xff] }
 0x31d   : > { %v7077_v16 = vpop.f32.mrf.mxu1  ;;  %v3689_v48 = vadd.f32 %v10574_v46, %v10573_v63  ;;  %v3965_v13 = vadd.f32 %v10575_v50, %v3691_v56  ;;  %v4230_v61 = vadd.f32 %v7036_v35, %v10576_v6 }
 0x31e   : > { %v4491_v38 = vadd.f32 %v7077_v16, %v4223_v3  ;;  %v4579_v51 = vpack.c.bf16 %v4556_v60, %v4555_v24  ;;  %v4527_v0 = vadd.f32 %v9868_v11, %v4488_v14  ;;  %v4561_v34 = vmax.f32 %v4529_v10, 0.0  ;;  %v10577_v3 = vld [vmem:[#allocation68_spill] sm:$0xff] }
 0x31f   : > { %v4424_v27 = vpop.f32.mrf.mxu1  ;;  %v4228_v41 = vadd.f32 %v4185_v28, %v10577_v3  ;;  %v3963_v30 = vadd.f32 %v9854_v9, %v3689_v48  ;;  %v4231_v33 = vadd.f32 %v7037_v8, %v3965_v13  ;;  %v7363_v8 = vld [vmem:[%s7621_s25 + $0x10] sm:$0xff]  }
 0x320   : > { %v4530_v21 = vadd.f32 %v9868_v11, %v4491_v38  ;;  %v4489_v25 = vadd.f32 %v4424_v27, %v4221_v54  ;;  %7118 = vmatprep.mubr.bf16.mxu0 %v4579_v51  ;;  %v4559_v39 = vmax.f32 %v4527_v0, 0.0 }
 0x321   : > { %v7080_v31 = vpop.f32.mrf.mxu1  ;;  %7119 = vmatmul.mubr.bf16.gmra.mxu0 %v4580_v17  ;;  %v4229_v42 = vadd.f32 %v4188_v32, %v3963_v30 }
 0x322   : > { %v4562_v29 = vmax.f32 %v4530_v21, 0.0  ;;  %v4528_v23 = vadd.f32 %v9868_v11, %v4489_v25  ;;  %v4494_v40 = vadd.f32 %v7080_v31, %v4226_v45  ;;  %v9995_v31 = vld [vmem:[%s10137_s8] ss:$0 sm:$0xff] }
 0x323   : > { %v4437_v26 = vpop.f32.mrf.mxu1 }
 0x324   : > { %v4582_v62 = vpack.c.bf16 %v4562_v29, %v4561_v34  ;;  %v4560_v43 = vmax.f32 %v4528_v23, 0.0  ;;  %v4492_v52 = vadd.f32 %v4437_v26, %v4224_v22  ;;  %v4533_v2 = vadd.f32 %v9868_v11, %v4494_v40  ;;  %v7360_v23 = vld [vmem:[%s7621_s25 + $0x8] sm:$0xff]  }
 0x325   : > { %v7081_v1 = vpop.f32.mrf.mxu1  ;;  %v4821_v40 = vunpack.c.l.bf16 %v7360_v23 }
 0x326   : > { %v4495_v44 = vadd.f32 %v7081_v1, %v4227_v55  ;;  %v4581_v15 = vpack.c.bf16 %v4560_v43, %v4559_v39  ;;  %v4531_v58 = vadd.f32 %v9868_v11, %v4492_v52  ;;  %v4565_v17 = vmax.f32 %v4533_v2, 0.0 }
 0x327   : > { %v4440_v7 = vpop.f32.mrf.mxu1  ;;  %v4822_v39 = vunpack.c.h.bf16 %v7360_v23 }
 0x328   : > { %v4534_v20 = vadd.f32 %v9868_v11, %v4495_v44  ;;  %v4493_v57 = vadd.f32 %v4440_v7, %v4225_v12  ;;  %7122 = vmatprep.mubr.bf16.mxu0 %v4581_v15  ;;  %v4563_v54 = vmax.f32 %v4531_v58, 0.0  ;;  %v7362_v44 = vld [vmem:[%s7621_s25 + $0x18] sm:$0xff]   ;;  %v4823_v7 = vunpack.c.l.bf16 %v7363_v8 }
 0x329   : > { %v7084_v24 = vpop.f32.mrf.mxu1  ;;  %7123 = vmatmul.mubr.bf16.gmra.mxu0 %v4582_v62  ;;  %v4825_v15 = vunpack.c.l.bf16 %v7362_v44  ;;  %v4826_v6 = vunpack.c.h.bf16 %v7362_v44 }
 0x32a   : > { %v4566_v60 = vmax.f32 %v4534_v20, 0.0  ;;  %v4532_v14 = vadd.f32 %v9868_v11, %v4493_v57  ;;  %v4498_v37 = vadd.f32 %v7084_v24, %v4230_v61 }
 0x32b   : > { %v4453_v16 = vpop.f32.mrf.mxu1 }
 0x32c   : > { %v4584_v10 = vpack.c.bf16 %v4566_v60, %v4565_v17  ;;  %v4564_v38 = vmax.f32 %v4532_v14, 0.0  ;;  %v4496_v51 = vadd.f32 %v4453_v16, %v4228_v41  ;;  %v4537_v18 = vadd.f32 %v9868_v11, %v4498_v37  ;;  %v7364_v16 = vld [vmem:[%s7621_s25 + $0x28] sm:$0xff]  }
 0x32d   : > { %v7085_v47 = vpop.f32.mrf.mxu1  ;;  %v4824_v17 = vunpack.c.h.bf16 %v7363_v8 }
 0x32e   : > { %v4499_v4 = vadd.f32 %v7085_v47, %v4231_v33  ;;  %v4583_v9 = vpack.c.bf16 %v4564_v38, %v4563_v54  ;;  %v4535_v27 = vadd.f32 %v9868_v11, %v4496_v51  ;;  %v4569_v0 = vmax.f32 %v4537_v18, 0.0  ;;  %v7365_v18 = vld [vmem:[%s7621_s25 + $0x20] sm:$0xff]  }
 0x32f   : > { %v4456_v35 = vpop.f32.mrf.mxu1  ;;  %v4829_v54 = vunpack.c.l.bf16 %v7364_v16 }
 0x330   : > { %v4538_v49 = vadd.f32 %v9868_v11, %v4499_v4  ;;  %v4497_v45 = vadd.f32 %v4456_v35, %v4229_v42  ;;  %7126 = vmatprep.mubr.bf16.mxu0 %v4583_v9  ;;  %v4567_v59 = vmax.f32 %v4535_v27, 0.0  ;;  %v4827_v4 = vunpack.c.l.bf16 %v7365_v18 }
 0x331   : > { %7127 = vmatmul.mubr.bf16.gmra.mxu0 %v4584_v10  ;;  %v4830_v9 = vunpack.c.h.bf16 %v7364_v16 }
 0x332   : > { %v4570_v21 = vmax.f32 %v4538_v49, 0.0  ;;  %v4536_v25 = vadd.f32 %v9868_v11, %v4497_v45  ;;  %v7361_v11 = vld [vmem:[%s7621_s25] sm:$0xff]  }
 0x333   : > { %v4819_v28 = vunpack.c.l.bf16 %v7361_v11  ;;  %v4820_v43 = vunpack.c.h.bf16 %v7361_v11 }
 0x334   : > { %v4586_v22 = vpack.c.bf16 %v4570_v21, %v4569_v0  ;;  %v4568_v53 = vmax.f32 %v4536_v25, 0.0 }
 0x336   : > { %v4585_v36 = vpack.c.bf16 %v4568_v53, %v4567_v59 }
 0x338   : > { %7130 = vmatprep.mubr.bf16.mxu0 %v4585_v36 }
 0x339   : > { %7131 = vmatmul.mubr.bf16.gmra.mxu0 %v4586_v22  ;;  %v4828_v22 = vunpack.c.h.bf16 %v7365_v18 }
 0x3c1   : > { %v7104_v34 = vpop.f32.mrf.mxu0 }
 0x3c2   : > { %v4701_v29 = vadd.f32 %v7104_v34, %v9995_v31 }
 0x3c3   : > { %v4692_v55 = vpop.f32.mrf.mxu0 }
 0x3c4   : > { %v4693_v26 = vadd.f32 %v9995_v31, %v4692_v55  ;;  %v4853_v52 = vadd.f32 %v4821_v40, %v4701_v29  ;;  %v7366_v40 = vld [vmem:[%s7621_s25 + $0x38] sm:$0xff]  }
 0x3c5   : > { %v7105_v62 = vpop.f32.mrf.mxu0  ;;  %v4833_v55 = vunpack.c.l.bf16 %v7366_v40 }
 0x3c6   : > { %v4704_v5 = vadd.f32 %v7105_v62, %v9995_v31  ;;  %v4851_v56 = vadd.f32 %v4819_v28, %v4693_v26  ;;  %v4885_v63 = vmax.f32 %v4853_v52, 0.0 }
 0x3c7   : > { %v4695_v19 = vpop.f32.mrf.mxu0 }
 0x3c8   : > { %v4854_v1 = vadd.f32 %v4822_v39, %v4704_v5  ;;  %v4696_v12 = vadd.f32 %v9995_v31, %v4695_v19  ;;  %v4883_v61 = vmax.f32 %v4851_v56, 0.0  ;;  %v4834_v5 = vunpack.c.h.bf16 %v7366_v40 }
 0x3c9   : > { %v7108_v2 = vpop.f32.mrf.mxu0 }
 0x3ca   : > { %v4886_v46 = vmax.f32 %v4854_v1, 0.0  ;;  %v4852_v48 = vadd.f32 %v4820_v43, %v4696_v12  ;;  %v4717_v50 = vadd.f32 %v7108_v2, %v9995_v31  ;;  %v7367_v43 = vld [vmem:[%s7621_s25 + $0x30] sm:$0xff]  }
 0x3cb   : > { %v4708_v13 = vpop.f32.mrf.mxu0  ;;  %v4831_v52 = vunpack.c.l.bf16 %v7367_v43 }
 0x3cc   : > { %v6111_v58 = vpack.c.bf16 %v4886_v46, %v4885_v63  ;;  %v4884_v20 = vmax.f32 %v4852_v48, 0.0  ;;  %v4709_v57 = vadd.f32 %v9995_v31, %v4708_v13  ;;  %v4857_v30 = vadd.f32 %v4825_v15, %v4717_v50 }
 0x3cd   : > { %v7109_v3 = vpop.f32.mrf.mxu0  ;;  %v4832_v46 = vunpack.c.h.bf16 %v7367_v43 }
 0x3ce   : > { %6183 = vst [vmem:[%s10010_s20 + $0x8] sm:$0xff] %v6111_v58   ;;  %v6106_v41 = vpack.c.bf16 %v4884_v20, %v4883_v61  ;;  %v4720_v24 = vadd.f32 %v7109_v3, %v9995_v31  ;;  %v4855_v14 = vadd.f32 %v4823_v7, %v4709_v57  ;;  %v4889_v10 = vmax.f32 %v4857_v30, 0.0  ;;  %v7369_v30 = vld [vmem:[%s7621_s25 + $0x40] sm:$0xff]  }
 0x3cf   : > { %v4711_v60 = vpop.f32.mrf.mxu0 }
 0x3d0   : > { %6107 = vst [vmem:[%s10010_s20] sm:$0xff] %v6106_v41   ;;  %v4858_v37 = vadd.f32 %v4826_v6, %v4720_v24  ;;  %v4712_v33 = vadd.f32 %v9995_v31, %v4711_v60  ;;  %v4887_v35 = vmax.f32 %v4855_v14, 0.0  ;;  %v7368_v6 = vld [vmem:[%s7621_s25 + $0x48] sm:$0xff]   ;;  %v4835_v24 = vunpack.c.l.bf16 %v7369_v30 }
 0x3d1   : > { %v7112_v32 = vpop.f32.mrf.mxu0  ;;  %v4837_v61 = vunpack.c.l.bf16 %v7368_v6 }
 0x3d2   : > { %v4890_v38 = vmax.f32 %v4858_v37, 0.0  ;;  %v4856_v51 = vadd.f32 %v4824_v17, %v4712_v33  ;;  %v4733_v47 = vadd.f32 %v7112_v32, %v9995_v31  ;;  %v4838_v17 = vunpack.c.h.bf16 %v7368_v6 }
 0x3d3   : > { %v4724_v42 = vpop.f32.mrf.mxu0 }
 0x3d4   : > { %v6121_v27 = vpack.c.bf16 %v4890_v38, %v4889_v10  ;;  %v4888_v49 = vmax.f32 %v4856_v51, 0.0  ;;  %v4725_v45 = vadd.f32 %v9995_v31, %v4724_v42  ;;  %v4861_v25 = vadd.f32 %v4829_v54, %v4733_v47 }
 0x3d5   : > { %v7113_v0 = vpop.f32.mrf.mxu0  ;;  %v4836_v38 = vunpack.c.h.bf16 %v7369_v30 }
 0x3d6   : > { %6185 = vst [vmem:[%s10010_s20 + $0x18] sm:$0xff] %v6121_v27   ;;  %v6116_v21 = vpack.c.bf16 %v4888_v49, %v4887_v35  ;;  %v4736_v59 = vadd.f32 %v7113_v0, %v9995_v31  ;;  %v4859_v36 = vadd.f32 %v4827_v4, %v4725_v45  ;;  %v4893_v11 = vmax.f32 %v4861_v25, 0.0  ;;  %v7371_v25 = vld [vmem:[%s7621_s25 + $0x50] sm:$0xff]  }
 0x3d7   : > { %v4727_v53 = vpop.f32.mrf.mxu0 }
 0x3d8   : > { %6184 = vst [vmem:[%s10010_s20 + $0x10] sm:$0xff] %v6116_v21   ;;  %v4862_v34 = vadd.f32 %v4830_v9, %v4736_v59  ;;  %v4728_v29 = vadd.f32 %v9995_v31, %v4727_v53  ;;  %v4891_v19 = vmax.f32 %v4859_v36, 0.0  ;;  %v7370_v9 = vld [vmem:[%s7621_s25 + $0x58] sm:$0xff]   ;;  %v4839_v59 = vunpack.c.l.bf16 %v7371_v25 }
 0x3d9   : > { %v7116_v23 = vpop.f32.mrf.mxu0  ;;  %v4841_v35 = vunpack.c.l.bf16 %v7370_v9 }
 0x3da   : > { %v4894_v28 = vmax.f32 %v4862_v34, 0.0  ;;  %v4860_v26 = vadd.f32 %v4828_v22, %v4728_v29  ;;  %v4749_v39 = vadd.f32 %v7116_v23, %v9995_v31  ;;  %v4842_v22 = vunpack.c.h.bf16 %v7370_v9 }
 0x3db   : > { %v4740_v62 = vpop.f32.mrf.mxu0 }
 0x3dc   : > { %v6131_v56 = vpack.c.bf16 %v4894_v28, %v4893_v11  ;;  %v4892_v1 = vmax.f32 %v4860_v26, 0.0  ;;  %v4741_v12 = vadd.f32 %v9995_v31, %v4740_v62  ;;  %v4865_v15 = vadd.f32 %v4833_v55, %v4749_v39 }
 0x3dd   : > { %v7117_v2 = vpop.f32.mrf.mxu0  ;;  %v4840_v28 = vunpack.c.h.bf16 %v7371_v25 }
 0x3de   : > { %6187 = vst [vmem:[%s10010_s20 + $0x28] sm:$0xff] %v6131_v56   ;;  %v6126_v44 = vpack.c.bf16 %v4892_v1, %v4891_v19  ;;  %v4752_v63 = vadd.f32 %v7117_v2, %v9995_v31  ;;  %v4863_v50 = vadd.f32 %v4831_v52, %v4741_v12  ;;  %v4897_v58 = vmax.f32 %v4865_v15, 0.0  ;;  %v7373_v15 = vld [vmem:[%s7621_s25 + $0x60] sm:$0xff]  }
 0x3df   : > { %v4743_v48 = vpop.f32.mrf.mxu0 }
 0x3e0   : > { %6186 = vst [vmem:[%s10010_s20 + $0x20] sm:$0xff] %v6126_v44   ;;  %v4866_v13 = vadd.f32 %v4834_v5, %v4752_v63  ;;  %v4744_v8 = vadd.f32 %v9995_v31, %v4743_v48  ;;  %v4895_v60 = vmax.f32 %v4863_v50, 0.0  ;;  %v7372_v5 = vld [vmem:[%s7621_s25 + $0x68] sm:$0xff]   ;;  %v4843_v63 = vunpack.c.l.bf16 %v7373_v15 }
 0x3e1   : > { %v7120_v7 = vpop.f32.mrf.mxu0  ;;  %v4845_v19 = vunpack.c.l.bf16 %v7372_v5 }
 0x3e2   : > { %v4898_v20 = vmax.f32 %v4866_v13, 0.0  ;;  %v4864_v57 = vadd.f32 %v4832_v46, %v4744_v8  ;;  %v4765_v3 = vadd.f32 %v7120_v7, %v9995_v31  ;;  %v4846_v46 = vunpack.c.h.bf16 %v7372_v5 }
 0x3e3   : > { %v4756_v41 = vpop.f32.mrf.mxu0 }
 0x3e4   : > { %v6141_v14 = vpack.c.bf16 %v4898_v20, %v4897_v58  ;;  %v4896_v37 = vmax.f32 %v4864_v57, 0.0  ;;  %v4757_v33 = vadd.f32 %v9995_v31, %v4756_v41  ;;  %v4869_v54 = vadd.f32 %v4837_v61, %v4765_v3 }
 0x3e5   : > { %v7121_v32 = vpop.f32.mrf.mxu0  ;;  %v4844_v20 = vunpack.c.h.bf16 %v7373_v15 }
 0x3e6   : > { %6189 = vst [vmem:[%s10010_s20 + $0x38] sm:$0xff] %v6141_v14   ;;  %v6136_v16 = vpack.c.bf16 %v4896_v37, %v4895_v60  ;;  %v4768_v10 = vadd.f32 %v7121_v32, %v9995_v31  ;;  %v4867_v47 = vadd.f32 %v4835_v24, %v4757_v33  ;;  %v4901_v27 = vmax.f32 %v4869_v54, 0.0  ;;  %v7375_v54 = vld [vmem:[%s7621_s25 + $0x70] sm:$0xff]  }
 0x3e7   : > { %v4759_v51 = vpop.f32.mrf.mxu0 }
 0x3e8   : > { %6188 = vst [vmem:[%s10010_s20 + $0x30] sm:$0xff] %v6136_v16   ;;  %v4870_v42 = vadd.f32 %v4838_v17, %v4768_v10  ;;  %v4760_v18 = vadd.f32 %v9995_v31, %v4759_v51  ;;  %v4899_v53 = vmax.f32 %v4867_v47, 0.0  ;;  %v7374_v17 = vld [vmem:[%s7621_s25 + $0x78] sm:$0xff]   ;;  %v4847_v10 = vunpack.c.l.bf16 %v7375_v54  ;;  %s4993_s25 = sadd.s32 %s6102_s21, %s5558_s18 }
 0x3e9   : > { %v7124_v4 = vpop.f32.mrf.mxu0  ;;  %v4849_v60 = vunpack.c.l.bf16 %v7374_v17  ;;  %s5559_s12 = sshll.u32 %s4993_s25, 6 }
 0x3ea   : > { %v4902_v49 = vmax.f32 %v4870_v42, 0.0  ;;  %v4868_v45 = vadd.f32 %v4836_v38, %v4760_v18  ;;  %v4781_v0 = vadd.f32 %v7124_v4, %v9995_v31  ;;  %v4850_v38 = vunpack.c.h.bf16 %v7374_v17  ;;  %s10070_s29 = scalar_lea.hbm %s10138_s9, %s5559_s12 }
 0x3eb   : > { %v4772_v21 = vpop.f32.mrf.mxu0 }
 0x3ec   : > { %v6151_v36 = vpack.c.bf16 %v4902_v49, %v4901_v27  ;;  %v4900_v34 = vmax.f32 %v4868_v45, 0.0  ;;  %v4773_v29 = vadd.f32 %v9995_v31, %v4772_v21  ;;  %v4873_v55 = vadd.f32 %v4841_v35, %v4781_v0 }
 0x3ed   : > { %v7125_v23 = vpop.f32.mrf.mxu0  ;;  %v4848_v49 = vunpack.c.h.bf16 %v7375_v54 }
 0x3ee   : > { %6191 = vst [vmem:[%s10010_s20 + $0x48] sm:$0xff] %v6151_v36   ;;  %v6146_v40 = vpack.c.bf16 %v4900_v34, %v4899_v53  ;;  %v4784_v11 = vadd.f32 %v7125_v23, %v9995_v31  ;;  %v4871_v39 = vadd.f32 %v4839_v59, %v4773_v29  ;;  %v4905_v56 = vmax.f32 %v4873_v55, 0.0 }
 0x3ef   : > { %v4775_v26 = vpop.f32.mrf.mxu0 }
 0x3f0   : > { %6190 = vst [vmem:[%s10010_s20 + $0x40] sm:$0xff] %v6146_v40   ;;  %v4874_v62 = vadd.f32 %v4842_v22, %v4784_v11  ;;  %v4776_v43 = vadd.f32 %v9995_v31, %v4775_v26  ;;  %v4903_v48 = vmax.f32 %v4871_v39, 0.0 }
 0x3f1   : > { %v7128_v52 = vpop.f32.mrf.mxu0 }
 0x3f2   : > { %v4906_v1 = vmax.f32 %v4874_v62, 0.0  ;;  %v4872_v12 = vadd.f32 %v4840_v28, %v4776_v43  ;;  %v4797_v2 = vadd.f32 %v7128_v52, %v9995_v31 }
 0x3f3   : > { %v4788_v44 = vpop.f32.mrf.mxu0 }
 0x3f4   : > { %v6161_v50 = vpack.c.bf16 %v4906_v1, %v4905_v56  ;;  %v4904_v13 = vmax.f32 %v4872_v12, 0.0  ;;  %v4789_v8 = vadd.f32 %v9995_v31, %v4788_v44  ;;  %v4877_v61 = vadd.f32 %v4845_v19, %v4797_v2 }
 0x3f5   : > { %v7129_v7 = vpop.f32.mrf.mxu0 }
 0x3f6   : > { %6193 = vst [vmem:[%s10010_s20 + $0x58] sm:$0xff] %v6161_v50   ;;  %v6156_v6 = vpack.c.bf16 %v4904_v13, %v4903_v48  ;;  %v4800_v58 = vadd.f32 %v7129_v7, %v9995_v31  ;;  %v4875_v3 = vadd.f32 %v4843_v63, %v4789_v8  ;;  %v4909_v14 = vmax.f32 %v4877_v61, 0.0 }
 0x3f7   : > { %v4791_v57 = vpop.f32.mrf.mxu0 }
 0x3f8   : > { %6192 = vst [vmem:[%s10010_s20 + $0x50] sm:$0xff] %v6156_v6   ;;  %v4878_v41 = vadd.f32 %v4846_v46, %v4800_v58  ;;  %v4792_v30 = vadd.f32 %v9995_v31, %v4791_v57  ;;  %v4907_v51 = vmax.f32 %v4875_v3, 0.0 }
 0x3f9   : > { %v7132_v24 = vpop.f32.mrf.mxu0 }
 0x3fa   : > { %v4910_v37 = vmax.f32 %v4878_v41, 0.0  ;;  %v4876_v33 = vadd.f32 %v4844_v20, %v4792_v30  ;;  %v4813_v32 = vadd.f32 %v7132_v24, %v9995_v31 }
 0x3fb   : > { %v4804_v16 = vpop.f32.mrf.mxu0 }
 0x3fc   : > { %v6171_v47 = vpack.c.bf16 %v4910_v37, %v4909_v14  ;;  %v4908_v42 = vmax.f32 %v4876_v33, 0.0  ;;  %v4805_v18 = vadd.f32 %v9995_v31, %v4804_v16  ;;  %v4881_v35 = vadd.f32 %v4849_v60, %v4813_v32 }
 0x3fd   : > { %v7133_v4 = vpop.f32.mrf.mxu0 }
 0x3fe   : > { %6195 = vst [vmem:[%s10010_s20 + $0x68] sm:$0xff] %v6171_v47   ;;  %v6166_v9 = vpack.c.bf16 %v4908_v42, %v4907_v51  ;;  %v4816_v27 = vadd.f32 %v7133_v4, %v9995_v31  ;;  %v4879_v0 = vadd.f32 %v4847_v10, %v4805_v18  ;;  %v4913_v59 = vmax.f32 %v4881_v35, 0.0 }
 0x3ff   : > { %v4807_v45 = vpop.f32.mrf.mxu0 }
 0x400   : > { %6194 = vst [vmem:[%s10010_s20 + $0x60] sm:$0xff] %v6166_v9   ;;  %v4882_v21 = vadd.f32 %v4850_v38, %v4816_v27  ;;  %v4808_v25 = vadd.f32 %v9995_v31, %v4807_v45  ;;  %v4911_v36 = vmax.f32 %v4879_v0, 0.0 }
 0x402   : > { %v4914_v22 = vmax.f32 %v4882_v21, 0.0  ;;  %v4880_v53 = vadd.f32 %v4848_v49, %v4808_v25 }
 0x404   : > { %v6181_v34 = vpack.c.bf16 %v4914_v22, %v4913_v59  ;;  %v4912_v29 = vmax.f32 %v4880_v53, 0.0 }
 0x406   : > { %6197 = vst [vmem:[%s10010_s20 + $0x78] sm:$0xff] %v6181_v34   ;;  %v6176_v31 = vpack.c.bf16 %v4912_v29, %v4911_v36 }
 0x408   : > { %6196 = vst [vmem:[%s10010_s20 + $0x70] sm:$0xff] %v6176_v31  }
 0x409   : > { %7389 = shalt.err (!%p7386_p13)
}
 0x40a   : > { %s7390_s19 = scalar_lea.hbm %s10070_s29, 2048  ;;  %s7394_s18 = scalar_lea.hbm %s10138_s9, 8192 }
 0x40b   : > { %p7391_p0 = scmp.ne.s32.totalorder %s10070_s29, %s7390_s19  ;;  %p7395_p4 = scmp.lt.s32.totalorder %s10070_s29, %s10138_s9 }
 0x40c   : > { %p7396_p5 = scmp.lt.s32.totalorder %s7394_s18, %s7390_s19 }
 0x40d   : > { %p7392_p1 = pnand %p7391_p0, %p7575_p3 }
 0x40e   : > { %p7397_p6 = por %p7396_p5, %p7395_p4 }
 0x40f   : > { %p7393_p2 = pneg %p7392_p1 }
 0x411   : > { %p7398_p7 = pnand %p7397_p6, %p7393_p2 }
 0x413   : > { %7401 = shalt.err (!%p7398_p7)
}
 0x414   : > { %s7472_s26 = smov 64   ;;  %s7473_s28 = smov 4  }
 0x415   : > { %7150 = dma.vmem_to_hbm [thread:$0]  (%p7575_p3), %s10072_s13, 2048, %s10070_s29, %s10078_s27, %s7472_s26, %s7472_s26, %s7473_s28  }
 0x416 PF: > { %p7156_p9 = scmp.ge.s32.totalorder %s7468_s16, 2  ;;  %s5011_s24 = sand.u32 1, %s7440_s30  }
 0x417   : > { %s5012_s17 = scalar_lea.sflag [#allocation3], %s5011_s24 }
 0x418   : > { %p7153_p10 = pnand %p7156_p9, %p7584_p8 }
 0x41a   : > { %p7154_p11 = pneg %p7153_p10 }
 0x41c   : > { %7435 = dma.done.wait (%p7154_p11), %s5012_s17, 2048  }
 0x41d   : > { %7437 = vsyncadd (%p7154_p11), %s5012_s17, 4294965248  ;;  %s22_s16 = sadd.s32 1, %s7468_s16   ;;  %s10578_s14 = sld [smem:[#allocation9_spill]] }
 0x41e   : > { %p19_p12 = scmp.ge.s32.totalorder %s22_s16, 6   ;;  %s10579_s12 = sld [smem:[#allocation5_spill]] }
 0x41f   : > { %s10580_s13 = sld [smem:[#allocation6_spill]]  ;;  %s10583_s30 = smov %s7444_s10 }
 0x420   : > { %s10581_s22 = sld [smem:[#allocation7_spill]]  ;;  %s10584_s10 = smov %s7448_s11 }
 0x421   : > { %s10582_s15 = sld [smem:[#allocation8_spill]] }
 0x422   :  { %21 = sbr.rel (!%p19_p12) target bundleno = 5 (0x5), region = 107 }
 0x423   : > { %s10585_s11 = smov %s10578_s14 }
 0x426   : > { %s10586_s14 = smov %s10581_s22 }
 0x427   :  { %5017 = vsyncpa [#allocation3], 1 }
 0x428   :  { %5019 = vsyncpa [#allocation3 + $0x1], 1 }

</bundles_post_ra>
